<compile_context>
chip_gen: v5e
topology: v5e:2x2
jax: 0.10.0
libtpu: 0.0.40
codegen_flags: <defaults>
</compile_context>

<pallas_src>
import functools
import math

import jax
import jax.numpy as jnp
from jax.experimental import pallas as pl
from jax.experimental.pallas import tpu as pltpu


# ---------------------------------------------------------------------------
# helpers
# ---------------------------------------------------------------------------
def _elu(y):
    # ELU(alpha=1) in f32; clamp before exp so the discarded lane of the
    # where-select cannot produce inf.
    return jnp.where(y > 0, y, jnp.exp(jnp.minimum(y, 0.0)) - 1.0)


def _vmem_capacity_bytes():
    # Generation-aware VMEM capacity (128 MiB on v5e/v6e, 64 MiB/TC on v7x).
    try:
        return int(pltpu.get_tpu_info().vmem_capacity_bytes)
    except Exception:
        return 64 * 1024 * 1024      # conservative (v7x-sized) fallback


def _vmem_limit_bytes():
    return int(0.85 * _vmem_capacity_bytes())


# ---------------------------------------------------------------------------
# Fused conv2d (valid padding, stride s, groups=1) + bias + ELU
#   - wrapper does a stride-phase split (no k^2 im2col inflation in HBM)
#   - kernel extracts patches with static contiguous slices and accumulates
#     k*k small MXU matmuls per output row in f32, then bias + ELU, bf16 out
# ---------------------------------------------------------------------------
def _conv_elu_kernel(x_ref, w_ref, b_ref, o_ref, *, k, s, Ho, Wo):
    # x_ref : (s*s, Hp, Wp, Cin)  phase-split image (bf16); phase p = ph*s+pw
    # w_ref : (k*k, Cin, Cout)    weights (bf16), index kh*k+kw
    # b_ref : (1, Cout)           bias (f32)
    # o_ref : (Ho, Wo, Cout)      ELU(conv + bias), bf16
    cout = w_ref.shape[-1]
    bias = b_ref[...]                                   # (1, Cout) f32
    wts = [w_ref[i] for i in range(k * k)]              # hoisted weight loads
    # TODO(synk): for large spatial extents, tile output rows over a grid axis
    # (or pl.loop) instead of this static per-row unroll.
    for oh in range(Ho):
        acc = jnp.zeros((Wo, cout), dtype=jnp.float32)
        for kh in range(k):
            ph, qh = kh % s, kh // s
            for kw in range(k):
                pw, qw = kw % s, kw // s
                # x[n, oh*s+kh, ow*s+kw, :] == phases[ph*s+pw, oh+qh, ow+qw, :]
                patch = x_ref[ph * s + pw, qh + oh, qw:qw + Wo, :]  # (Wo, Cin)
                acc = acc + jnp.dot(patch, wts[kh * k + kw],
                                    preferred_element_type=jnp.float32)
        o_ref[oh] = _elu(acc + bias).astype(o_ref.dtype)


def _phase_split_nhwc(x, s):
    """(N,H,W,C) -> (N, s*s, ceil(H/s), ceil(W/s), C).

    Phase p = ph*s+pw holds x[:, ph::s, pw::s, :] zero-padded to the common
    phase extent (padded rows/cols are never read by the kernel).  Total bytes
    == input bytes (this replaces the k^2-inflated im2col tensor)."""
    N, H, W, C = x.shape
    Hp = -(-H // s)
    Wp = -(-W // s)
    phases = []
    for ph in range(s):
        for pw in range(s):
            p = x[:, ph::s, pw::s, :]
            p = jnp.pad(p, ((0, 0), (0, Hp - p.shape[1]),
                            (0, Wp - p.shape[2]), (0, 0)))
            phases.append(p)
    return jnp.stack(phases, axis=1)


def conv2d_elu(x_nhwc, w_kkcc, b, k, s):
    """ELU(conv2d(x, w, stride=s, valid) + b); NHWC in, NHWC bf16 out."""
    N, H, W, Cin = x_nhwc.shape
    Cout = w_kkcc.shape[-1]
    Ho = (H - k) // s + 1
    Wo = (W - k) // s + 1

    xp = _phase_split_nhwc(x_nhwc.astype(jnp.bfloat16), s)
    _, _, Hp, Wp, _ = xp.shape

    cost = pl.CostEstimate(
        flops=2 * N * Ho * Wo * k * k * Cin * Cout,
        transcendentals=N * Ho * Wo * Cout,
        bytes_accessed=int(xp.size) * 2 + int(w_kkcc.size) * 2
        + int(b.size) * 4 + N * Ho * Wo * Cout * 2,
    )

    return pl.pallas_call(
        functools.partial(_conv_elu_kernel, k=k, s=s, Ho=Ho, Wo=Wo),
        out_shape=jax.ShapeDtypeStruct((N, Ho, Wo, Cout), jnp.bfloat16),
        grid=(N,),                                   # batch-parallel blocks
        in_specs=[
            pl.BlockSpec((pl.Squeezed(), s * s, Hp, Wp, Cin),
                         lambda n: (n, 0, 0, 0, 0)),
            pl.BlockSpec((k * k, Cin, Cout), lambda n: (0, 0, 0)),
            pl.BlockSpec((1, Cout), lambda n: (0, 0)),
        ],
        out_specs=pl.BlockSpec((pl.Squeezed(), Ho, Wo, Cout),
                               lambda n: (n, 0, 0, 0)),
        compiler_params=pltpu.CompilerParams(
            dimension_semantics=("parallel",),
            vmem_limit_bytes=_vmem_limit_bytes(),
        ),
        cost_estimate=cost,
    )(xp, w_kkcc, b)


# ---------------------------------------------------------------------------
# MLP: whole stack fused into one pallas_call (bf16 MXU, f32 accumulate,
# ELU between layers, f32 final output), with a VMEM-budget fallback.
# ---------------------------------------------------------------------------
def _mlp_kernel(*refs, n_layers):
    x_ref = refs[0]
    o_ref = refs[-1]
    h = x_ref[...]                                       # (M, K) bf16
    for li in range(n_layers):
        w = refs[1 + 2 * li][...]
        b = refs[2 + 2 * li][...]
        y = jnp.dot(h, w, preferred_element_type=jnp.float32) + b
        if li < n_layers - 1:                            # ELU except after last
            h = _elu(y).astype(jnp.bfloat16)
        else:
            h = y
    o_ref[...] = h.astype(o_ref.dtype)


def _linear_kernel(x_ref, w_ref, b_ref, o_ref, *, apply_act):
    y = jnp.dot(x_ref[...], w_ref[...], preferred_element_type=jnp.float32)
    y = y + b_ref[...]
    if apply_act:
        y = _elu(y)
    o_ref[...] = y.astype(o_ref.dtype)


def _linear(x, w, b, *, apply_act, out_dtype):
    # Fallback path: one pallas_call per layer, full-array blocks.
    # TODO(synk): K/N-tile very large layers (grid over K + f32 VMEM
    # accumulator) instead of whole-layer blocks.
    M, N = x.shape[0], w.shape[1]
    return pl.pallas_call(
        functools.partial(_linear_kernel, apply_act=apply_act),
        out_shape=jax.ShapeDtypeStruct((M, N), out_dtype),
        grid=(1,),
        in_specs=[pl.BlockSpec(x.shape, lambda i: (0, 0)),
                  pl.BlockSpec(w.shape, lambda i: (0, 0)),
                  pl.BlockSpec(b.shape, lambda i: (0, 0))],
        out_specs=pl.BlockSpec((M, N), lambda i: (0, 0)),
        compiler_params=pltpu.CompilerParams(
            dimension_semantics=("arbitrary",),
            vmem_limit_bytes=_vmem_limit_bytes()),
    )(x.astype(jnp.bfloat16), w, b)


def mlp_forward(x, weights, biases):
    """ELU-MLP forward.  x:(M,K); weights[i]:(Ki,Ni) bf16; biases[i]:(1,Ni) f32."""
    M = x.shape[0]
    n_layers = len(weights)
    x = x.astype(jnp.bfloat16)

    # VMEM-budget guard (v7x has only 64 MiB/TC): fused whole-MLP path only if
    # the double-buffered working set comfortably fits this generation's VMEM.
    # (Resident weights could be single-buffered via pipeline_mode; they are
    # tiny here, so default buffering is kept for maximum robustness.)
    widest = max(w.shape[1] for w in weights)
    need = 2 * (int(x.size) * 2
                + sum(int(w.size) * 2 + int(b.size) * 4
                      for w, b in zip(weights, biases))
                + M * weights[-1].shape[1] * 4) + M * widest * 4
    budget = int(0.70 * _vmem_capacity_bytes())
    if need > budget:
        h = x
        for li, (w, b) in enumerate(zip(weights, biases)):
            last = li == n_layers - 1
            h = _linear(h, w, b, apply_act=not last,
                        out_dtype=jnp.float32 if last else jnp.bfloat16)
        return h

    in_specs = [pl.BlockSpec(x.shape, lambda i: (0, 0))]
    args = [x]
    flops = 0
    for w, b in zip(weights, biases):
        in_specs.append(pl.BlockSpec(w.shape, lambda i: (0, 0)))
        in_specs.append(pl.BlockSpec(b.shape, lambda i: (0, 0)))
        args += [w, b]
        flops += 2 * M * w.shape[0] * w.shape[1]
    n_out = weights[-1].shape[1]

    return pl.pallas_call(
        functools.partial(_mlp_kernel, n_layers=n_layers),
        out_shape=jax.ShapeDtypeStruct((M, n_out), jnp.float32),
        grid=(1,),      # batch rows < 8 cannot be split further ((8,128) rule)
        in_specs=in_specs,
        out_specs=pl.BlockSpec((M, n_out), lambda i: (0, 0)),
        compiler_params=pltpu.CompilerParams(
            dimension_semantics=("arbitrary",),
            vmem_limit_bytes=_vmem_limit_bytes(),
        ),
        cost_estimate=pl.CostEstimate(
            flops=flops,
            transcendentals=M * sum(w.shape[1] for w in weights[:-1]),
            bytes_accessed=int(x.size) * 2
            + sum(int(w.size) * 2 + int(b.size) * 4
                  for w, b in zip(weights, biases)) + M * n_out * 4,
        ),
    )(*args)


# ---------------------------------------------------------------------------
# CNN2D forward (activation_fn = ELU, groups = 1)
# ---------------------------------------------------------------------------
class CNN2DPallas:
    def __init__(self, input_shape, channels, mlp_layers, kernels, strides, key):
        self.input_shape = tuple(input_shape)
        self.channels = list(channels)
        self.kernels = list(kernels)
        self.strides = list(strides)
        self.mlp_layers = list(mlp_layers)

        keys = jax.random.split(key, 2 * (len(channels) + len(mlp_layers)))
        ki = 0

        # Conv parameters: torch layout (Cout,Cin,kh,kw) -> (k*k, Cin, Cout) bf16.
        self.conv_w = []
        self.conv_b = []
        cin = input_shape[0]
        H, W = input_shape[1], input_shape[2]
        for cout, k, s in zip(channels, kernels, strides):
            fan_in = cin * k * k
            bound = 1.0 / math.sqrt(fan_in)
            w = jax.random.uniform(keys[ki], (cout, cin, k, k), jnp.float32,
                                   -bound, bound); ki += 1
            b = jax.random.uniform(keys[ki], (cout,), jnp.float32,
                                   -bound, bound); ki += 1
            w_kkcc = jnp.transpose(w, (2, 3, 1, 0)).reshape(k * k, cin, cout)
            self.conv_w.append(w_kkcc.astype(jnp.bfloat16))
            self.conv_b.append(b.reshape(1, cout).astype(jnp.float32))
            H = (H - k) // s + 1
            W = (W - k) // s + 1
            cin = cout

        self.conv_out_hwc = (H, W, cin)
        self.flat_dim = cin * H * W

        # MLP parameters (reference uses orthogonal init; deterministic
        # synthetic init here).  First-layer rows are permuted once at init so
        # the layer consumes the NHWC-flattened conv output directly (removes
        # the runtime NHWC->NCHW transpose before flatten).
        gain = 1.0 / math.sqrt(2.0)
        self.mlp_w = []
        self.mlp_b = []
        prev = self.flat_dim
        for li, n in enumerate(mlp_layers):
            w = gain * jax.random.normal(keys[ki], (prev, n), jnp.float32) \
                / math.sqrt(prev); ki += 1
            b = jax.random.uniform(keys[ki], (n,), jnp.float32,
                                   -1.0 / math.sqrt(prev),
                                   1.0 / math.sqrt(prev)); ki += 1
            if li == 0:
                Hc, Wc, Cc = self.conv_out_hwc
                hh, ww, cc = jnp.meshgrid(jnp.arange(Hc), jnp.arange(Wc),
                                          jnp.arange(Cc), indexing="ij")
                # position (h,w,c) in our flatten <- torch flatten index (c,h,w)
                perm = (cc * (Hc * Wc) + hh * Wc + ww).reshape(-1)
                w = w[perm, :]
            self.mlp_w.append(w.astype(jnp.bfloat16))
            self.mlp_b.append(b.reshape(1, n).astype(jnp.float32))
            prev = n

    def __call__(self, x):
        C, H, W = self.input_shape
        x = x.reshape(-1, C, H, W)                    # x.view(-1, C, H, W)
        x = jnp.transpose(x, (0, 2, 3, 1))            # NCHW -> NHWC, once
        for w, b, k, s in zip(self.conv_w, self.conv_b,
                              self.kernels, self.strides):
            x = conv2d_elu(x, w, b, k, s)             # fused conv+bias+ELU, bf16
        # Flatten in NHWC order; the first MLP weight was row-permuted at init
        # so this matches torch.flatten(x, 1) on NCHW.
        x = x.reshape(x.shape[0], -1)
        return mlp_forward(x, self.mlp_w, self.mlp_b)


if __name__ == "__main__":
    key = jax.random.PRNGKey(0)
    k_params, k_x = jax.random.split(key)

    # small config consistent with the module's constructor signature
    input_shape = (4, 16, 16)          # (Cin, H, W)
    channels = [8, 16]
    kernels = [3, 3]
    strides = [2, 2]
    mlp_layers = [32, 8]
    batch = 2

    model = CNN2DPallas(input_shape, channels, mlp_layers, kernels, strides,
                        k_params)

    x = jax.random.normal(k_x, (batch,) + input_shape, jnp.float32)
    fwd = jax.jit(lambda inp: model(inp))
    out = jax.block_until_ready(fwd(x))

    assert out.shape == (batch, mlp_layers[-1]), out.shape
    assert bool(jnp.all(jnp.isfinite(out)))
    print("KERNEL_OK")
</pallas_src>

<mosaic_0001>
module attributes {stable_mosaic.version = 11 : i64} {
  func.func @_conv_elu_kernel(%arg0: i32, %arg1: memref<1x4x8x8x4xbf16, #tpu.memory_space<vmem>>, %arg2: memref<9x4x8xbf16, #tpu.memory_space<vmem>>, %arg3: memref<1x8xf32, #tpu.memory_space<vmem>>, %arg4: memref<1x7x7x8xbf16, #tpu.memory_space<vmem>>) attributes {dimension_semantics = [#tpu.dimension_semantics<parallel>], iteration_bounds = array<i64: 2>, scalar_prefetch = 0 : i64, scratch_operands = 0 : i64, tpu.core_type = #tpu.core_type<tc>, window_params = [{transform_indices = @transform_0, window_bounds = array<i64: 1, 4, 8, 8, 4>}, {pipeline_mode = #tpu.pipeline_mode<synchronous>, transform_indices = @transform_1, window_bounds = array<i64: 9, 4, 8>}, {pipeline_mode = #tpu.pipeline_mode<synchronous>, transform_indices = @transform_2, window_bounds = array<i64: 1, 8>}, {transform_indices = @transform_3, window_bounds = array<i64: 1, 7, 7, 8>}]} {
    %c0 = arith.constant 0 : index
    %c0_0 = arith.constant 0 : index
    %0 = vector.load %arg3[%c0, %c0_0] : memref<1x8xf32, #tpu.memory_space<vmem>>, vector<1x8xf32>
    %c0_1 = arith.constant 0 : index
    %c0_2 = arith.constant 0 : index
    %c0_3 = arith.constant 0 : index
    %1 = vector.load %arg2[%c0_1, %c0_2, %c0_3] : memref<9x4x8xbf16, #tpu.memory_space<vmem>>, vector<1x4x8xbf16>
    %2 = vector.shape_cast %1 : vector<1x4x8xbf16> to vector<4x8xbf16>
    %c1 = arith.constant 1 : index
    %c0_4 = arith.constant 0 : index
    %c0_5 = arith.constant 0 : index
    %3 = vector.load %arg2[%c1, %c0_4, %c0_5] : memref<9x4x8xbf16, #tpu.memory_space<vmem>>, vector<1x4x8xbf16>
    %4 = vector.shape_cast %3 : vector<1x4x8xbf16> to vector<4x8xbf16>
    %c2 = arith.constant 2 : index
    %c0_6 = arith.constant 0 : index
    %c0_7 = arith.constant 0 : index
    %5 = vector.load %arg2[%c2, %c0_6, %c0_7] : memref<9x4x8xbf16, #tpu.memory_space<vmem>>, vector<1x4x8xbf16>
    %6 = vector.shape_cast %5 : vector<1x4x8xbf16> to vector<4x8xbf16>
    %c3 = arith.constant 3 : index
    %c0_8 = arith.constant 0 : index
    %c0_9 = arith.constant 0 : index
    %7 = vector.load %arg2[%c3, %c0_8, %c0_9] : memref<9x4x8xbf16, #tpu.memory_space<vmem>>, vector<1x4x8xbf16>
    %8 = vector.shape_cast %7 : vector<1x4x8xbf16> to vector<4x8xbf16>
    %c4 = arith.constant 4 : index
    %c0_10 = arith.constant 0 : index
    %c0_11 = arith.constant 0 : index
    %9 = vector.load %arg2[%c4, %c0_10, %c0_11] : memref<9x4x8xbf16, #tpu.memory_space<vmem>>, vector<1x4x8xbf16>
    %10 = vector.shape_cast %9 : vector<1x4x8xbf16> to vector<4x8xbf16>
    %c5 = arith.constant 5 : index
    %c0_12 = arith.constant 0 : index
    %c0_13 = arith.constant 0 : index
    %11 = vector.load %arg2[%c5, %c0_12, %c0_13] : memref<9x4x8xbf16, #tpu.memory_space<vmem>>, vector<1x4x8xbf16>
    %12 = vector.shape_cast %11 : vector<1x4x8xbf16> to vector<4x8xbf16>
    %c6 = arith.constant 6 : index
    %c0_14 = arith.constant 0 : index
    %c0_15 = arith.constant 0 : index
    %13 = vector.load %arg2[%c6, %c0_14, %c0_15] : memref<9x4x8xbf16, #tpu.memory_space<vmem>>, vector<1x4x8xbf16>
    %14 = vector.shape_cast %13 : vector<1x4x8xbf16> to vector<4x8xbf16>
    %c7 = arith.constant 7 : index
    %c0_16 = arith.constant 0 : index
    %c0_17 = arith.constant 0 : index
    %15 = vector.load %arg2[%c7, %c0_16, %c0_17] : memref<9x4x8xbf16, #tpu.memory_space<vmem>>, vector<1x4x8xbf16>
    %16 = vector.shape_cast %15 : vector<1x4x8xbf16> to vector<4x8xbf16>
    %c8 = arith.constant 8 : index
    %c0_18 = arith.constant 0 : index
    %c0_19 = arith.constant 0 : index
    %17 = vector.load %arg2[%c8, %c0_18, %c0_19] : memref<9x4x8xbf16, #tpu.memory_space<vmem>>, vector<1x4x8xbf16>
    %18 = vector.shape_cast %17 : vector<1x4x8xbf16> to vector<4x8xbf16>
    %cst = arith.constant 0.000000e+00 : f32
    %19 = vector.broadcast %cst : f32 to vector<7x8xf32>
    %c0_20 = arith.constant 0 : index
    %c0_21 = arith.constant 0 : index
    %c0_22 = arith.constant 0 : index
    %c0_23 = arith.constant 0 : index
    %c0_24 = arith.constant 0 : index
    %20 = vector.load %arg1[%c0_20, %c0_21, %c0_22, %c0_23, %c0_24] : memref<1x4x8x8x4xbf16, #tpu.memory_space<vmem>>, vector<1x1x1x7x4xbf16>
    %21 = vector.shape_cast %20 : vector<1x1x1x7x4xbf16> to vector<7x4xbf16>
    %cst_25 = arith.constant dense<0.000000e+00> : vector<7x8xf32>
    %22 = tpu.matmul %21, %2, %cst_25 {dimension_numbers = #tpu.dot_dimension_numbers<[1], [0], [0], [1], [0, 0, 1, 1], [], []>} : vector<7x4xbf16>, vector<4x8xbf16>, vector<7x8xf32> -> vector<7x8xf32>
    %23 = arith.addf %19, %22 : vector<7x8xf32>
    %c0_26 = arith.constant 0 : index
    %c1_27 = arith.constant 1 : index
    %c0_28 = arith.constant 0 : index
    %c0_29 = arith.constant 0 : index
    %c0_30 = arith.constant 0 : index
    %24 = vector.load %arg1[%c0_26, %c1_27, %c0_28, %c0_29, %c0_30] : memref<1x4x8x8x4xbf16, #tpu.memory_space<vmem>>, vector<1x1x1x7x4xbf16>
    %25 = vector.shape_cast %24 : vector<1x1x1x7x4xbf16> to vector<7x4xbf16>
    %cst_31 = arith.constant dense<0.000000e+00> : vector<7x8xf32>
    %26 = tpu.matmul %25, %4, %cst_31 {dimension_numbers = #tpu.dot_dimension_numbers<[1], [0], [0], [1], [0, 0, 1, 1], [], []>} : vector<7x4xbf16>, vector<4x8xbf16>, vector<7x8xf32> -> vector<7x8xf32>
    %27 = arith.addf %23, %26 : vector<7x8xf32>
    %c0_32 = arith.constant 0 : index
    %c0_33 = arith.constant 0 : index
    %c0_34 = arith.constant 0 : index
    %c1_35 = arith.constant 1 : index
    %c0_36 = arith.constant 0 : index
    %28 = vector.load %arg1[%c0_32, %c0_33, %c0_34, %c1_35, %c0_36] : memref<1x4x8x8x4xbf16, #tpu.memory_space<vmem>>, vector<1x1x1x7x4xbf16>
    %29 = vector.shape_cast %28 : vector<1x1x1x7x4xbf16> to vector<7x4xbf16>
    %cst_37 = arith.constant dense<0.000000e+00> : vector<7x8xf32>
    %30 = tpu.matmul %29, %6, %cst_37 {dimension_numbers = #tpu.dot_dimension_numbers<[1], [0], [0], [1], [0, 0, 1, 1], [], []>} : vector<7x4xbf16>, vector<4x8xbf16>, vector<7x8xf32> -> vector<7x8xf32>
    %31 = arith.addf %27, %30 : vector<7x8xf32>
    %c0_38 = arith.constant 0 : index
    %c2_39 = arith.constant 2 : index
    %c0_40 = arith.constant 0 : index
    %c0_41 = arith.constant 0 : index
    %c0_42 = arith.constant 0 : index
    %32 = vector.load %arg1[%c0_38, %c2_39, %c0_40, %c0_41, %c0_42] : memref<1x4x8x8x4xbf16, #tpu.memory_space<vmem>>, vector<1x1x1x7x4xbf16>
    %33 = vector.shape_cast %32 : vector<1x1x1x7x4xbf16> to vector<7x4xbf16>
    %cst_43 = arith.constant dense<0.000000e+00> : vector<7x8xf32>
    %34 = tpu.matmul %33, %8, %cst_43 {dimension_numbers = #tpu.dot_dimension_numbers<[1], [0], [0], [1], [0, 0, 1, 1], [], []>} : vector<7x4xbf16>, vector<4x8xbf16>, vector<7x8xf32> -> vector<7x8xf32>
    %35 = arith.addf %31, %34 : vector<7x8xf32>
    %c0_44 = arith.constant 0 : index
    %c3_45 = arith.constant 3 : index
    %c0_46 = arith.constant 0 : index
    %c0_47 = arith.constant 0 : index
    %c0_48 = arith.constant 0 : index
    %36 = vector.load %arg1[%c0_44, %c3_45, %c0_46, %c0_47, %c0_48] : memref<1x4x8x8x4xbf16, #tpu.memory_space<vmem>>, vector<1x1x1x7x4xbf16>
    %37 = vector.shape_cast %36 : vector<1x1x1x7x4xbf16> to vector<7x4xbf16>
    %cst_49 = arith.constant dense<0.000000e+00> : vector<7x8xf32>
    %38 = tpu.matmul %37, %10, %cst_49 {dimension_numbers = #tpu.dot_dimension_numbers<[1], [0], [0], [1], [0, 0, 1, 1], [], []>} : vector<7x4xbf16>, vector<4x8xbf16>, vector<7x8xf32> -> vector<7x8xf32>
    %39 = arith.addf %35, %38 : vector<7x8xf32>
    %c0_50 = arith.constant 0 : index
    %c2_51 = arith.constant 2 : index
    %c0_52 = arith.constant 0 : index
    %c1_53 = arith.constant 1 : index
    %c0_54 = arith.constant 0 : index
    %40 = vector.load %arg1[%c0_50, %c2_51, %c0_52, %c1_53, %c0_54] : memref<1x4x8x8x4xbf16, #tpu.memory_space<vmem>>, vector<1x1x1x7x4xbf16>
    %41 = vector.shape_cast %40 : vector<1x1x1x7x4xbf16> to vector<7x4xbf16>
    %cst_55 = arith.constant dense<0.000000e+00> : vector<7x8xf32>
    %42 = tpu.matmul %41, %12, %cst_55 {dimension_numbers = #tpu.dot_dimension_numbers<[1], [0], [0], [1], [0, 0, 1, 1], [], []>} : vector<7x4xbf16>, vector<4x8xbf16>, vector<7x8xf32> -> vector<7x8xf32>
    %43 = arith.addf %39, %42 : vector<7x8xf32>
    %c0_56 = arith.constant 0 : index
    %c0_57 = arith.constant 0 : index
    %c1_58 = arith.constant 1 : index
    %c0_59 = arith.constant 0 : index
    %c0_60 = arith.constant 0 : index
    %44 = vector.load %arg1[%c0_56, %c0_57, %c1_58, %c0_59, %c0_60] : memref<1x4x8x8x4xbf16, #tpu.memory_space<vmem>>, vector<1x1x1x7x4xbf16>
    %45 = vector.shape_cast %44 : vector<1x1x1x7x4xbf16> to vector<7x4xbf16>
    %cst_61 = arith.constant dense<0.000000e+00> : vector<7x8xf32>
    %46 = tpu.matmul %45, %14, %cst_61 {dimension_numbers = #tpu.dot_dimension_numbers<[1], [0], [0], [1], [0, 0, 1, 1], [], []>} : vector<7x4xbf16>, vector<4x8xbf16>, vector<7x8xf32> -> vector<7x8xf32>
    %47 = arith.addf %43, %46 : vector<7x8xf32>
    %c0_62 = arith.constant 0 : index
    %c1_63 = arith.constant 1 : index
    %c1_64 = arith.constant 1 : index
    %c0_65 = arith.constant 0 : index
    %c0_66 = arith.constant 0 : index
    %48 = vector.load %arg1[%c0_62, %c1_63, %c1_64, %c0_65, %c0_66] : memref<1x4x8x8x4xbf16, #tpu.memory_space<vmem>>, vector<1x1x1x7x4xbf16>
    %49 = vector.shape_cast %48 : vector<1x1x1x7x4xbf16> to vector<7x4xbf16>
    %cst_67 = arith.constant dense<0.000000e+00> : vector<7x8xf32>
    %50 = tpu.matmul %49, %16, %cst_67 {dimension_numbers = #tpu.dot_dimension_numbers<[1], [0], [0], [1], [0, 0, 1, 1], [], []>} : vector<7x4xbf16>, vector<4x8xbf16>, vector<7x8xf32> -> vector<7x8xf32>
    %51 = arith.addf %47, %50 : vector<7x8xf32>
    %c0_68 = arith.constant 0 : index
    %c0_69 = arith.constant 0 : index
    %c1_70 = arith.constant 1 : index
    %c1_71 = arith.constant 1 : index
    %c0_72 = arith.constant 0 : index
    %52 = vector.load %arg1[%c0_68, %c0_69, %c1_70, %c1_71, %c0_72] : memref<1x4x8x8x4xbf16, #tpu.memory_space<vmem>>, vector<1x1x1x7x4xbf16>
    %53 = vector.shape_cast %52 : vector<1x1x1x7x4xbf16> to vector<7x4xbf16>
    %cst_73 = arith.constant dense<0.000000e+00> : vector<7x8xf32>
    %54 = tpu.matmul %53, %18, %cst_73 {dimension_numbers = #tpu.dot_dimension_numbers<[1], [0], [0], [1], [0, 0, 1, 1], [], []>} : vector<7x4xbf16>, vector<4x8xbf16>, vector<7x8xf32> -> vector<7x8xf32>
    %55 = arith.addf %51, %54 : vector<7x8xf32>
    %56 = vector.broadcast %0 : vector<1x8xf32> to vector<7x8xf32>
    %57 = arith.addf %55, %56 : vector<7x8xf32>
    %cst_74 = arith.constant 0.000000e+00 : f32
    %58 = vector.broadcast %cst_74 : f32 to vector<7x8xf32>
    %59 = arith.cmpf ogt, %57, %58 : vector<7x8xf32>
    %cst_75 = arith.constant 0.000000e+00 : f32
    %60 = vector.broadcast %cst_75 : f32 to vector<7x8xf32>
    %61 = arith.minimumf %57, %60 : vector<7x8xf32>
    %62 = math.exp %61 : vector<7x8xf32>
    %cst_76 = arith.constant 1.000000e+00 : f32
    %63 = vector.broadcast %cst_76 : f32 to vector<7x8xf32>
    %64 = arith.subf %62, %63 : vector<7x8xf32>
    %65 = arith.select %59, %57, %64 : vector<7x8xi1>, vector<7x8xf32>
    %66 = arith.truncf %65 : vector<7x8xf32> to vector<7x8xbf16>
    %c0_77 = arith.constant 0 : index
    %c0_78 = arith.constant 0 : index
    %c0_79 = arith.constant 0 : index
    %c0_80 = arith.constant 0 : index
    %67 = vector.load %arg4[%c0_77, %c0_78, %c0_79, %c0_80] : memref<1x7x7x8xbf16, #tpu.memory_space<vmem>>, vector<1x1x7x8xbf16>
    %68 = vector.shape_cast %67 : vector<1x1x7x8xbf16> to vector<7x8xbf16>
    %69 = vector.shape_cast %66 : vector<7x8xbf16> to vector<1x1x7x8xbf16>
    tpu.vector_store %arg4[%c0_77, %c0_78, %c0_79, %c0_80], %69 {strides = array<i32>} : memref<1x7x7x8xbf16, #tpu.memory_space<vmem>>, vector<1x1x7x8xbf16>,
    %cst_81 = arith.constant 0.000000e+00 : f32
    %70 = vector.broadcast %cst_81 : f32 to vector<7x8xf32>
    %c0_82 = arith.constant 0 : index
    %c0_83 = arith.constant 0 : index
    %c1_84 = arith.constant 1 : index
    %c0_85 = arith.constant 0 : index
    %c0_86 = arith.constant 0 : index
    %71 = vector.load %arg1[%c0_82, %c0_83, %c1_84, %c0_85, %c0_86] : memref<1x4x8x8x4xbf16, #tpu.memory_space<vmem>>, vector<1x1x1x7x4xbf16>
    %72 = vector.shape_cast %71 : vector<1x1x1x7x4xbf16> to vector<7x4xbf16>
    %cst_87 = arith.constant dense<0.000000e+00> : vector<7x8xf32>
    %73 = tpu.matmul %72, %2, %cst_87 {dimension_numbers = #tpu.dot_dimension_numbers<[1], [0], [0], [1], [0, 0, 1, 1], [], []>} : vector<7x4xbf16>, vector<4x8xbf16>, vector<7x8xf32> -> vector<7x8xf32>
    %74 = arith.addf %70, %73 : vector<7x8xf32>
    %c0_88 = arith.constant 0 : index
    %c1_89 = arith.constant 1 : index
    %c1_90 = arith.constant 1 : index
    %c0_91 = arith.constant 0 : index
    %c0_92 = arith.constant 0 : index
    %75 = vector.load %arg1[%c0_88, %c1_89, %c1_90, %c0_91, %c0_92] : memref<1x4x8x8x4xbf16, #tpu.memory_space<vmem>>, vector<1x1x1x7x4xbf16>
    %76 = vector.shape_cast %75 : vector<1x1x1x7x4xbf16> to vector<7x4xbf16>
    %cst_93 = arith.constant dense<0.000000e+00> : vector<7x8xf32>
    %77 = tpu.matmul %76, %4, %cst_93 {dimension_numbers = #tpu.dot_dimension_numbers<[1], [0], [0], [1], [0, 0, 1, 1], [], []>} : vector<7x4xbf16>, vector<4x8xbf16>, vector<7x8xf32> -> vector<7x8xf32>
    %78 = arith.addf %74, %77 : vector<7x8xf32>
    %c0_94 = arith.constant 0 : index
    %c0_95 = arith.constant 0 : index
    %c1_96 = arith.constant 1 : index
    %c1_97 = arith.constant 1 : index
    %c0_98 = arith.constant 0 : index
    %79 = vector.load %arg1[%c0_94, %c0_95, %c1_96, %c1_97, %c0_98] : memref<1x4x8x8x4xbf16, #tpu.memory_space<vmem>>, vector<1x1x1x7x4xbf16>
    %80 = vector.shape_cast %79 : vector<1x1x1x7x4xbf16> to vector<7x4xbf16>
    %cst_99 = arith.constant dense<0.000000e+00> : vector<7x8xf32>
    %81 = tpu.matmul %80, %6, %cst_99 {dimension_numbers = #tpu.dot_dimension_numbers<[1], [0], [0], [1], [0, 0, 1, 1], [], []>} : vector<7x4xbf16>, vector<4x8xbf16>, vector<7x8xf32> -> vector<7x8xf32>
    %82 = arith.addf %78, %81 : vector<7x8xf32>
    %c0_100 = arith.constant 0 : index
    %c2_101 = arith.constant 2 : index
    %c1_102 = arith.constant 1 : index
    %c0_103 = arith.constant 0 : index
    %c0_104 = arith.constant 0 : index
    %83 = vector.load %arg1[%c0_100, %c2_101, %c1_102, %c0_103, %c0_104] : memref<1x4x8x8x4xbf16, #tpu.memory_space<vmem>>, vector<1x1x1x7x4xbf16>
    %84 = vector.shape_cast %83 : vector<1x1x1x7x4xbf16> to vector<7x4xbf16>
    %cst_105 = arith.constant dense<0.000000e+00> : vector<7x8xf32>
    %85 = tpu.matmul %84, %8, %cst_105 {dimension_numbers = #tpu.dot_dimension_numbers<[1], [0], [0], [1], [0, 0, 1, 1], [], []>} : vector<7x4xbf16>, vector<4x8xbf16>, vector<7x8xf32> -> vector<7x8xf32>
    %86 = arith.addf %82, %85 : vector<7x8xf32>
    %c0_106 = arith.constant 0 : index
    %c3_107 = arith.constant 3 : index
    %c1_108 = arith.constant 1 : index
    %c0_109 = arith.constant 0 : index
    %c0_110 = arith.constant 0 : index
    %87 = vector.load %arg1[%c0_106, %c3_107, %c1_108, %c0_109, %c0_110] : memref<1x4x8x8x4xbf16, #tpu.memory_space<vmem>>, vector<1x1x1x7x4xbf16>
    %88 = vector.shape_cast %87 : vector<1x1x1x7x4xbf16> to vector<7x4xbf16>
    %cst_111 = arith.constant dense<0.000000e+00> : vector<7x8xf32>
    %89 = tpu.matmul %88, %10, %cst_111 {dimension_numbers = #tpu.dot_dimension_numbers<[1], [0], [0], [1], [0, 0, 1, 1], [], []>} : vector<7x4xbf16>, vector<4x8xbf16>, vector<7x8xf32> -> vector<7x8xf32>
    %90 = arith.addf %86, %89 : vector<7x8xf32>
    %c0_112 = arith.constant 0 : index
    %c2_113 = arith.constant 2 : index
    %c1_114 = arith.constant 1 : index
    %c1_115 = arith.constant 1 : index
    %c0_116 = arith.constant 0 : index
    %91 = vector.load %arg1[%c0_112, %c2_113, %c1_114, %c1_115, %c0_116] : memref<1x4x8x8x4xbf16, #tpu.memory_space<vmem>>, vector<1x1x1x7x4xbf16>
    %92 = vector.shape_cast %91 : vector<1x1x1x7x4xbf16> to vector<7x4xbf16>
    %cst_117 = arith.constant dense<0.000000e+00> : vector<7x8xf32>
    %93 = tpu.matmul %92, %12, %cst_117 {dimension_numbers = #tpu.dot_dimension_numbers<[1], [0], [0], [1], [0, 0, 1, 1], [], []>} : vector<7x4xbf16>, vector<4x8xbf16>, vector<7x8xf32> -> vector<7x8xf32>
    %94 = arith.addf %90, %93 : vector<7x8xf32>
    %c0_118 = arith.constant 0 : index
    %c0_119 = arith.constant 0 : index
    %c2_120 = arith.constant 2 : index
    %c0_121 = arith.constant 0 : index
    %c0_122 = arith.constant 0 : index
    %95 = vector.load %arg1[%c0_118, %c0_119, %c2_120, %c0_121, %c0_122] : memref<1x4x8x8x4xbf16, #tpu.memory_space<vmem>>, vector<1x1x1x7x4xbf16>
    %96 = vector.shape_cast %95 : vector<1x1x1x7x4xbf16> to vector<7x4xbf16>
    %cst_123 = arith.constant dense<0.000000e+00> : vector<7x8xf32>
    %97 = tpu.matmul %96, %14, %cst_123 {dimension_numbers = #tpu.dot_dimension_numbers<[1], [0], [0], [1], [0, 0, 1, 1], [], []>} : vector<7x4xbf16>, vector<4x8xbf16>, vector<7x8xf32> -> vector<7x8xf32>
    %98 = arith.addf %94, %97 : vector<7x8xf32>
    %c0_124 = arith.constant 0 : index
    %c1_125 = arith.constant 1 : index
    %c2_126 = arith.constant 2 : index
    %c0_127 = arith.constant 0 : index
    %c0_128 = arith.constant 0 : index
    %99 = vector.load %arg1[%c0_124, %c1_125, %c2_126, %c0_127, %c0_128] : memref<1x4x8x8x4xbf16, #tpu.memory_space<vmem>>, vector<1x1x1x7x4xbf16>
    %100 = vector.shape_cast %99 : vector<1x1x1x7x4xbf16> to vector<7x4xbf16>
    %cst_129 = arith.constant dense<0.000000e+00> : vector<7x8xf32>
    %101 = tpu.matmul %100, %16, %cst_129 {dimension_numbers = #tpu.dot_dimension_numbers<[1], [0], [0], [1], [0, 0, 1, 1], [], []>} : vector<7x4xbf16>, vector<4x8xbf16>, vector<7x8xf32> -> vector<7x8xf32>
    %102 = arith.addf %98, %101 : vector<7x8xf32>
    %c0_130 = arith.constant 0 : index
    %c0_131 = arith.constant 0 : index
    %c2_132 = arith.constant 2 : index
    %c1_133 = arith.constant 1 : index
    %c0_134 = arith.constant 0 : index
    %103 = vector.load %arg1[%c0_130, %c0_131, %c2_132, %c1_133, %c0_134] : memref<1x4x8x8x4xbf16, #tpu.memory_space<vmem>>, vector<1x1x1x7x4xbf16>
    %104 = vector.shape_cast %103 : vector<1x1x1x7x4xbf16> to vector<7x4xbf16>
    %cst_135 = arith.constant dense<0.000000e+00> : vector<7x8xf32>
    %105 = tpu.matmul %104, %18, %cst_135 {dimension_numbers = #tpu.dot_dimension_numbers<[1], [0], [0], [1], [0, 0, 1, 1], [], []>} : vector<7x4xbf16>, vector<4x8xbf16>, vector<7x8xf32> -> vector<7x8xf32>
    %106 = arith.addf %102, %105 : vector<7x8xf32>
    %107 = vector.broadcast %0 : vector<1x8xf32> to vector<7x8xf32>
    %108 = arith.addf %106, %107 : vector<7x8xf32>
    %cst_136 = arith.constant 0.000000e+00 : f32
    %109 = vector.broadcast %cst_136 : f32 to vector<7x8xf32>
    %110 = arith.cmpf ogt, %108, %109 : vector<7x8xf32>
    %cst_137 = arith.constant 0.000000e+00 : f32
    %111 = vector.broadcast %cst_137 : f32 to vector<7x8xf32>
    %112 = arith.minimumf %108, %111 : vector<7x8xf32>
    %113 = math.exp %112 : vector<7x8xf32>
    %cst_138 = arith.constant 1.000000e+00 : f32
    %114 = vector.broadcast %cst_138 : f32 to vector<7x8xf32>
    %115 = arith.subf %113, %114 : vector<7x8xf32>
    %116 = arith.select %110, %108, %115 : vector<7x8xi1>, vector<7x8xf32>
    %117 = arith.truncf %116 : vector<7x8xf32> to vector<7x8xbf16>
    %c0_139 = arith.constant 0 : index
    %c1_140 = arith.constant 1 : index
    %c0_141 = arith.constant 0 : index
    %c0_142 = arith.constant 0 : index
    %118 = vector.load %arg4[%c0_139, %c1_140, %c0_141, %c0_142] : memref<1x7x7x8xbf16, #tpu.memory_space<vmem>>, vector<1x1x7x8xbf16>
    %119 = vector.shape_cast %118 : vector<1x1x7x8xbf16> to vector<7x8xbf16>
    %120 = vector.shape_cast %117 : vector<7x8xbf16> to vector<1x1x7x8xbf16>
    tpu.vector_store %arg4[%c0_139, %c1_140, %c0_141, %c0_142], %120 {strides = array<i32>} : memref<1x7x7x8xbf16, #tpu.memory_space<vmem>>, vector<1x1x7x8xbf16>,
    %cst_143 = arith.constant 0.000000e+00 : f32
    %121 = vector.broadcast %cst_143 : f32 to vector<7x8xf32>
    %c0_144 = arith.constant 0 : index
    %c0_145 = arith.constant 0 : index
    %c2_146 = arith.constant 2 : index
    %c0_147 = arith.constant 0 : index
    %c0_148 = arith.constant 0 : index
    %122 = vector.load %arg1[%c0_144, %c0_145, %c2_146, %c0_147, %c0_148] : memref<1x4x8x8x4xbf16, #tpu.memory_space<vmem>>, vector<1x1x1x7x4xbf16>
    %123 = vector.shape_cast %122 : vector<1x1x1x7x4xbf16> to vector<7x4xbf16>
    %cst_149 = arith.constant dense<0.000000e+00> : vector<7x8xf32>
    %124 = tpu.matmul %123, %2, %cst_149 {dimension_numbers = #tpu.dot_dimension_numbers<[1], [0], [0], [1], [0, 0, 1, 1], [], []>} : vector<7x4xbf16>, vector<4x8xbf16>, vector<7x8xf32> -> vector<7x8xf32>
    %125 = arith.addf %121, %124 : vector<7x8xf32>
    %c0_150 = arith.constant 0 : index
    %c1_151 = arith.constant 1 : index
    %c2_152 = arith.constant 2 : index
    %c0_153 = arith.constant 0 : index
    %c0_154 = arith.constant 0 : index
    %126 = vector.load %arg1[%c0_150, %c1_151, %c2_152, %c0_153, %c0_154] : memref<1x4x8x8x4xbf16, #tpu.memory_space<vmem>>, vector<1x1x1x7x4xbf16>
    %127 = vector.shape_cast %126 : vector<1x1x1x7x4xbf16> to vector<7x4xbf16>
    %cst_155 = arith.constant dense<0.000000e+00> : vector<7x8xf32>
    %128 = tpu.matmul %127, %4, %cst_155 {dimension_numbers = #tpu.dot_dimension_numbers<[1], [0], [0], [1], [0, 0, 1, 1], [], []>} : vector<7x4xbf16>, vector<4x8xbf16>, vector<7x8xf32> -> vector<7x8xf32>
    %129 = arith.addf %125, %128 : vector<7x8xf32>
    %c0_156 = arith.constant 0 : index
    %c0_157 = arith.constant 0 : index
    %c2_158 = arith.constant 2 : index
    %c1_159 = arith.constant 1 : index
    %c0_160 = arith.constant 0 : index
    %130 = vector.load %arg1[%c0_156, %c0_157, %c2_158, %c1_159, %c0_160] : memref<1x4x8x8x4xbf16, #tpu.memory_space<vmem>>, vector<1x1x1x7x4xbf16>
    %131 = vector.shape_cast %130 : vector<1x1x1x7x4xbf16> to vector<7x4xbf16>
    %cst_161 = arith.constant dense<0.000000e+00> : vector<7x8xf32>
    %132 = tpu.matmul %131, %6, %cst_161 {dimension_numbers = #tpu.dot_dimension_numbers<[1], [0], [0], [1], [0, 0, 1, 1], [], []>} : vector<7x4xbf16>, vector<4x8xbf16>, vector<7x8xf32> -> vector<7x8xf32>
    %133 = arith.addf %129, %132 : vector<7x8xf32>
    %c0_162 = arith.constant 0 : index
    %c2_163 = arith.constant 2 : index
    %c2_164 = arith.constant 2 : index
    %c0_165 = arith.constant 0 : index
    %c0_166 = arith.constant 0 : index
    %134 = vector.load %arg1[%c0_162, %c2_163, %c2_164, %c0_165, %c0_166] : memref<1x4x8x8x4xbf16, #tpu.memory_space<vmem>>, vector<1x1x1x7x4xbf16>
    %135 = vector.shape_cast %134 : vector<1x1x1x7x4xbf16> to vector<7x4xbf16>
    %cst_167 = arith.constant dense<0.000000e+00> : vector<7x8xf32>
    %136 = tpu.matmul %135, %8, %cst_167 {dimension_numbers = #tpu.dot_dimension_numbers<[1], [0], [0], [1], [0, 0, 1, 1], [], []>} : vector<7x4xbf16>, vector<4x8xbf16>, vector<7x8xf32> -> vector<7x8xf32>
    %137 = arith.addf %133, %136 : vector<7x8xf32>
    %c0_168 = arith.constant 0 : index
    %c3_169 = arith.constant 3 : index
    %c2_170 = arith.constant 2 : index
    %c0_171 = arith.constant 0 : index
    %c0_172 = arith.constant 0 : index
    %138 = vector.load %arg1[%c0_168, %c3_169, %c2_170, %c0_171, %c0_172] : memref<1x4x8x8x4xbf16, #tpu.memory_space<vmem>>, vector<1x1x1x7x4xbf16>
    %139 = vector.shape_cast %138 : vector<1x1x1x7x4xbf16> to vector<7x4xbf16>
    %cst_173 = arith.constant dense<0.000000e+00> : vector<7x8xf32>
    %140 = tpu.matmul %139, %10, %cst_173 {dimension_numbers = #tpu.dot_dimension_numbers<[1], [0], [0], [1], [0, 0, 1, 1], [], []>} : vector<7x4xbf16>, vector<4x8xbf16>, vector<7x8xf32> -> vector<7x8xf32>
    %141 = arith.addf %137, %140 : vector<7x8xf32>
    %c0_174 = arith.constant 0 : index
    %c2_175 = arith.constant 2 : index
    %c2_176 = arith.constant 2 : index
    %c1_177 = arith.constant 1 : index
    %c0_178 = arith.constant 0 : index
    %142 = vector.load %arg1[%c0_174, %c2_175, %c2_176, %c1_177, %c0_178] : memref<1x4x8x8x4xbf16, #tpu.memory_space<vmem>>, vector<1x1x1x7x4xbf16>
    %143 = vector.shape_cast %142 : vector<1x1x1x7x4xbf16> to vector<7x4xbf16>
    %cst_179 = arith.constant dense<0.000000e+00> : vector<7x8xf32>
    %144 = tpu.matmul %143, %12, %cst_179 {dimension_numbers = #tpu.dot_dimension_numbers<[1], [0], [0], [1], [0, 0, 1, 1], [], []>} : vector<7x4xbf16>, vector<4x8xbf16>, vector<7x8xf32> -> vector<7x8xf32>
    %145 = arith.addf %141, %144 : vector<7x8xf32>
    %c0_180 = arith.constant 0 : index
    %c0_181 = arith.constant 0 : index
    %c3_182 = arith.constant 3 : index
    %c0_183 = arith.constant 0 : index
    %c0_184 = arith.constant 0 : index
    %146 = vector.load %arg1[%c0_180, %c0_181, %c3_182, %c0_183, %c0_184] : memref<1x4x8x8x4xbf16, #tpu.memory_space<vmem>>, vector<1x1x1x7x4xbf16>
    %147 = vector.shape_cast %146 : vector<1x1x1x7x4xbf16> to vector<7x4xbf16>
    %cst_185 = arith.constant dense<0.000000e+00> : vector<7x8xf32>
    %148 = tpu.matmul %147, %14, %cst_185 {dimension_numbers = #tpu.dot_dimension_numbers<[1], [0], [0], [1], [0, 0, 1, 1], [], []>} : vector<7x4xbf16>, vector<4x8xbf16>, vector<7x8xf32> -> vector<7x8xf32>
    %149 = arith.addf %145, %148 : vector<7x8xf32>
    %c0_186 = arith.constant 0 : index
    %c1_187 = arith.constant 1 : index
    %c3_188 = arith.constant 3 : index
    %c0_189 = arith.constant 0 : index
    %c0_190 = arith.constant 0 : index
    %150 = vector.load %arg1[%c0_186, %c1_187, %c3_188, %c0_189, %c0_190] : memref<1x4x8x8x4xbf16, #tpu.memory_space<vmem>>, vector<1x1x1x7x4xbf16>
    %151 = vector.shape_cast %150 : vector<1x1x1x7x4xbf16> to vector<7x4xbf16>
    %cst_191 = arith.constant dense<0.000000e+00> : vector<7x8xf32>
    %152 = tpu.matmul %151, %16, %cst_191 {dimension_numbers = #tpu.dot_dimension_numbers<[1], [0], [0], [1], [0, 0, 1, 1], [], []>} : vector<7x4xbf16>, vector<4x8xbf16>, vector<7x8xf32> -> vector<7x8xf32>
    %153 = arith.addf %149, %152 : vector<7x8xf32>
    %c0_192 = arith.constant 0 : index
    %c0_193 = arith.constant 0 : index
    %c3_194 = arith.constant 3 : index
    %c1_195 = arith.constant 1 : index
    %c0_196 = arith.constant 0 : index
    %154 = vector.load %arg1[%c0_192, %c0_193, %c3_194, %c1_195, %c0_196] : memref<1x4x8x8x4xbf16, #tpu.memory_space<vmem>>, vector<1x1x1x7x4xbf16>
    %155 = vector.shape_cast %154 : vector<1x1x1x7x4xbf16> to vector<7x4xbf16>
    %cst_197 = arith.constant dense<0.000000e+00> : vector<7x8xf32>
    %156 = tpu.matmul %155, %18, %cst_197 {dimension_numbers = #tpu.dot_dimension_numbers<[1], [0], [0], [1], [0, 0, 1, 1], [], []>} : vector<7x4xbf16>, vector<4x8xbf16>, vector<7x8xf32> -> vector<7x8xf32>
    %157 = arith.addf %153, %156 : vector<7x8xf32>
    %158 = vector.broadcast %0 : vector<1x8xf32> to vector<7x8xf32>
    %159 = arith.addf %157, %158 : vector<7x8xf32>
    %cst_198 = arith.constant 0.000000e+00 : f32
    %160 = vector.broadcast %cst_198 : f32 to vector<7x8xf32>
    %161 = arith.cmpf ogt, %159, %160 : vector<7x8xf32>
    %cst_199 = arith.constant 0.000000e+00 : f32
    %162 = vector.broadcast %cst_199 : f32 to vector<7x8xf32>
    %163 = arith.minimumf %159, %162 : vector<7x8xf32>
    %164 = math.exp %163 : vector<7x8xf32>
    %cst_200 = arith.constant 1.000000e+00 : f32
    %165 = vector.broadcast %cst_200 : f32 to vector<7x8xf32>
    %166 = arith.subf %164, %165 : vector<7x8xf32>
    %167 = arith.select %161, %159, %166 : vector<7x8xi1>, vector<7x8xf32>
    %168 = arith.truncf %167 : vector<7x8xf32> to vector<7x8xbf16>
    %c0_201 = arith.constant 0 : index
    %c2_202 = arith.constant 2 : index
    %c0_203 = arith.constant 0 : index
    %c0_204 = arith.constant 0 : index
    %169 = vector.load %arg4[%c0_201, %c2_202, %c0_203, %c0_204] : memref<1x7x7x8xbf16, #tpu.memory_space<vmem>>, vector<1x1x7x8xbf16>
    %170 = vector.shape_cast %169 : vector<1x1x7x8xbf16> to vector<7x8xbf16>
    %171 = vector.shape_cast %168 : vector<7x8xbf16> to vector<1x1x7x8xbf16>
    tpu.vector_store %arg4[%c0_201, %c2_202, %c0_203, %c0_204], %171 {strides = array<i32>} : memref<1x7x7x8xbf16, #tpu.memory_space<vmem>>, vector<1x1x7x8xbf16>,
    %cst_205 = arith.constant 0.000000e+00 : f32
    %172 = vector.broadcast %cst_205 : f32 to vector<7x8xf32>
    %c0_206 = arith.constant 0 : index
    %c0_207 = arith.constant 0 : index
    %c3_208 = arith.constant 3 : index
    %c0_209 = arith.constant 0 : index
    %c0_210 = arith.constant 0 : index
    %173 = vector.load %arg1[%c0_206, %c0_207, %c3_208, %c0_209, %c0_210] : memref<1x4x8x8x4xbf16, #tpu.memory_space<vmem>>, vector<1x1x1x7x4xbf16>
    %174 = vector.shape_cast %173 : vector<1x1x1x7x4xbf16> to vector<7x4xbf16>
    %cst_211 = arith.constant dense<0.000000e+00> : vector<7x8xf32>
    %175 = tpu.matmul %174, %2, %cst_211 {dimension_numbers = #tpu.dot_dimension_numbers<[1], [0], [0], [1], [0, 0, 1, 1], [], []>} : vector<7x4xbf16>, vector<4x8xbf16>, vector<7x8xf32> -> vector<7x8xf32>
    %176 = arith.addf %172, %175 : vector<7x8xf32>
    %c0_212 = arith.constant 0 : index
    %c1_213 = arith.constant 1 : index
    %c3_214 = arith.constant 3 : index
    %c0_215 = arith.constant 0 : index
    %c0_216 = arith.constant 0 : index
    %177 = vector.load %arg1[%c0_212, %c1_213, %c3_214, %c0_215, %c0_216] : memref<1x4x8x8x4xbf16, #tpu.memory_space<vmem>>, vector<1x1x1x7x4xbf16>
    %178 = vector.shape_cast %177 : vector<1x1x1x7x4xbf16> to vector<7x4xbf16>
    %cst_217 = arith.constant dense<0.000000e+00> : vector<7x8xf32>
    %179 = tpu.matmul %178, %4, %cst_217 {dimension_numbers = #tpu.dot_dimension_numbers<[1], [0], [0], [1], [0, 0, 1, 1], [], []>} : vector<7x4xbf16>, vector<4x8xbf16>, vector<7x8xf32> -> vector<7x8xf32>
    %180 = arith.addf %176, %179 : vector<7x8xf32>
    %c0_218 = arith.constant 0 : index
    %c0_219 = arith.constant 0 : index
    %c3_220 = arith.constant 3 : index
    %c1_221 = arith.constant 1 : index
    %c0_222 = arith.constant 0 : index
    %181 = vector.load %arg1[%c0_218, %c0_219, %c3_220, %c1_221, %c0_222] : memref<1x4x8x8x4xbf16, #tpu.memory_space<vmem>>, vector<1x1x1x7x4xbf16>
    %182 = vector.shape_cast %181 : vector<1x1x1x7x4xbf16> to vector<7x4xbf16>
    %cst_223 = arith.constant dense<0.000000e+00> : vector<7x8xf32>
    %183 = tpu.matmul %182, %6, %cst_223 {dimension_numbers = #tpu.dot_dimension_numbers<[1], [0], [0], [1], [0, 0, 1, 1], [], []>} : vector<7x4xbf16>, vector<4x8xbf16>, vector<7x8xf32> -> vector<7x8xf32>
    %184 = arith.addf %180, %183 : vector<7x8xf32>
    %c0_224 = arith.constant 0 : index
    %c2_225 = arith.constant 2 : index
    %c3_226 = arith.constant 3 : index
    %c0_227 = arith.constant 0 : index
    %c0_228 = arith.constant 0 : index
    %185 = vector.load %arg1[%c0_224, %c2_225, %c3_226, %c0_227, %c0_228] : memref<1x4x8x8x4xbf16, #tpu.memory_space<vmem>>, vector<1x1x1x7x4xbf16>
    %186 = vector.shape_cast %185 : vector<1x1x1x7x4xbf16> to vector<7x4xbf16>
    %cst_229 = arith.constant dense<0.000000e+00> : vector<7x8xf32>
    %187 = tpu.matmul %186, %8, %cst_229 {dimension_numbers = #tpu.dot_dimension_numbers<[1], [0], [0], [1], [0, 0, 1, 1], [], []>} : vector<7x4xbf16>, vector<4x8xbf16>, vector<7x8xf32> -> vector<7x8xf32>
    %188 = arith.addf %184, %187 : vector<7x8xf32>
    %c0_230 = arith.constant 0 : index
    %c3_231 = arith.constant 3 : index
    %c3_232 = arith.constant 3 : index
    %c0_233 = arith.constant 0 : index
    %c0_234 = arith.constant 0 : index
    %189 = vector.load %arg1[%c0_230, %c3_231, %c3_232, %c0_233, %c0_234] : memref<1x4x8x8x4xbf16, #tpu.memory_space<vmem>>, vector<1x1x1x7x4xbf16>
    %190 = vector.shape_cast %189 : vector<1x1x1x7x4xbf16> to vector<7x4xbf16>
    %cst_235 = arith.constant dense<0.000000e+00> : vector<7x8xf32>
    %191 = tpu.matmul %190, %10, %cst_235 {dimension_numbers = #tpu.dot_dimension_numbers<[1], [0], [0], [1], [0, 0, 1, 1], [], []>} : vector<7x4xbf16>, vector<4x8xbf16>, vector<7x8xf32> -> vector<7x8xf32>
    %192 = arith.addf %188, %191 : vector<7x8xf32>
    %c0_236 = arith.constant 0 : index
    %c2_237 = arith.constant 2 : index
    %c3_238 = arith.constant 3 : index
    %c1_239 = arith.constant 1 : index
    %c0_240 = arith.constant 0 : index
    %193 = vector.load %arg1[%c0_236, %c2_237, %c3_238, %c1_239, %c0_240] : memref<1x4x8x8x4xbf16, #tpu.memory_space<vmem>>, vector<1x1x1x7x4xbf16>
    %194 = vector.shape_cast %193 : vector<1x1x1x7x4xbf16> to vector<7x4xbf16>
    %cst_241 = arith.constant dense<0.000000e+00> : vector<7x8xf32>
    %195 = tpu.matmul %194, %12, %cst_241 {dimension_numbers = #tpu.dot_dimension_numbers<[1], [0], [0], [1], [0, 0, 1, 1], [], []>} : vector<7x4xbf16>, vector<4x8xbf16>, vector<7x8xf32> -> vector<7x8xf32>
    %196 = arith.addf %192, %195 : vector<7x8xf32>
    %c0_242 = arith.constant 0 : index
    %c0_243 = arith.constant 0 : index
    %c4_244 = arith.constant 4 : index
    %c0_245 = arith.constant 0 : index
    %c0_246 = arith.constant 0 : index
    %197 = vector.load %arg1[%c0_242, %c0_243, %c4_244, %c0_245, %c0_246] : memref<1x4x8x8x4xbf16, #tpu.memory_space<vmem>>, vector<1x1x1x7x4xbf16>
    %198 = vector.shape_cast %197 : vector<1x1x1x7x4xbf16> to vector<7x4xbf16>
    %cst_247 = arith.constant dense<0.000000e+00> : vector<7x8xf32>
    %199 = tpu.matmul %198, %14, %cst_247 {dimension_numbers = #tpu.dot_dimension_numbers<[1], [0], [0], [1], [0, 0, 1, 1], [], []>} : vector<7x4xbf16>, vector<4x8xbf16>, vector<7x8xf32> -> vector<7x8xf32>
    %200 = arith.addf %196, %199 : vector<7x8xf32>
    %c0_248 = arith.constant 0 : index
    %c1_249 = arith.constant 1 : index
    %c4_250 = arith.constant 4 : index
    %c0_251 = arith.constant 0 : index
    %c0_252 = arith.constant 0 : index
    %201 = vector.load %arg1[%c0_248, %c1_249, %c4_250, %c0_251, %c0_252] : memref<1x4x8x8x4xbf16, #tpu.memory_space<vmem>>, vector<1x1x1x7x4xbf16>
    %202 = vector.shape_cast %201 : vector<1x1x1x7x4xbf16> to vector<7x4xbf16>
    %cst_253 = arith.constant dense<0.000000e+00> : vector<7x8xf32>
    %203 = tpu.matmul %202, %16, %cst_253 {dimension_numbers = #tpu.dot_dimension_numbers<[1], [0], [0], [1], [0, 0, 1, 1], [], []>} : vector<7x4xbf16>, vector<4x8xbf16>, vector<7x8xf32> -> vector<7x8xf32>
    %204 = arith.addf %200, %203 : vector<7x8xf32>
    %c0_254 = arith.constant 0 : index
    %c0_255 = arith.constant 0 : index
    %c4_256 = arith.constant 4 : index
    %c1_257 = arith.constant 1 : index
    %c0_258 = arith.constant 0 : index
    %205 = vector.load %arg1[%c0_254, %c0_255, %c4_256, %c1_257, %c0_258] : memref<1x4x8x8x4xbf16, #tpu.memory_space<vmem>>, vector<1x1x1x7x4xbf16>
    %206 = vector.shape_cast %205 : vector<1x1x1x7x4xbf16> to vector<7x4xbf16>
    %cst_259 = arith.constant dense<0.000000e+00> : vector<7x8xf32>
    %207 = tpu.matmul %206, %18, %cst_259 {dimension_numbers = #tpu.dot_dimension_numbers<[1], [0], [0], [1], [0, 0, 1, 1], [], []>} : vector<7x4xbf16>, vector<4x8xbf16>, vector<7x8xf32> -> vector<7x8xf32>
    %208 = arith.addf %204, %207 : vector<7x8xf32>
    %209 = vector.broadcast %0 : vector<1x8xf32> to vector<7x8xf32>
    %210 = arith.addf %208, %209 : vector<7x8xf32>
    %cst_260 = arith.constant 0.000000e+00 : f32
    %211 = vector.broadcast %cst_260 : f32 to vector<7x8xf32>
    %212 = arith.cmpf ogt, %210, %211 : vector<7x8xf32>
    %cst_261 = arith.constant 0.000000e+00 : f32
    %213 = vector.broadcast %cst_261 : f32 to vector<7x8xf32>
    %214 = arith.minimumf %210, %213 : vector<7x8xf32>
    %215 = math.exp %214 : vector<7x8xf32>
    %cst_262 = arith.constant 1.000000e+00 : f32
    %216 = vector.broadcast %cst_262 : f32 to vector<7x8xf32>
    %217 = arith.subf %215, %216 : vector<7x8xf32>
    %218 = arith.select %212, %210, %217 : vector<7x8xi1>, vector<7x8xf32>
    %219 = arith.truncf %218 : vector<7x8xf32> to vector<7x8xbf16>
    %c0_263 = arith.constant 0 : index
    %c3_264 = arith.constant 3 : index
    %c0_265 = arith.constant 0 : index
    %c0_266 = arith.constant 0 : index
    %220 = vector.load %arg4[%c0_263, %c3_264, %c0_265, %c0_266] : memref<1x7x7x8xbf16, #tpu.memory_space<vmem>>, vector<1x1x7x8xbf16>
    %221 = vector.shape_cast %220 : vector<1x1x7x8xbf16> to vector<7x8xbf16>
    %222 = vector.shape_cast %219 : vector<7x8xbf16> to vector<1x1x7x8xbf16>
    tpu.vector_store %arg4[%c0_263, %c3_264, %c0_265, %c0_266], %222 {strides = array<i32>} : memref<1x7x7x8xbf16, #tpu.memory_space<vmem>>, vector<1x1x7x8xbf16>,
    %cst_267 = arith.constant 0.000000e+00 : f32
    %223 = vector.broadcast %cst_267 : f32 to vector<7x8xf32>
    %c0_268 = arith.constant 0 : index
    %c0_269 = arith.constant 0 : index
    %c4_270 = arith.constant 4 : index
    %c0_271 = arith.constant 0 : index
    %c0_272 = arith.constant 0 : index
    %224 = vector.load %arg1[%c0_268, %c0_269, %c4_270, %c0_271, %c0_272] : memref<1x4x8x8x4xbf16, #tpu.memory_space<vmem>>, vector<1x1x1x7x4xbf16>
    %225 = vector.shape_cast %224 : vector<1x1x1x7x4xbf16> to vector<7x4xbf16>
    %cst_273 = arith.constant dense<0.000000e+00> : vector<7x8xf32>
    %226 = tpu.matmul %225, %2, %cst_273 {dimension_numbers = #tpu.dot_dimension_numbers<[1], [0], [0], [1], [0, 0, 1, 1], [], []>} : vector<7x4xbf16>, vector<4x8xbf16>, vector<7x8xf32> -> vector<7x8xf32>
    %227 = arith.addf %223, %226 : vector<7x8xf32>
    %c0_274 = arith.constant 0 : index
    %c1_275 = arith.constant 1 : index
    %c4_276 = arith.constant 4 : index
    %c0_277 = arith.constant 0 : index
    %c0_278 = arith.constant 0 : index
    %228 = vector.load %arg1[%c0_274, %c1_275, %c4_276, %c0_277, %c0_278] : memref<1x4x8x8x4xbf16, #tpu.memory_space<vmem>>, vector<1x1x1x7x4xbf16>
    %229 = vector.shape_cast %228 : vector<1x1x1x7x4xbf16> to vector<7x4xbf16>
    %cst_279 = arith.constant dense<0.000000e+00> : vector<7x8xf32>
    %230 = tpu.matmul %229, %4, %cst_279 {dimension_numbers = #tpu.dot_dimension_numbers<[1], [0], [0], [1], [0, 0, 1, 1], [], []>} : vector<7x4xbf16>, vector<4x8xbf16>, vector<7x8xf32> -> vector<7x8xf32>
    %231 = arith.addf %227, %230 : vector<7x8xf32>
    %c0_280 = arith.constant 0 : index
    %c0_281 = arith.constant 0 : index
    %c4_282 = arith.constant 4 : index
    %c1_283 = arith.constant 1 : index
    %c0_284 = arith.constant 0 : index
    %232 = vector.load %arg1[%c0_280, %c0_281, %c4_282, %c1_283, %c0_284] : memref<1x4x8x8x4xbf16, #tpu.memory_space<vmem>>, vector<1x1x1x7x4xbf16>
    %233 = vector.shape_cast %232 : vector<1x1x1x7x4xbf16> to vector<7x4xbf16>
    %cst_285 = arith.constant dense<0.000000e+00> : vector<7x8xf32>
    %234 = tpu.matmul %233, %6, %cst_285 {dimension_numbers = #tpu.dot_dimension_numbers<[1], [0], [0], [1], [0, 0, 1, 1], [], []>} : vector<7x4xbf16>, vector<4x8xbf16>, vector<7x8xf32> -> vector<7x8xf32>
    %235 = arith.addf %231, %234 : vector<7x8xf32>
    %c0_286 = arith.constant 0 : index
    %c2_287 = arith.constant 2 : index
    %c4_288 = arith.constant 4 : index
    %c0_289 = arith.constant 0 : index
    %c0_290 = arith.constant 0 : index
    %236 = vector.load %arg1[%c0_286, %c2_287, %c4_288, %c0_289, %c0_290] : memref<1x4x8x8x4xbf16, #tpu.memory_space<vmem>>, vector<1x1x1x7x4xbf16>
    %237 = vector.shape_cast %236 : vector<1x1x1x7x4xbf16> to vector<7x4xbf16>
    %cst_291 = arith.constant dense<0.000000e+00> : vector<7x8xf32>
    %238 = tpu.matmul %237, %8, %cst_291 {dimension_numbers = #tpu.dot_dimension_numbers<[1], [0], [0], [1], [0, 0, 1, 1], [], []>} : vector<7x4xbf16>, vector<4x8xbf16>, vector<7x8xf32> -> vector<7x8xf32>
    %239 = arith.addf %235, %238 : vector<7x8xf32>
    %c0_292 = arith.constant 0 : index
    %c3_293 = arith.constant 3 : index
    %c4_294 = arith.constant 4 : index
    %c0_295 = arith.constant 0 : index
    %c0_296 = arith.constant 0 : index
    %240 = vector.load %arg1[%c0_292, %c3_293, %c4_294, %c0_295, %c0_296] : memref<1x4x8x8x4xbf16, #tpu.memory_space<vmem>>, vector<1x1x1x7x4xbf16>
    %241 = vector.shape_cast %240 : vector<1x1x1x7x4xbf16> to vector<7x4xbf16>
    %cst_297 = arith.constant dense<0.000000e+00> : vector<7x8xf32>
    %242 = tpu.matmul %241, %10, %cst_297 {dimension_numbers = #tpu.dot_dimension_numbers<[1], [0], [0], [1], [0, 0, 1, 1], [], []>} : vector<7x4xbf16>, vector<4x8xbf16>, vector<7x8xf32> -> vector<7x8xf32>
    %243 = arith.addf %239, %242 : vector<7x8xf32>
    %c0_298 = arith.constant 0 : index
    %c2_299 = arith.constant 2 : index
    %c4_300 = arith.constant 4 : index
    %c1_301 = arith.constant 1 : index
    %c0_302 = arith.constant 0 : index
    %244 = vector.load %arg1[%c0_298, %c2_299, %c4_300, %c1_301, %c0_302] : memref<1x4x8x8x4xbf16, #tpu.memory_space<vmem>>, vector<1x1x1x7x4xbf16>
    %245 = vector.shape_cast %244 : vector<1x1x1x7x4xbf16> to vector<7x4xbf16>
    %cst_303 = arith.constant dense<0.000000e+00> : vector<7x8xf32>
    %246 = tpu.matmul %245, %12, %cst_303 {dimension_numbers = #tpu.dot_dimension_numbers<[1], [0], [0], [1], [0, 0, 1, 1], [], []>} : vector<7x4xbf16>, vector<4x8xbf16>, vector<7x8xf32> -> vector<7x8xf32>
    %247 = arith.addf %243, %246 : vector<7x8xf32>
    %c0_304 = arith.constant 0 : index
    %c0_305 = arith.constant 0 : index
    %c5_306 = arith.constant 5 : index
    %c0_307 = arith.constant 0 : index
    %c0_308 = arith.constant 0 : index
    %248 = vector.load %arg1[%c0_304, %c0_305, %c5_306, %c0_307, %c0_308] : memref<1x4x8x8x4xbf16, #tpu.memory_space<vmem>>, vector<1x1x1x7x4xbf16>
    %249 = vector.shape_cast %248 : vector<1x1x1x7x4xbf16> to vector<7x4xbf16>
    %cst_309 = arith.constant dense<0.000000e+00> : vector<7x8xf32>
    %250 = tpu.matmul %249, %14, %cst_309 {dimension_numbers = #tpu.dot_dimension_numbers<[1], [0], [0], [1], [0, 0, 1, 1], [], []>} : vector<7x4xbf16>, vector<4x8xbf16>, vector<7x8xf32> -> vector<7x8xf32>
    %251 = arith.addf %247, %250 : vector<7x8xf32>
    %c0_310 = arith.constant 0 : index
    %c1_311 = arith.constant 1 : index
    %c5_312 = arith.constant 5 : index
    %c0_313 = arith.constant 0 : index
    %c0_314 = arith.constant 0 : index
    %252 = vector.load %arg1[%c0_310, %c1_311, %c5_312, %c0_313, %c0_314] : memref<1x4x8x8x4xbf16, #tpu.memory_space<vmem>>, vector<1x1x1x7x4xbf16>
    %253 = vector.shape_cast %252 : vector<1x1x1x7x4xbf16> to vector<7x4xbf16>
    %cst_315 = arith.constant dense<0.000000e+00> : vector<7x8xf32>
    %254 = tpu.matmul %253, %16, %cst_315 {dimension_numbers = #tpu.dot_dimension_numbers<[1], [0], [0], [1], [0, 0, 1, 1], [], []>} : vector<7x4xbf16>, vector<4x8xbf16>, vector<7x8xf32> -> vector<7x8xf32>
    %255 = arith.addf %251, %254 : vector<7x8xf32>
    %c0_316 = arith.constant 0 : index
    %c0_317 = arith.constant 0 : index
    %c5_318 = arith.constant 5 : index
    %c1_319 = arith.constant 1 : index
    %c0_320 = arith.constant 0 : index
    %256 = vector.load %arg1[%c0_316, %c0_317, %c5_318, %c1_319, %c0_320] : memref<1x4x8x8x4xbf16, #tpu.memory_space<vmem>>, vector<1x1x1x7x4xbf16>
    %257 = vector.shape_cast %256 : vector<1x1x1x7x4xbf16> to vector<7x4xbf16>
    %cst_321 = arith.constant dense<0.000000e+00> : vector<7x8xf32>
    %258 = tpu.matmul %257, %18, %cst_321 {dimension_numbers = #tpu.dot_dimension_numbers<[1], [0], [0], [1], [0, 0, 1, 1], [], []>} : vector<7x4xbf16>, vector<4x8xbf16>, vector<7x8xf32> -> vector<7x8xf32>
    %259 = arith.addf %255, %258 : vector<7x8xf32>
    %260 = vector.broadcast %0 : vector<1x8xf32> to vector<7x8xf32>
    %261 = arith.addf %259, %260 : vector<7x8xf32>
    %cst_322 = arith.constant 0.000000e+00 : f32
    %262 = vector.broadcast %cst_322 : f32 to vector<7x8xf32>
    %263 = arith.cmpf ogt, %261, %262 : vector<7x8xf32>
    %cst_323 = arith.constant 0.000000e+00 : f32
    %264 = vector.broadcast %cst_323 : f32 to vector<7x8xf32>
    %265 = arith.minimumf %261, %264 : vector<7x8xf32>
    %266 = math.exp %265 : vector<7x8xf32>
    %cst_324 = arith.constant 1.000000e+00 : f32
    %267 = vector.broadcast %cst_324 : f32 to vector<7x8xf32>
    %268 = arith.subf %266, %267 : vector<7x8xf32>
    %269 = arith.select %263, %261, %268 : vector<7x8xi1>, vector<7x8xf32>
    %270 = arith.truncf %269 : vector<7x8xf32> to vector<7x8xbf16>
    %c0_325 = arith.constant 0 : index
    %c4_326 = arith.constant 4 : index
    %c0_327 = arith.constant 0 : index
    %c0_328 = arith.constant 0 : index
    %271 = vector.load %arg4[%c0_325, %c4_326, %c0_327, %c0_328] : memref<1x7x7x8xbf16, #tpu.memory_space<vmem>>, vector<1x1x7x8xbf16>
    %272 = vector.shape_cast %271 : vector<1x1x7x8xbf16> to vector<7x8xbf16>
    %273 = vector.shape_cast %270 : vector<7x8xbf16> to vector<1x1x7x8xbf16>
    tpu.vector_store %arg4[%c0_325, %c4_326, %c0_327, %c0_328], %273 {strides = array<i32>} : memref<1x7x7x8xbf16, #tpu.memory_space<vmem>>, vector<1x1x7x8xbf16>,
    %cst_329 = arith.constant 0.000000e+00 : f32
    %274 = vector.broadcast %cst_329 : f32 to vector<7x8xf32>
    %c0_330 = arith.constant 0 : index
    %c0_331 = arith.constant 0 : index
    %c5_332 = arith.constant 5 : index
    %c0_333 = arith.constant 0 : index
    %c0_334 = arith.constant 0 : index
    %275 = vector.load %arg1[%c0_330, %c0_331, %c5_332, %c0_333, %c0_334] : memref<1x4x8x8x4xbf16, #tpu.memory_space<vmem>>, vector<1x1x1x7x4xbf16>
    %276 = vector.shape_cast %275 : vector<1x1x1x7x4xbf16> to vector<7x4xbf16>
    %cst_335 = arith.constant dense<0.000000e+00> : vector<7x8xf32>
    %277 = tpu.matmul %276, %2, %cst_335 {dimension_numbers = #tpu.dot_dimension_numbers<[1], [0], [0], [1], [0, 0, 1, 1], [], []>} : vector<7x4xbf16>, vector<4x8xbf16>, vector<7x8xf32> -> vector<7x8xf32>
    %278 = arith.addf %274, %277 : vector<7x8xf32>
    %c0_336 = arith.constant 0 : index
    %c1_337 = arith.constant 1 : index
    %c5_338 = arith.constant 5 : index
    %c0_339 = arith.constant 0 : index
    %c0_340 = arith.constant 0 : index
    %279 = vector.load %arg1[%c0_336, %c1_337, %c5_338, %c0_339, %c0_340] : memref<1x4x8x8x4xbf16, #tpu.memory_space<vmem>>, vector<1x1x1x7x4xbf16>
    %280 = vector.shape_cast %279 : vector<1x1x1x7x4xbf16> to vector<7x4xbf16>
    %cst_341 = arith.constant dense<0.000000e+00> : vector<7x8xf32>
    %281 = tpu.matmul %280, %4, %cst_341 {dimension_numbers = #tpu.dot_dimension_numbers<[1], [0], [0], [1], [0, 0, 1, 1], [], []>} : vector<7x4xbf16>, vector<4x8xbf16>, vector<7x8xf32> -> vector<7x8xf32>
    %282 = arith.addf %278, %281 : vector<7x8xf32>
    %c0_342 = arith.constant 0 : index
    %c0_343 = arith.constant 0 : index
    %c5_344 = arith.constant 5 : index
    %c1_345 = arith.constant 1 : index
    %c0_346 = arith.constant 0 : index
    %283 = vector.load %arg1[%c0_342, %c0_343, %c5_344, %c1_345, %c0_346] : memref<1x4x8x8x4xbf16, #tpu.memory_space<vmem>>, vector<1x1x1x7x4xbf16>
    %284 = vector.shape_cast %283 : vector<1x1x1x7x4xbf16> to vector<7x4xbf16>
    %cst_347 = arith.constant dense<0.000000e+00> : vector<7x8xf32>
    %285 = tpu.matmul %284, %6, %cst_347 {dimension_numbers = #tpu.dot_dimension_numbers<[1], [0], [0], [1], [0, 0, 1, 1], [], []>} : vector<7x4xbf16>, vector<4x8xbf16>, vector<7x8xf32> -> vector<7x8xf32>
    %286 = arith.addf %282, %285 : vector<7x8xf32>
    %c0_348 = arith.constant 0 : index
    %c2_349 = arith.constant 2 : index
    %c5_350 = arith.constant 5 : index
    %c0_351 = arith.constant 0 : index
    %c0_352 = arith.constant 0 : index
    %287 = vector.load %arg1[%c0_348, %c2_349, %c5_350, %c0_351, %c0_352] : memref<1x4x8x8x4xbf16, #tpu.memory_space<vmem>>, vector<1x1x1x7x4xbf16>
    %288 = vector.shape_cast %287 : vector<1x1x1x7x4xbf16> to vector<7x4xbf16>
    %cst_353 = arith.constant dense<0.000000e+00> : vector<7x8xf32>
    %289 = tpu.matmul %288, %8, %cst_353 {dimension_numbers = #tpu.dot_dimension_numbers<[1], [0], [0], [1], [0, 0, 1, 1], [], []>} : vector<7x4xbf16>, vector<4x8xbf16>, vector<7x8xf32> -> vector<7x8xf32>
    %290 = arith.addf %286, %289 : vector<7x8xf32>
    %c0_354 = arith.constant 0 : index
    %c3_355 = arith.constant 3 : index
    %c5_356 = arith.constant 5 : index
    %c0_357 = arith.constant 0 : index
    %c0_358 = arith.constant 0 : index
    %291 = vector.load %arg1[%c0_354, %c3_355, %c5_356, %c0_357, %c0_358] : memref<1x4x8x8x4xbf16, #tpu.memory_space<vmem>>, vector<1x1x1x7x4xbf16>
    %292 = vector.shape_cast %291 : vector<1x1x1x7x4xbf16> to vector<7x4xbf16>
    %cst_359 = arith.constant dense<0.000000e+00> : vector<7x8xf32>
    %293 = tpu.matmul %292, %10, %cst_359 {dimension_numbers = #tpu.dot_dimension_numbers<[1], [0], [0], [1], [0, 0, 1, 1], [], []>} : vector<7x4xbf16>, vector<4x8xbf16>, vector<7x8xf32> -> vector<7x8xf32>
    %294 = arith.addf %290, %293 : vector<7x8xf32>
    %c0_360 = arith.constant 0 : index
    %c2_361 = arith.constant 2 : index
    %c5_362 = arith.constant 5 : index
    %c1_363 = arith.constant 1 : index
    %c0_364 = arith.constant 0 : index
    %295 = vector.load %arg1[%c0_360, %c2_361, %c5_362, %c1_363, %c0_364] : memref<1x4x8x8x4xbf16, #tpu.memory_space<vmem>>, vector<1x1x1x7x4xbf16>
    %296 = vector.shape_cast %295 : vector<1x1x1x7x4xbf16> to vector<7x4xbf16>
    %cst_365 = arith.constant dense<0.000000e+00> : vector<7x8xf32>
    %297 = tpu.matmul %296, %12, %cst_365 {dimension_numbers = #tpu.dot_dimension_numbers<[1], [0], [0], [1], [0, 0, 1, 1], [], []>} : vector<7x4xbf16>, vector<4x8xbf16>, vector<7x8xf32> -> vector<7x8xf32>
    %298 = arith.addf %294, %297 : vector<7x8xf32>
    %c0_366 = arith.constant 0 : index
    %c0_367 = arith.constant 0 : index
    %c6_368 = arith.constant 6 : index
    %c0_369 = arith.constant 0 : index
    %c0_370 = arith.constant 0 : index
    %299 = vector.load %arg1[%c0_366, %c0_367, %c6_368, %c0_369, %c0_370] : memref<1x4x8x8x4xbf16, #tpu.memory_space<vmem>>, vector<1x1x1x7x4xbf16>
    %300 = vector.shape_cast %299 : vector<1x1x1x7x4xbf16> to vector<7x4xbf16>
    %cst_371 = arith.constant dense<0.000000e+00> : vector<7x8xf32>
    %301 = tpu.matmul %300, %14, %cst_371 {dimension_numbers = #tpu.dot_dimension_numbers<[1], [0], [0], [1], [0, 0, 1, 1], [], []>} : vector<7x4xbf16>, vector<4x8xbf16>, vector<7x8xf32> -> vector<7x8xf32>
    %302 = arith.addf %298, %301 : vector<7x8xf32>
    %c0_372 = arith.constant 0 : index
    %c1_373 = arith.constant 1 : index
    %c6_374 = arith.constant 6 : index
    %c0_375 = arith.constant 0 : index
    %c0_376 = arith.constant 0 : index
    %303 = vector.load %arg1[%c0_372, %c1_373, %c6_374, %c0_375, %c0_376] : memref<1x4x8x8x4xbf16, #tpu.memory_space<vmem>>, vector<1x1x1x7x4xbf16>
    %304 = vector.shape_cast %303 : vector<1x1x1x7x4xbf16> to vector<7x4xbf16>
    %cst_377 = arith.constant dense<0.000000e+00> : vector<7x8xf32>
    %305 = tpu.matmul %304, %16, %cst_377 {dimension_numbers = #tpu.dot_dimension_numbers<[1], [0], [0], [1], [0, 0, 1, 1], [], []>} : vector<7x4xbf16>, vector<4x8xbf16>, vector<7x8xf32> -> vector<7x8xf32>
    %306 = arith.addf %302, %305 : vector<7x8xf32>
    %c0_378 = arith.constant 0 : index
    %c0_379 = arith.constant 0 : index
    %c6_380 = arith.constant 6 : index
    %c1_381 = arith.constant 1 : index
    %c0_382 = arith.constant 0 : index
    %307 = vector.load %arg1[%c0_378, %c0_379, %c6_380, %c1_381, %c0_382] : memref<1x4x8x8x4xbf16, #tpu.memory_space<vmem>>, vector<1x1x1x7x4xbf16>
    %308 = vector.shape_cast %307 : vector<1x1x1x7x4xbf16> to vector<7x4xbf16>
    %cst_383 = arith.constant dense<0.000000e+00> : vector<7x8xf32>
    %309 = tpu.matmul %308, %18, %cst_383 {dimension_numbers = #tpu.dot_dimension_numbers<[1], [0], [0], [1], [0, 0, 1, 1], [], []>} : vector<7x4xbf16>, vector<4x8xbf16>, vector<7x8xf32> -> vector<7x8xf32>
    %310 = arith.addf %306, %309 : vector<7x8xf32>
    %311 = vector.broadcast %0 : vector<1x8xf32> to vector<7x8xf32>
    %312 = arith.addf %310, %311 : vector<7x8xf32>
    %cst_384 = arith.constant 0.000000e+00 : f32
    %313 = vector.broadcast %cst_384 : f32 to vector<7x8xf32>
    %314 = arith.cmpf ogt, %312, %313 : vector<7x8xf32>
    %cst_385 = arith.constant 0.000000e+00 : f32
    %315 = vector.broadcast %cst_385 : f32 to vector<7x8xf32>
    %316 = arith.minimumf %312, %315 : vector<7x8xf32>
    %317 = math.exp %316 : vector<7x8xf32>
    %cst_386 = arith.constant 1.000000e+00 : f32
    %318 = vector.broadcast %cst_386 : f32 to vector<7x8xf32>
    %319 = arith.subf %317, %318 : vector<7x8xf32>
    %320 = arith.select %314, %312, %319 : vector<7x8xi1>, vector<7x8xf32>
    %321 = arith.truncf %320 : vector<7x8xf32> to vector<7x8xbf16>
    %c0_387 = arith.constant 0 : index
    %c5_388 = arith.constant 5 : index
    %c0_389 = arith.constant 0 : index
    %c0_390 = arith.constant 0 : index
    %322 = vector.load %arg4[%c0_387, %c5_388, %c0_389, %c0_390] : memref<1x7x7x8xbf16, #tpu.memory_space<vmem>>, vector<1x1x7x8xbf16>
    %323 = vector.shape_cast %322 : vector<1x1x7x8xbf16> to vector<7x8xbf16>
    %324 = vector.shape_cast %321 : vector<7x8xbf16> to vector<1x1x7x8xbf16>
    tpu.vector_store %arg4[%c0_387, %c5_388, %c0_389, %c0_390], %324 {strides = array<i32>} : memref<1x7x7x8xbf16, #tpu.memory_space<vmem>>, vector<1x1x7x8xbf16>,
    %cst_391 = arith.constant 0.000000e+00 : f32
    %325 = vector.broadcast %cst_391 : f32 to vector<7x8xf32>
    %c0_392 = arith.constant 0 : index
    %c0_393 = arith.constant 0 : index
    %c6_394 = arith.constant 6 : index
    %c0_395 = arith.constant 0 : index
    %c0_396 = arith.constant 0 : index
    %326 = vector.load %arg1[%c0_392, %c0_393, %c6_394, %c0_395, %c0_396] : memref<1x4x8x8x4xbf16, #tpu.memory_space<vmem>>, vector<1x1x1x7x4xbf16>
    %327 = vector.shape_cast %326 : vector<1x1x1x7x4xbf16> to vector<7x4xbf16>
    %cst_397 = arith.constant dense<0.000000e+00> : vector<7x8xf32>
    %328 = tpu.matmul %327, %2, %cst_397 {dimension_numbers = #tpu.dot_dimension_numbers<[1], [0], [0], [1], [0, 0, 1, 1], [], []>} : vector<7x4xbf16>, vector<4x8xbf16>, vector<7x8xf32> -> vector<7x8xf32>
    %329 = arith.addf %325, %328 : vector<7x8xf32>
    %c0_398 = arith.constant 0 : index
    %c1_399 = arith.constant 1 : index
    %c6_400 = arith.constant 6 : index
    %c0_401 = arith.constant 0 : index
    %c0_402 = arith.constant 0 : index
    %330 = vector.load %arg1[%c0_398, %c1_399, %c6_400, %c0_401, %c0_402] : memref<1x4x8x8x4xbf16, #tpu.memory_space<vmem>>, vector<1x1x1x7x4xbf16>
    %331 = vector.shape_cast %330 : vector<1x1x1x7x4xbf16> to vector<7x4xbf16>
    %cst_403 = arith.constant dense<0.000000e+00> : vector<7x8xf32>
    %332 = tpu.matmul %331, %4, %cst_403 {dimension_numbers = #tpu.dot_dimension_numbers<[1], [0], [0], [1], [0, 0, 1, 1], [], []>} : vector<7x4xbf16>, vector<4x8xbf16>, vector<7x8xf32> -> vector<7x8xf32>
    %333 = arith.addf %329, %332 : vector<7x8xf32>
    %c0_404 = arith.constant 0 : index
    %c0_405 = arith.constant 0 : index
    %c6_406 = arith.constant 6 : index
    %c1_407 = arith.constant 1 : index
    %c0_408 = arith.constant 0 : index
    %334 = vector.load %arg1[%c0_404, %c0_405, %c6_406, %c1_407, %c0_408] : memref<1x4x8x8x4xbf16, #tpu.memory_space<vmem>>, vector<1x1x1x7x4xbf16>
    %335 = vector.shape_cast %334 : vector<1x1x1x7x4xbf16> to vector<7x4xbf16>
    %cst_409 = arith.constant dense<0.000000e+00> : vector<7x8xf32>
    %336 = tpu.matmul %335, %6, %cst_409 {dimension_numbers = #tpu.dot_dimension_numbers<[1], [0], [0], [1], [0, 0, 1, 1], [], []>} : vector<7x4xbf16>, vector<4x8xbf16>, vector<7x8xf32> -> vector<7x8xf32>
    %337 = arith.addf %333, %336 : vector<7x8xf32>
    %c0_410 = arith.constant 0 : index
    %c2_411 = arith.constant 2 : index
    %c6_412 = arith.constant 6 : index
    %c0_413 = arith.constant 0 : index
    %c0_414 = arith.constant 0 : index
    %338 = vector.load %arg1[%c0_410, %c2_411, %c6_412, %c0_413, %c0_414] : memref<1x4x8x8x4xbf16, #tpu.memory_space<vmem>>, vector<1x1x1x7x4xbf16>
    %339 = vector.shape_cast %338 : vector<1x1x1x7x4xbf16> to vector<7x4xbf16>
    %cst_415 = arith.constant dense<0.000000e+00> : vector<7x8xf32>
    %340 = tpu.matmul %339, %8, %cst_415 {dimension_numbers = #tpu.dot_dimension_numbers<[1], [0], [0], [1], [0, 0, 1, 1], [], []>} : vector<7x4xbf16>, vector<4x8xbf16>, vector<7x8xf32> -> vector<7x8xf32>
    %341 = arith.addf %337, %340 : vector<7x8xf32>
    %c0_416 = arith.constant 0 : index
    %c3_417 = arith.constant 3 : index
    %c6_418 = arith.constant 6 : index
    %c0_419 = arith.constant 0 : index
    %c0_420 = arith.constant 0 : index
    %342 = vector.load %arg1[%c0_416, %c3_417, %c6_418, %c0_419, %c0_420] : memref<1x4x8x8x4xbf16, #tpu.memory_space<vmem>>, vector<1x1x1x7x4xbf16>
    %343 = vector.shape_cast %342 : vector<1x1x1x7x4xbf16> to vector<7x4xbf16>
    %cst_421 = arith.constant dense<0.000000e+00> : vector<7x8xf32>
    %344 = tpu.matmul %343, %10, %cst_421 {dimension_numbers = #tpu.dot_dimension_numbers<[1], [0], [0], [1], [0, 0, 1, 1], [], []>} : vector<7x4xbf16>, vector<4x8xbf16>, vector<7x8xf32> -> vector<7x8xf32>
    %345 = arith.addf %341, %344 : vector<7x8xf32>
    %c0_422 = arith.constant 0 : index
    %c2_423 = arith.constant 2 : index
    %c6_424 = arith.constant 6 : index
    %c1_425 = arith.constant 1 : index
    %c0_426 = arith.constant 0 : index
    %346 = vector.load %arg1[%c0_422, %c2_423, %c6_424, %c1_425, %c0_426] : memref<1x4x8x8x4xbf16, #tpu.memory_space<vmem>>, vector<1x1x1x7x4xbf16>
    %347 = vector.shape_cast %346 : vector<1x1x1x7x4xbf16> to vector<7x4xbf16>
    %cst_427 = arith.constant dense<0.000000e+00> : vector<7x8xf32>
    %348 = tpu.matmul %347, %12, %cst_427 {dimension_numbers = #tpu.dot_dimension_numbers<[1], [0], [0], [1], [0, 0, 1, 1], [], []>} : vector<7x4xbf16>, vector<4x8xbf16>, vector<7x8xf32> -> vector<7x8xf32>
    %349 = arith.addf %345, %348 : vector<7x8xf32>
    %c0_428 = arith.constant 0 : index
    %c0_429 = arith.constant 0 : index
    %c7_430 = arith.constant 7 : index
    %c0_431 = arith.constant 0 : index
    %c0_432 = arith.constant 0 : index
    %350 = vector.load %arg1[%c0_428, %c0_429, %c7_430, %c0_431, %c0_432] : memref<1x4x8x8x4xbf16, #tpu.memory_space<vmem>>, vector<1x1x1x7x4xbf16>
    %351 = vector.shape_cast %350 : vector<1x1x1x7x4xbf16> to vector<7x4xbf16>
    %cst_433 = arith.constant dense<0.000000e+00> : vector<7x8xf32>
    %352 = tpu.matmul %351, %14, %cst_433 {dimension_numbers = #tpu.dot_dimension_numbers<[1], [0], [0], [1], [0, 0, 1, 1], [], []>} : vector<7x4xbf16>, vector<4x8xbf16>, vector<7x8xf32> -> vector<7x8xf32>
    %353 = arith.addf %349, %352 : vector<7x8xf32>
    %c0_434 = arith.constant 0 : index
    %c1_435 = arith.constant 1 : index
    %c7_436 = arith.constant 7 : index
    %c0_437 = arith.constant 0 : index
    %c0_438 = arith.constant 0 : index
    %354 = vector.load %arg1[%c0_434, %c1_435, %c7_436, %c0_437, %c0_438] : memref<1x4x8x8x4xbf16, #tpu.memory_space<vmem>>, vector<1x1x1x7x4xbf16>
    %355 = vector.shape_cast %354 : vector<1x1x1x7x4xbf16> to vector<7x4xbf16>
    %cst_439 = arith.constant dense<0.000000e+00> : vector<7x8xf32>
    %356 = tpu.matmul %355, %16, %cst_439 {dimension_numbers = #tpu.dot_dimension_numbers<[1], [0], [0], [1], [0, 0, 1, 1], [], []>} : vector<7x4xbf16>, vector<4x8xbf16>, vector<7x8xf32> -> vector<7x8xf32>
    %357 = arith.addf %353, %356 : vector<7x8xf32>
    %c0_440 = arith.constant 0 : index
    %c0_441 = arith.constant 0 : index
    %c7_442 = arith.constant 7 : index
    %c1_443 = arith.constant 1 : index
    %c0_444 = arith.constant 0 : index
    %358 = vector.load %arg1[%c0_440, %c0_441, %c7_442, %c1_443, %c0_444] : memref<1x4x8x8x4xbf16, #tpu.memory_space<vmem>>, vector<1x1x1x7x4xbf16>
    %359 = vector.shape_cast %358 : vector<1x1x1x7x4xbf16> to vector<7x4xbf16>
    %cst_445 = arith.constant dense<0.000000e+00> : vector<7x8xf32>
    %360 = tpu.matmul %359, %18, %cst_445 {dimension_numbers = #tpu.dot_dimension_numbers<[1], [0], [0], [1], [0, 0, 1, 1], [], []>} : vector<7x4xbf16>, vector<4x8xbf16>, vector<7x8xf32> -> vector<7x8xf32>
    %361 = arith.addf %357, %360 : vector<7x8xf32>
    %362 = vector.broadcast %0 : vector<1x8xf32> to vector<7x8xf32>
    %363 = arith.addf %361, %362 : vector<7x8xf32>
    %cst_446 = arith.constant 0.000000e+00 : f32
    %364 = vector.broadcast %cst_446 : f32 to vector<7x8xf32>
    %365 = arith.cmpf ogt, %363, %364 : vector<7x8xf32>
    %cst_447 = arith.constant 0.000000e+00 : f32
    %366 = vector.broadcast %cst_447 : f32 to vector<7x8xf32>
    %367 = arith.minimumf %363, %366 : vector<7x8xf32>
    %368 = math.exp %367 : vector<7x8xf32>
    %cst_448 = arith.constant 1.000000e+00 : f32
    %369 = vector.broadcast %cst_448 : f32 to vector<7x8xf32>
    %370 = arith.subf %368, %369 : vector<7x8xf32>
    %371 = arith.select %365, %363, %370 : vector<7x8xi1>, vector<7x8xf32>
    %372 = arith.truncf %371 : vector<7x8xf32> to vector<7x8xbf16>
    %c0_449 = arith.constant 0 : index
    %c6_450 = arith.constant 6 : index
    %c0_451 = arith.constant 0 : index
    %c0_452 = arith.constant 0 : index
    %373 = vector.load %arg4[%c0_449, %c6_450, %c0_451, %c0_452] : memref<1x7x7x8xbf16, #tpu.memory_space<vmem>>, vector<1x1x7x8xbf16>
    %374 = vector.shape_cast %373 : vector<1x1x7x8xbf16> to vector<7x8xbf16>
    %375 = vector.shape_cast %372 : vector<7x8xbf16> to vector<1x1x7x8xbf16>
    tpu.vector_store %arg4[%c0_449, %c6_450, %c0_451, %c0_452], %375 {strides = array<i32>} : memref<1x7x7x8xbf16, #tpu.memory_space<vmem>>, vector<1x1x7x8xbf16>,
    return
  }
  func.func @transform_0(%arg0: i32) -> (i32, i32, i32, i32, i32) {
    %c0_i32 = arith.constant 0 : i32
    %c0_i32_0 = arith.constant 0 : i32
    %c0_i32_1 = arith.constant 0 : i32
    %c0_i32_2 = arith.constant 0 : i32
    %c0_i32_3 = arith.constant 0 : i32
    return %arg0, %c0_i32, %c0_i32_0, %c0_i32_1, %c0_i32_2 : i32, i32, i32, i32, i32
  }
  func.func @transform_1(%arg0: i32) -> (i32, i32, i32) {
    %c0_i32 = arith.constant 0 : i32
    %c0_i32_0 = arith.constant 0 : i32
    %c0_i32_1 = arith.constant 0 : i32
    %c0_i32_2 = arith.constant 0 : i32
    return %c0_i32, %c0_i32_0, %c0_i32_1 : i32, i32, i32
  }
  func.func @transform_2(%arg0: i32) -> (i32, i32) {
    %c0_i32 = arith.constant 0 : i32
    %c0_i32_0 = arith.constant 0 : i32
    %c0_i32_1 = arith.constant 0 : i32
    return %c0_i32, %c0_i32_0 : i32, i32
  }
  func.func @transform_3(%arg0: i32) -> (i32, i32, i32, i32) {
    %c0_i32 = arith.constant 0 : i32
    %c0_i32_0 = arith.constant 0 : i32
    %c0_i32_1 = arith.constant 0 : i32
    %c0_i32_2 = arith.constant 0 : i32
    return %arg0, %c0_i32, %c0_i32_0, %c0_i32_1 : i32, i32, i32, i32
  }
}

module attributes {stable_mosaic.version = 11 : i64} {
  func.func @_conv_elu_kernel(%arg0: i32, %arg1: memref<1x4x4x4x8xbf16, #tpu.memory_space<vmem>>, %arg2: memref<9x8x16xbf16, #tpu.memory_space<vmem>>, %arg3: memref<1x16xf32, #tpu.memory_space<vmem>>, %arg4: memref<1x3x3x16xbf16, #tpu.memory_space<vmem>>) attributes {dimension_semantics = [#tpu.dimension_semantics<parallel>], iteration_bounds = array<i64: 2>, scalar_prefetch = 0 : i64, scratch_operands = 0 : i64, tpu.core_type = #tpu.core_type<tc>, window_params = [{transform_indices = @transform_0, window_bounds = array<i64: 1, 4, 4, 4, 8>}, {pipeline_mode = #tpu.pipeline_mode<synchronous>, transform_indices = @transform_1, window_bounds = array<i64: 9, 8, 16>}, {pipeline_mode = #tpu.pipeline_mode<synchronous>, transform_indices = @transform_2, window_bounds = array<i64: 1, 16>}, {transform_indices = @transform_3, window_bounds = array<i64: 1, 3, 3, 16>}]} {
    %c0 = arith.constant 0 : index
    %c0_0 = arith.constant 0 : index
    %0 = vector.load %arg3[%c0, %c0_0] : memref<1x16xf32, #tpu.memory_space<vmem>>, vector<1x16xf32>
    %c0_1 = arith.constant 0 : index
    %c0_2 = arith.constant 0 : index
    %c0_3 = arith.constant 0 : index
    %1 = vector.load %arg2[%c0_1, %c0_2, %c0_3] : memref<9x8x16xbf16, #tpu.memory_space<vmem>>, vector<1x8x16xbf16>
    %2 = vector.shape_cast %1 : vector<1x8x16xbf16> to vector<8x16xbf16>
    %c1 = arith.constant 1 : index
    %c0_4 = arith.constant 0 : index
    %c0_5 = arith.constant 0 : index
    %3 = vector.load %arg2[%c1, %c0_4, %c0_5] : memref<9x8x16xbf16, #tpu.memory_space<vmem>>, vector<1x8x16xbf16>
    %4 = vector.shape_cast %3 : vector<1x8x16xbf16> to vector<8x16xbf16>
    %c2 = arith.constant 2 : index
    %c0_6 = arith.constant 0 : index
    %c0_7 = arith.constant 0 : index
    %5 = vector.load %arg2[%c2, %c0_6, %c0_7] : memref<9x8x16xbf16, #tpu.memory_space<vmem>>, vector<1x8x16xbf16>
    %6 = vector.shape_cast %5 : vector<1x8x16xbf16> to vector<8x16xbf16>
    %c3 = arith.constant 3 : index
    %c0_8 = arith.constant 0 : index
    %c0_9 = arith.constant 0 : index
    %7 = vector.load %arg2[%c3, %c0_8, %c0_9] : memref<9x8x16xbf16, #tpu.memory_space<vmem>>, vector<1x8x16xbf16>
    %8 = vector.shape_cast %7 : vector<1x8x16xbf16> to vector<8x16xbf16>
    %c4 = arith.constant 4 : index
    %c0_10 = arith.constant 0 : index
    %c0_11 = arith.constant 0 : index
    %9 = vector.load %arg2[%c4, %c0_10, %c0_11] : memref<9x8x16xbf16, #tpu.memory_space<vmem>>, vector<1x8x16xbf16>
    %10 = vector.shape_cast %9 : vector<1x8x16xbf16> to vector<8x16xbf16>
    %c5 = arith.constant 5 : index
    %c0_12 = arith.constant 0 : index
    %c0_13 = arith.constant 0 : index
    %11 = vector.load %arg2[%c5, %c0_12, %c0_13] : memref<9x8x16xbf16, #tpu.memory_space<vmem>>, vector<1x8x16xbf16>
    %12 = vector.shape_cast %11 : vector<1x8x16xbf16> to vector<8x16xbf16>
    %c6 = arith.constant 6 : index
    %c0_14 = arith.constant 0 : index
    %c0_15 = arith.constant 0 : index
    %13 = vector.load %arg2[%c6, %c0_14, %c0_15] : memref<9x8x16xbf16, #tpu.memory_space<vmem>>, vector<1x8x16xbf16>
    %14 = vector.shape_cast %13 : vector<1x8x16xbf16> to vector<8x16xbf16>
    %c7 = arith.constant 7 : index
    %c0_16 = arith.constant 0 : index
    %c0_17 = arith.constant 0 : index
    %15 = vector.load %arg2[%c7, %c0_16, %c0_17] : memref<9x8x16xbf16, #tpu.memory_space<vmem>>, vector<1x8x16xbf16>
    %16 = vector.shape_cast %15 : vector<1x8x16xbf16> to vector<8x16xbf16>
    %c8 = arith.constant 8 : index
    %c0_18 = arith.constant 0 : index
    %c0_19 = arith.constant 0 : index
    %17 = vector.load %arg2[%c8, %c0_18, %c0_19] : memref<9x8x16xbf16, #tpu.memory_space<vmem>>, vector<1x8x16xbf16>
    %18 = vector.shape_cast %17 : vector<1x8x16xbf16> to vector<8x16xbf16>
    %cst = arith.constant 0.000000e+00 : f32
    %19 = vector.broadcast %cst : f32 to vector<3x16xf32>
    %c0_20 = arith.constant 0 : index
    %c0_21 = arith.constant 0 : index
    %c0_22 = arith.constant 0 : index
    %c0_23 = arith.constant 0 : index
    %c0_24 = arith.constant 0 : index
    %20 = vector.load %arg1[%c0_20, %c0_21, %c0_22, %c0_23, %c0_24] : memref<1x4x4x4x8xbf16, #tpu.memory_space<vmem>>, vector<1x1x1x3x8xbf16>
    %21 = vector.shape_cast %20 : vector<1x1x1x3x8xbf16> to vector<3x8xbf16>
    %cst_25 = arith.constant dense<0.000000e+00> : vector<3x16xf32>
    %22 = tpu.matmul %21, %2, %cst_25 {dimension_numbers = #tpu.dot_dimension_numbers<[1], [0], [0], [1], [0, 0, 1, 1], [], []>} : vector<3x8xbf16>, vector<8x16xbf16>, vector<3x16xf32> -> vector<3x16xf32>
    %23 = arith.addf %19, %22 : vector<3x16xf32>
    %c0_26 = arith.constant 0 : index
    %c1_27 = arith.constant 1 : index
    %c0_28 = arith.constant 0 : index
    %c0_29 = arith.constant 0 : index
    %c0_30 = arith.constant 0 : index
    %24 = vector.load %arg1[%c0_26, %c1_27, %c0_28, %c0_29, %c0_30] : memref<1x4x4x4x8xbf16, #tpu.memory_space<vmem>>, vector<1x1x1x3x8xbf16>
    %25 = vector.shape_cast %24 : vector<1x1x1x3x8xbf16> to vector<3x8xbf16>
    %cst_31 = arith.constant dense<0.000000e+00> : vector<3x16xf32>
    %26 = tpu.matmul %25, %4, %cst_31 {dimension_numbers = #tpu.dot_dimension_numbers<[1], [0], [0], [1], [0, 0, 1, 1], [], []>} : vector<3x8xbf16>, vector<8x16xbf16>, vector<3x16xf32> -> vector<3x16xf32>
    %27 = arith.addf %23, %26 : vector<3x16xf32>
    %c0_32 = arith.constant 0 : index
    %c0_33 = arith.constant 0 : index
    %c0_34 = arith.constant 0 : index
    %c1_35 = arith.constant 1 : index
    %c0_36 = arith.constant 0 : index
    %28 = vector.load %arg1[%c0_32, %c0_33, %c0_34, %c1_35, %c0_36] : memref<1x4x4x4x8xbf16, #tpu.memory_space<vmem>>, vector<1x1x1x3x8xbf16>
    %29 = vector.shape_cast %28 : vector<1x1x1x3x8xbf16> to vector<3x8xbf16>
    %cst_37 = arith.constant dense<0.000000e+00> : vector<3x16xf32>
    %30 = tpu.matmul %29, %6, %cst_37 {dimension_numbers = #tpu.dot_dimension_numbers<[1], [0], [0], [1], [0, 0, 1, 1], [], []>} : vector<3x8xbf16>, vector<8x16xbf16>, vector<3x16xf32> -> vector<3x16xf32>
    %31 = arith.addf %27, %30 : vector<3x16xf32>
    %c0_38 = arith.constant 0 : index
    %c2_39 = arith.constant 2 : index
    %c0_40 = arith.constant 0 : index
    %c0_41 = arith.constant 0 : index
    %c0_42 = arith.constant 0 : index
    %32 = vector.load %arg1[%c0_38, %c2_39, %c0_40, %c0_41, %c0_42] : memref<1x4x4x4x8xbf16, #tpu.memory_space<vmem>>, vector<1x1x1x3x8xbf16>
    %33 = vector.shape_cast %32 : vector<1x1x1x3x8xbf16> to vector<3x8xbf16>
    %cst_43 = arith.constant dense<0.000000e+00> : vector<3x16xf32>
    %34 = tpu.matmul %33, %8, %cst_43 {dimension_numbers = #tpu.dot_dimension_numbers<[1], [0], [0], [1], [0, 0, 1, 1], [], []>} : vector<3x8xbf16>, vector<8x16xbf16>, vector<3x16xf32> -> vector<3x16xf32>
    %35 = arith.addf %31, %34 : vector<3x16xf32>
    %c0_44 = arith.constant 0 : index
    %c3_45 = arith.constant 3 : index
    %c0_46 = arith.constant 0 : index
    %c0_47 = arith.constant 0 : index
    %c0_48 = arith.constant 0 : index
    %36 = vector.load %arg1[%c0_44, %c3_45, %c0_46, %c0_47, %c0_48] : memref<1x4x4x4x8xbf16, #tpu.memory_space<vmem>>, vector<1x1x1x3x8xbf16>
    %37 = vector.shape_cast %36 : vector<1x1x1x3x8xbf16> to vector<3x8xbf16>
    %cst_49 = arith.constant dense<0.000000e+00> : vector<3x16xf32>
    %38 = tpu.matmul %37, %10, %cst_49 {dimension_numbers = #tpu.dot_dimension_numbers<[1], [0], [0], [1], [0, 0, 1, 1], [], []>} : vector<3x8xbf16>, vector<8x16xbf16>, vector<3x16xf32> -> vector<3x16xf32>
    %39 = arith.addf %35, %38 : vector<3x16xf32>
    %c0_50 = arith.constant 0 : index
    %c2_51 = arith.constant 2 : index
    %c0_52 = arith.constant 0 : index
    %c1_53 = arith.constant 1 : index
    %c0_54 = arith.constant 0 : index
    %40 = vector.load %arg1[%c0_50, %c2_51, %c0_52, %c1_53, %c0_54] : memref<1x4x4x4x8xbf16, #tpu.memory_space<vmem>>, vector<1x1x1x3x8xbf16>
    %41 = vector.shape_cast %40 : vector<1x1x1x3x8xbf16> to vector<3x8xbf16>
    %cst_55 = arith.constant dense<0.000000e+00> : vector<3x16xf32>
    %42 = tpu.matmul %41, %12, %cst_55 {dimension_numbers = #tpu.dot_dimension_numbers<[1], [0], [0], [1], [0, 0, 1, 1], [], []>} : vector<3x8xbf16>, vector<8x16xbf16>, vector<3x16xf32> -> vector<3x16xf32>
    %43 = arith.addf %39, %42 : vector<3x16xf32>
    %c0_56 = arith.constant 0 : index
    %c0_57 = arith.constant 0 : index
    %c1_58 = arith.constant 1 : index
    %c0_59 = arith.constant 0 : index
    %c0_60 = arith.constant 0 : index
    %44 = vector.load %arg1[%c0_56, %c0_57, %c1_58, %c0_59, %c0_60] : memref<1x4x4x4x8xbf16, #tpu.memory_space<vmem>>, vector<1x1x1x3x8xbf16>
    %45 = vector.shape_cast %44 : vector<1x1x1x3x8xbf16> to vector<3x8xbf16>
    %cst_61 = arith.constant dense<0.000000e+00> : vector<3x16xf32>
    %46 = tpu.matmul %45, %14, %cst_61 {dimension_numbers = #tpu.dot_dimension_numbers<[1], [0], [0], [1], [0, 0, 1, 1], [], []>} : vector<3x8xbf16>, vector<8x16xbf16>, vector<3x16xf32> -> vector<3x16xf32>
    %47 = arith.addf %43, %46 : vector<3x16xf32>
    %c0_62 = arith.constant 0 : index
    %c1_63 = arith.constant 1 : index
    %c1_64 = arith.constant 1 : index
    %c0_65 = arith.constant 0 : index
    %c0_66 = arith.constant 0 : index
    %48 = vector.load %arg1[%c0_62, %c1_63, %c1_64, %c0_65, %c0_66] : memref<1x4x4x4x8xbf16, #tpu.memory_space<vmem>>, vector<1x1x1x3x8xbf16>
    %49 = vector.shape_cast %48 : vector<1x1x1x3x8xbf16> to vector<3x8xbf16>
    %cst_67 = arith.constant dense<0.000000e+00> : vector<3x16xf32>
    %50 = tpu.matmul %49, %16, %cst_67 {dimension_numbers = #tpu.dot_dimension_numbers<[1], [0], [0], [1], [0, 0, 1, 1], [], []>} : vector<3x8xbf16>, vector<8x16xbf16>, vector<3x16xf32> -> vector<3x16xf32>
    %51 = arith.addf %47, %50 : vector<3x16xf32>
    %c0_68 = arith.constant 0 : index
    %c0_69 = arith.constant 0 : index
    %c1_70 = arith.constant 1 : index
    %c1_71 = arith.constant 1 : index
    %c0_72 = arith.constant 0 : index
    %52 = vector.load %arg1[%c0_68, %c0_69, %c1_70, %c1_71, %c0_72] : memref<1x4x4x4x8xbf16, #tpu.memory_space<vmem>>, vector<1x1x1x3x8xbf16>
    %53 = vector.shape_cast %52 : vector<1x1x1x3x8xbf16> to vector<3x8xbf16>
    %cst_73 = arith.constant dense<0.000000e+00> : vector<3x16xf32>
    %54 = tpu.matmul %53, %18, %cst_73 {dimension_numbers = #tpu.dot_dimension_numbers<[1], [0], [0], [1], [0, 0, 1, 1], [], []>} : vector<3x8xbf16>, vector<8x16xbf16>, vector<3x16xf32> -> vector<3x16xf32>
    %55 = arith.addf %51, %54 : vector<3x16xf32>
    %56 = vector.broadcast %0 : vector<1x16xf32> to vector<3x16xf32>
    %57 = arith.addf %55, %56 : vector<3x16xf32>
    %cst_74 = arith.constant 0.000000e+00 : f32
    %58 = vector.broadcast %cst_74 : f32 to vector<3x16xf32>
    %59 = arith.cmpf ogt, %57, %58 : vector<3x16xf32>
    %cst_75 = arith.constant 0.000000e+00 : f32
    %60 = vector.broadcast %cst_75 : f32 to vector<3x16xf32>
    %61 = arith.minimumf %57, %60 : vector<3x16xf32>
    %62 = math.exp %61 : vector<3x16xf32>
    %cst_76 = arith.constant 1.000000e+00 : f32
    %63 = vector.broadcast %cst_76 : f32 to vector<3x16xf32>
    %64 = arith.subf %62, %63 : vector<3x16xf32>
    %65 = arith.select %59, %57, %64 : vector<3x16xi1>, vector<3x16xf32>
    %66 = arith.truncf %65 : vector<3x16xf32> to vector<3x16xbf16>
    %c0_77 = arith.constant 0 : index
    %c0_78 = arith.constant 0 : index
    %c0_79 = arith.constant 0 : index
    %c0_80 = arith.constant 0 : index
    %67 = vector.load %arg4[%c0_77, %c0_78, %c0_79, %c0_80] : memref<1x3x3x16xbf16, #tpu.memory_space<vmem>>, vector<1x1x3x16xbf16>
    %68 = vector.shape_cast %67 : vector<1x1x3x16xbf16> to vector<3x16xbf16>
    %69 = vector.shape_cast %66 : vector<3x16xbf16> to vector<1x1x3x16xbf16>
    tpu.vector_store %arg4[%c0_77, %c0_78, %c0_79, %c0_80], %69 {strides = array<i32>} : memref<1x3x3x16xbf16, #tpu.memory_space<vmem>>, vector<1x1x3x16xbf16>,
    %cst_81 = arith.constant 0.000000e+00 : f32
    %70 = vector.broadcast %cst_81 : f32 to vector<3x16xf32>
    %c0_82 = arith.constant 0 : index
    %c0_83 = arith.constant 0 : index
    %c1_84 = arith.constant 1 : index
    %c0_85 = arith.constant 0 : index
    %c0_86 = arith.constant 0 : index
    %71 = vector.load %arg1[%c0_82, %c0_83, %c1_84, %c0_85, %c0_86] : memref<1x4x4x4x8xbf16, #tpu.memory_space<vmem>>, vector<1x1x1x3x8xbf16>
    %72 = vector.shape_cast %71 : vector<1x1x1x3x8xbf16> to vector<3x8xbf16>
    %cst_87 = arith.constant dense<0.000000e+00> : vector<3x16xf32>
    %73 = tpu.matmul %72, %2, %cst_87 {dimension_numbers = #tpu.dot_dimension_numbers<[1], [0], [0], [1], [0, 0, 1, 1], [], []>} : vector<3x8xbf16>, vector<8x16xbf16>, vector<3x16xf32> -> vector<3x16xf32>
    %74 = arith.addf %70, %73 : vector<3x16xf32>
    %c0_88 = arith.constant 0 : index
    %c1_89 = arith.constant 1 : index
    %c1_90 = arith.constant 1 : index
    %c0_91 = arith.constant 0 : index
    %c0_92 = arith.constant 0 : index
    %75 = vector.load %arg1[%c0_88, %c1_89, %c1_90, %c0_91, %c0_92] : memref<1x4x4x4x8xbf16, #tpu.memory_space<vmem>>, vector<1x1x1x3x8xbf16>
    %76 = vector.shape_cast %75 : vector<1x1x1x3x8xbf16> to vector<3x8xbf16>
    %cst_93 = arith.constant dense<0.000000e+00> : vector<3x16xf32>
    %77 = tpu.matmul %76, %4, %cst_93 {dimension_numbers = #tpu.dot_dimension_numbers<[1], [0], [0], [1], [0, 0, 1, 1], [], []>} : vector<3x8xbf16>, vector<8x16xbf16>, vector<3x16xf32> -> vector<3x16xf32>
    %78 = arith.addf %74, %77 : vector<3x16xf32>
    %c0_94 = arith.constant 0 : index
    %c0_95 = arith.constant 0 : index
    %c1_96 = arith.constant 1 : index
    %c1_97 = arith.constant 1 : index
    %c0_98 = arith.constant 0 : index
    %79 = vector.load %arg1[%c0_94, %c0_95, %c1_96, %c1_97, %c0_98] : memref<1x4x4x4x8xbf16, #tpu.memory_space<vmem>>, vector<1x1x1x3x8xbf16>
    %80 = vector.shape_cast %79 : vector<1x1x1x3x8xbf16> to vector<3x8xbf16>
    %cst_99 = arith.constant dense<0.000000e+00> : vector<3x16xf32>
    %81 = tpu.matmul %80, %6, %cst_99 {dimension_numbers = #tpu.dot_dimension_numbers<[1], [0], [0], [1], [0, 0, 1, 1], [], []>} : vector<3x8xbf16>, vector<8x16xbf16>, vector<3x16xf32> -> vector<3x16xf32>
    %82 = arith.addf %78, %81 : vector<3x16xf32>
    %c0_100 = arith.constant 0 : index
    %c2_101 = arith.constant 2 : index
    %c1_102 = arith.constant 1 : index
    %c0_103 = arith.constant 0 : index
    %c0_104 = arith.constant 0 : index
    %83 = vector.load %arg1[%c0_100, %c2_101, %c1_102, %c0_103, %c0_104] : memref<1x4x4x4x8xbf16, #tpu.memory_space<vmem>>, vector<1x1x1x3x8xbf16>
    %84 = vector.shape_cast %83 : vector<1x1x1x3x8xbf16> to vector<3x8xbf16>
    %cst_105 = arith.constant dense<0.000000e+00> : vector<3x16xf32>
    %85 = tpu.matmul %84, %8, %cst_105 {dimension_numbers = #tpu.dot_dimension_numbers<[1], [0], [0], [1], [0, 0, 1, 1], [], []>} : vector<3x8xbf16>, vector<8x16xbf16>, vector<3x16xf32> -> vector<3x16xf32>
    %86 = arith.addf %82, %85 : vector<3x16xf32>
    %c0_106 = arith.constant 0 : index
    %c3_107 = arith.constant 3 : index
    %c1_108 = arith.constant 1 : index
    %c0_109 = arith.constant 0 : index
    %c0_110 = arith.constant 0 : index
    %87 = vector.load %arg1[%c0_106, %c3_107, %c1_108, %c0_109, %c0_110] : memref<1x4x4x4x8xbf16, #tpu.memory_space<vmem>>, vector<1x1x1x3x8xbf16>
    %88 = vector.shape_cast %87 : vector<1x1x1x3x8xbf16> to vector<3x8xbf16>
    %cst_111 = arith.constant dense<0.000000e+00> : vector<3x16xf32>
    %89 = tpu.matmul %88, %10, %cst_111 {dimension_numbers = #tpu.dot_dimension_numbers<[1], [0], [0], [1], [0, 0, 1, 1], [], []>} : vector<3x8xbf16>, vector<8x16xbf16>, vector<3x16xf32> -> vector<3x16xf32>
    %90 = arith.addf %86, %89 : vector<3x16xf32>
    %c0_112 = arith.constant 0 : index
    %c2_113 = arith.constant 2 : index
    %c1_114 = arith.constant 1 : index
    %c1_115 = arith.constant 1 : index
    %c0_116 = arith.constant 0 : index
    %91 = vector.load %arg1[%c0_112, %c2_113, %c1_114, %c1_115, %c0_116] : memref<1x4x4x4x8xbf16, #tpu.memory_space<vmem>>, vector<1x1x1x3x8xbf16>
    %92 = vector.shape_cast %91 : vector<1x1x1x3x8xbf16> to vector<3x8xbf16>
    %cst_117 = arith.constant dense<0.000000e+00> : vector<3x16xf32>
    %93 = tpu.matmul %92, %12, %cst_117 {dimension_numbers = #tpu.dot_dimension_numbers<[1], [0], [0], [1], [0, 0, 1, 1], [], []>} : vector<3x8xbf16>, vector<8x16xbf16>, vector<3x16xf32> -> vector<3x16xf32>
    %94 = arith.addf %90, %93 : vector<3x16xf32>
    %c0_118 = arith.constant 0 : index
    %c0_119 = arith.constant 0 : index
    %c2_120 = arith.constant 2 : index
    %c0_121 = arith.constant 0 : index
    %c0_122 = arith.constant 0 : index
    %95 = vector.load %arg1[%c0_118, %c0_119, %c2_120, %c0_121, %c0_122] : memref<1x4x4x4x8xbf16, #tpu.memory_space<vmem>>, vector<1x1x1x3x8xbf16>
    %96 = vector.shape_cast %95 : vector<1x1x1x3x8xbf16> to vector<3x8xbf16>
    %cst_123 = arith.constant dense<0.000000e+00> : vector<3x16xf32>
    %97 = tpu.matmul %96, %14, %cst_123 {dimension_numbers = #tpu.dot_dimension_numbers<[1], [0], [0], [1], [0, 0, 1, 1], [], []>} : vector<3x8xbf16>, vector<8x16xbf16>, vector<3x16xf32> -> vector<3x16xf32>
    %98 = arith.addf %94, %97 : vector<3x16xf32>
    %c0_124 = arith.constant 0 : index
    %c1_125 = arith.constant 1 : index
    %c2_126 = arith.constant 2 : index
    %c0_127 = arith.constant 0 : index
    %c0_128 = arith.constant 0 : index
    %99 = vector.load %arg1[%c0_124, %c1_125, %c2_126, %c0_127, %c0_128] : memref<1x4x4x4x8xbf16, #tpu.memory_space<vmem>>, vector<1x1x1x3x8xbf16>
    %100 = vector.shape_cast %99 : vector<1x1x1x3x8xbf16> to vector<3x8xbf16>
    %cst_129 = arith.constant dense<0.000000e+00> : vector<3x16xf32>
    %101 = tpu.matmul %100, %16, %cst_129 {dimension_numbers = #tpu.dot_dimension_numbers<[1], [0], [0], [1], [0, 0, 1, 1], [], []>} : vector<3x8xbf16>, vector<8x16xbf16>, vector<3x16xf32> -> vector<3x16xf32>
    %102 = arith.addf %98, %101 : vector<3x16xf32>
    %c0_130 = arith.constant 0 : index
    %c0_131 = arith.constant 0 : index
    %c2_132 = arith.constant 2 : index
    %c1_133 = arith.constant 1 : index
    %c0_134 = arith.constant 0 : index
    %103 = vector.load %arg1[%c0_130, %c0_131, %c2_132, %c1_133, %c0_134] : memref<1x4x4x4x8xbf16, #tpu.memory_space<vmem>>, vector<1x1x1x3x8xbf16>
    %104 = vector.shape_cast %103 : vector<1x1x1x3x8xbf16> to vector<3x8xbf16>
    %cst_135 = arith.constant dense<0.000000e+00> : vector<3x16xf32>
    %105 = tpu.matmul %104, %18, %cst_135 {dimension_numbers = #tpu.dot_dimension_numbers<[1], [0], [0], [1], [0, 0, 1, 1], [], []>} : vector<3x8xbf16>, vector<8x16xbf16>, vector<3x16xf32> -> vector<3x16xf32>
    %106 = arith.addf %102, %105 : vector<3x16xf32>
    %107 = vector.broadcast %0 : vector<1x16xf32> to vector<3x16xf32>
    %108 = arith.addf %106, %107 : vector<3x16xf32>
    %cst_136 = arith.constant 0.000000e+00 : f32
    %109 = vector.broadcast %cst_136 : f32 to vector<3x16xf32>
    %110 = arith.cmpf ogt, %108, %109 : vector<3x16xf32>
    %cst_137 = arith.constant 0.000000e+00 : f32
    %111 = vector.broadcast %cst_137 : f32 to vector<3x16xf32>
    %112 = arith.minimumf %108, %111 : vector<3x16xf32>
    %113 = math.exp %112 : vector<3x16xf32>
    %cst_138 = arith.constant 1.000000e+00 : f32
    %114 = vector.broadcast %cst_138 : f32 to vector<3x16xf32>
    %115 = arith.subf %113, %114 : vector<3x16xf32>
    %116 = arith.select %110, %108, %115 : vector<3x16xi1>, vector<3x16xf32>
    %117 = arith.truncf %116 : vector<3x16xf32> to vector<3x16xbf16>
    %c0_139 = arith.constant 0 : index
    %c1_140 = arith.constant 1 : index
    %c0_141 = arith.constant 0 : index
    %c0_142 = arith.constant 0 : index
    %118 = vector.load %arg4[%c0_139, %c1_140, %c0_141, %c0_142] : memref<1x3x3x16xbf16, #tpu.memory_space<vmem>>, vector<1x1x3x16xbf16>
    %119 = vector.shape_cast %118 : vector<1x1x3x16xbf16> to vector<3x16xbf16>
    %120 = vector.shape_cast %117 : vector<3x16xbf16> to vector<1x1x3x16xbf16>
    tpu.vector_store %arg4[%c0_139, %c1_140, %c0_141, %c0_142], %120 {strides = array<i32>} : memref<1x3x3x16xbf16, #tpu.memory_space<vmem>>, vector<1x1x3x16xbf16>,
    %cst_143 = arith.constant 0.000000e+00 : f32
    %121 = vector.broadcast %cst_143 : f32 to vector<3x16xf32>
    %c0_144 = arith.constant 0 : index
    %c0_145 = arith.constant 0 : index
    %c2_146 = arith.constant 2 : index
    %c0_147 = arith.constant 0 : index
    %c0_148 = arith.constant 0 : index
    %122 = vector.load %arg1[%c0_144, %c0_145, %c2_146, %c0_147, %c0_148] : memref<1x4x4x4x8xbf16, #tpu.memory_space<vmem>>, vector<1x1x1x3x8xbf16>
    %123 = vector.shape_cast %122 : vector<1x1x1x3x8xbf16> to vector<3x8xbf16>
    %cst_149 = arith.constant dense<0.000000e+00> : vector<3x16xf32>
    %124 = tpu.matmul %123, %2, %cst_149 {dimension_numbers = #tpu.dot_dimension_numbers<[1], [0], [0], [1], [0, 0, 1, 1], [], []>} : vector<3x8xbf16>, vector<8x16xbf16>, vector<3x16xf32> -> vector<3x16xf32>
    %125 = arith.addf %121, %124 : vector<3x16xf32>
    %c0_150 = arith.constant 0 : index
    %c1_151 = arith.constant 1 : index
    %c2_152 = arith.constant 2 : index
    %c0_153 = arith.constant 0 : index
    %c0_154 = arith.constant 0 : index
    %126 = vector.load %arg1[%c0_150, %c1_151, %c2_152, %c0_153, %c0_154] : memref<1x4x4x4x8xbf16, #tpu.memory_space<vmem>>, vector<1x1x1x3x8xbf16>
    %127 = vector.shape_cast %126 : vector<1x1x1x3x8xbf16> to vector<3x8xbf16>
    %cst_155 = arith.constant dense<0.000000e+00> : vector<3x16xf32>
    %128 = tpu.matmul %127, %4, %cst_155 {dimension_numbers = #tpu.dot_dimension_numbers<[1], [0], [0], [1], [0, 0, 1, 1], [], []>} : vector<3x8xbf16>, vector<8x16xbf16>, vector<3x16xf32> -> vector<3x16xf32>
    %129 = arith.addf %125, %128 : vector<3x16xf32>
    %c0_156 = arith.constant 0 : index
    %c0_157 = arith.constant 0 : index
    %c2_158 = arith.constant 2 : index
    %c1_159 = arith.constant 1 : index
    %c0_160 = arith.constant 0 : index
    %130 = vector.load %arg1[%c0_156, %c0_157, %c2_158, %c1_159, %c0_160] : memref<1x4x4x4x8xbf16, #tpu.memory_space<vmem>>, vector<1x1x1x3x8xbf16>
    %131 = vector.shape_cast %130 : vector<1x1x1x3x8xbf16> to vector<3x8xbf16>
    %cst_161 = arith.constant dense<0.000000e+00> : vector<3x16xf32>
    %132 = tpu.matmul %131, %6, %cst_161 {dimension_numbers = #tpu.dot_dimension_numbers<[1], [0], [0], [1], [0, 0, 1, 1], [], []>} : vector<3x8xbf16>, vector<8x16xbf16>, vector<3x16xf32> -> vector<3x16xf32>
    %133 = arith.addf %129, %132 : vector<3x16xf32>
    %c0_162 = arith.constant 0 : index
    %c2_163 = arith.constant 2 : index
    %c2_164 = arith.constant 2 : index
    %c0_165 = arith.constant 0 : index
    %c0_166 = arith.constant 0 : index
    %134 = vector.load %arg1[%c0_162, %c2_163, %c2_164, %c0_165, %c0_166] : memref<1x4x4x4x8xbf16, #tpu.memory_space<vmem>>, vector<1x1x1x3x8xbf16>
    %135 = vector.shape_cast %134 : vector<1x1x1x3x8xbf16> to vector<3x8xbf16>
    %cst_167 = arith.constant dense<0.000000e+00> : vector<3x16xf32>
    %136 = tpu.matmul %135, %8, %cst_167 {dimension_numbers = #tpu.dot_dimension_numbers<[1], [0], [0], [1], [0, 0, 1, 1], [], []>} : vector<3x8xbf16>, vector<8x16xbf16>, vector<3x16xf32> -> vector<3x16xf32>
    %137 = arith.addf %133, %136 : vector<3x16xf32>
    %c0_168 = arith.constant 0 : index
    %c3_169 = arith.constant 3 : index
    %c2_170 = arith.constant 2 : index
    %c0_171 = arith.constant 0 : index
    %c0_172 = arith.constant 0 : index
    %138 = vector.load %arg1[%c0_168, %c3_169, %c2_170, %c0_171, %c0_172] : memref<1x4x4x4x8xbf16, #tpu.memory_space<vmem>>, vector<1x1x1x3x8xbf16>
    %139 = vector.shape_cast %138 : vector<1x1x1x3x8xbf16> to vector<3x8xbf16>
    %cst_173 = arith.constant dense<0.000000e+00> : vector<3x16xf32>
    %140 = tpu.matmul %139, %10, %cst_173 {dimension_numbers = #tpu.dot_dimension_numbers<[1], [0], [0], [1], [0, 0, 1, 1], [], []>} : vector<3x8xbf16>, vector<8x16xbf16>, vector<3x16xf32> -> vector<3x16xf32>
    %141 = arith.addf %137, %140 : vector<3x16xf32>
    %c0_174 = arith.constant 0 : index
    %c2_175 = arith.constant 2 : index
    %c2_176 = arith.constant 2 : index
    %c1_177 = arith.constant 1 : index
    %c0_178 = arith.constant 0 : index
    %142 = vector.load %arg1[%c0_174, %c2_175, %c2_176, %c1_177, %c0_178] : memref<1x4x4x4x8xbf16, #tpu.memory_space<vmem>>, vector<1x1x1x3x8xbf16>
    %143 = vector.shape_cast %142 : vector<1x1x1x3x8xbf16> to vector<3x8xbf16>
    %cst_179 = arith.constant dense<0.000000e+00> : vector<3x16xf32>
    %144 = tpu.matmul %143, %12, %cst_179 {dimension_numbers = #tpu.dot_dimension_numbers<[1], [0], [0], [1], [0, 0, 1, 1], [], []>} : vector<3x8xbf16>, vector<8x16xbf16>, vector<3x16xf32> -> vector<3x16xf32>
    %145 = arith.addf %141, %144 : vector<3x16xf32>
    %c0_180 = arith.constant 0 : index
    %c0_181 = arith.constant 0 : index
    %c3_182 = arith.constant 3 : index
    %c0_183 = arith.constant 0 : index
    %c0_184 = arith.constant 0 : index
    %146 = vector.load %arg1[%c0_180, %c0_181, %c3_182, %c0_183, %c0_184] : memref<1x4x4x4x8xbf16, #tpu.memory_space<vmem>>, vector<1x1x1x3x8xbf16>
    %147 = vector.shape_cast %146 : vector<1x1x1x3x8xbf16> to vector<3x8xbf16>
    %cst_185 = arith.constant dense<0.000000e+00> : vector<3x16xf32>
    %148 = tpu.matmul %147, %14, %cst_185 {dimension_numbers = #tpu.dot_dimension_numbers<[1], [0], [0], [1], [0, 0, 1, 1], [], []>} : vector<3x8xbf16>, vector<8x16xbf16>, vector<3x16xf32> -> vector<3x16xf32>
    %149 = arith.addf %145, %148 : vector<3x16xf32>
    %c0_186 = arith.constant 0 : index
    %c1_187 = arith.constant 1 : index
    %c3_188 = arith.constant 3 : index
    %c0_189 = arith.constant 0 : index
    %c0_190 = arith.constant 0 : index
    %150 = vector.load %arg1[%c0_186, %c1_187, %c3_188, %c0_189, %c0_190] : memref<1x4x4x4x8xbf16, #tpu.memory_space<vmem>>, vector<1x1x1x3x8xbf16>
    %151 = vector.shape_cast %150 : vector<1x1x1x3x8xbf16> to vector<3x8xbf16>
    %cst_191 = arith.constant dense<0.000000e+00> : vector<3x16xf32>
    %152 = tpu.matmul %151, %16, %cst_191 {dimension_numbers = #tpu.dot_dimension_numbers<[1], [0], [0], [1], [0, 0, 1, 1], [], []>} : vector<3x8xbf16>, vector<8x16xbf16>, vector<3x16xf32> -> vector<3x16xf32>
    %153 = arith.addf %149, %152 : vector<3x16xf32>
    %c0_192 = arith.constant 0 : index
    %c0_193 = arith.constant 0 : index
    %c3_194 = arith.constant 3 : index
    %c1_195 = arith.constant 1 : index
    %c0_196 = arith.constant 0 : index
    %154 = vector.load %arg1[%c0_192, %c0_193, %c3_194, %c1_195, %c0_196] : memref<1x4x4x4x8xbf16, #tpu.memory_space<vmem>>, vector<1x1x1x3x8xbf16>
    %155 = vector.shape_cast %154 : vector<1x1x1x3x8xbf16> to vector<3x8xbf16>
    %cst_197 = arith.constant dense<0.000000e+00> : vector<3x16xf32>
    %156 = tpu.matmul %155, %18, %cst_197 {dimension_numbers = #tpu.dot_dimension_numbers<[1], [0], [0], [1], [0, 0, 1, 1], [], []>} : vector<3x8xbf16>, vector<8x16xbf16>, vector<3x16xf32> -> vector<3x16xf32>
    %157 = arith.addf %153, %156 : vector<3x16xf32>
    %158 = vector.broadcast %0 : vector<1x16xf32> to vector<3x16xf32>
    %159 = arith.addf %157, %158 : vector<3x16xf32>
    %cst_198 = arith.constant 0.000000e+00 : f32
    %160 = vector.broadcast %cst_198 : f32 to vector<3x16xf32>
    %161 = arith.cmpf ogt, %159, %160 : vector<3x16xf32>
    %cst_199 = arith.constant 0.000000e+00 : f32
    %162 = vector.broadcast %cst_199 : f32 to vector<3x16xf32>
    %163 = arith.minimumf %159, %162 : vector<3x16xf32>
    %164 = math.exp %163 : vector<3x16xf32>
    %cst_200 = arith.constant 1.000000e+00 : f32
    %165 = vector.broadcast %cst_200 : f32 to vector<3x16xf32>
    %166 = arith.subf %164, %165 : vector<3x16xf32>
    %167 = arith.select %161, %159, %166 : vector<3x16xi1>, vector<3x16xf32>
    %168 = arith.truncf %167 : vector<3x16xf32> to vector<3x16xbf16>
    %c0_201 = arith.constant 0 : index
    %c2_202 = arith.constant 2 : index
    %c0_203 = arith.constant 0 : index
    %c0_204 = arith.constant 0 : index
    %169 = vector.load %arg4[%c0_201, %c2_202, %c0_203, %c0_204] : memref<1x3x3x16xbf16, #tpu.memory_space<vmem>>, vector<1x1x3x16xbf16>
    %170 = vector.shape_cast %169 : vector<1x1x3x16xbf16> to vector<3x16xbf16>
    %171 = vector.shape_cast %168 : vector<3x16xbf16> to vector<1x1x3x16xbf16>
    tpu.vector_store %arg4[%c0_201, %c2_202, %c0_203, %c0_204], %171 {strides = array<i32>} : memref<1x3x3x16xbf16, #tpu.memory_space<vmem>>, vector<1x1x3x16xbf16>,
    return
  }
  func.func @transform_0(%arg0: i32) -> (i32, i32, i32, i32, i32) {
    %c0_i32 = arith.constant 0 : i32
    %c0_i32_0 = arith.constant 0 : i32
    %c0_i32_1 = arith.constant 0 : i32
    %c0_i32_2 = arith.constant 0 : i32
    %c0_i32_3 = arith.constant 0 : i32
    return %arg0, %c0_i32, %c0_i32_0, %c0_i32_1, %c0_i32_2 : i32, i32, i32, i32, i32
  }
  func.func @transform_1(%arg0: i32) -> (i32, i32, i32) {
    %c0_i32 = arith.constant 0 : i32
    %c0_i32_0 = arith.constant 0 : i32
    %c0_i32_1 = arith.constant 0 : i32
    %c0_i32_2 = arith.constant 0 : i32
    return %c0_i32, %c0_i32_0, %c0_i32_1 : i32, i32, i32
  }
  func.func @transform_2(%arg0: i32) -> (i32, i32) {
    %c0_i32 = arith.constant 0 : i32
    %c0_i32_0 = arith.constant 0 : i32
    %c0_i32_1 = arith.constant 0 : i32
    return %c0_i32, %c0_i32_0 : i32, i32
  }
  func.func @transform_3(%arg0: i32) -> (i32, i32, i32, i32) {
    %c0_i32 = arith.constant 0 : i32
    %c0_i32_0 = arith.constant 0 : i32
    %c0_i32_1 = arith.constant 0 : i32
    %c0_i32_2 = arith.constant 0 : i32
    return %arg0, %c0_i32, %c0_i32_0, %c0_i32_1 : i32, i32, i32, i32
  }
}

module attributes {stable_mosaic.version = 11 : i64} {
  func.func @_mlp_kernel(%arg0: i32, %arg1: memref<2x144xbf16, #tpu.memory_space<vmem>>, %arg2: memref<144x32xbf16, #tpu.memory_space<vmem>>, %arg3: memref<1x32xf32, #tpu.memory_space<vmem>>, %arg4: memref<32x8xbf16, #tpu.memory_space<vmem>>, %arg5: memref<1x8xf32, #tpu.memory_space<vmem>>, %arg6: memref<2x8xf32, #tpu.memory_space<vmem>>) attributes {dimension_semantics = [#tpu.dimension_semantics<arbitrary>], iteration_bounds = array<i64: 1>, scalar_prefetch = 0 : i64, scratch_operands = 0 : i64, tpu.core_type = #tpu.core_type<tc>, window_params = [{pipeline_mode = #tpu.pipeline_mode<synchronous>, transform_indices = @transform_0, window_bounds = array<i64: 2, 144>}, {pipeline_mode = #tpu.pipeline_mode<synchronous>, transform_indices = @transform_1, window_bounds = array<i64: 144, 32>}, {pipeline_mode = #tpu.pipeline_mode<synchronous>, transform_indices = @transform_2, window_bounds = array<i64: 1, 32>}, {pipeline_mode = #tpu.pipeline_mode<synchronous>, transform_indices = @transform_3, window_bounds = array<i64: 32, 8>}, {pipeline_mode = #tpu.pipeline_mode<synchronous>, transform_indices = @transform_4, window_bounds = array<i64: 1, 8>}, {pipeline_mode = #tpu.pipeline_mode<synchronous>, transform_indices = @transform_5, window_bounds = array<i64: 2, 8>}]} {
    %c0 = arith.constant 0 : index
    %c0_0 = arith.constant 0 : index
    %0 = vector.load %arg1[%c0, %c0_0] : memref<2x144xbf16, #tpu.memory_space<vmem>>, vector<2x144xbf16>
    %c0_1 = arith.constant 0 : index
    %c0_2 = arith.constant 0 : index
    %1 = vector.load %arg2[%c0_1, %c0_2] : memref<144x32xbf16, #tpu.memory_space<vmem>>, vector<144x32xbf16>
    %c0_3 = arith.constant 0 : index
    %c0_4 = arith.constant 0 : index
    %2 = vector.load %arg3[%c0_3, %c0_4] : memref<1x32xf32, #tpu.memory_space<vmem>>, vector<1x32xf32>
    %cst = arith.constant dense<0.000000e+00> : vector<2x32xf32>
    %3 = tpu.matmul %0, %1, %cst {dimension_numbers = #tpu.dot_dimension_numbers<[1], [0], [0], [1], [0, 0, 1, 1], [], []>} : vector<2x144xbf16>, vector<144x32xbf16>, vector<2x32xf32> -> vector<2x32xf32>
    %4 = vector.broadcast %2 : vector<1x32xf32> to vector<2x32xf32>
    %5 = arith.addf %3, %4 : vector<2x32xf32>
    %cst_5 = arith.constant 0.000000e+00 : f32
    %6 = vector.broadcast %cst_5 : f32 to vector<2x32xf32>
    %7 = arith.cmpf ogt, %5, %6 : vector<2x32xf32>
    %cst_6 = arith.constant 0.000000e+00 : f32
    %8 = vector.broadcast %cst_6 : f32 to vector<2x32xf32>
    %9 = arith.minimumf %5, %8 : vector<2x32xf32>
    %10 = math.exp %9 : vector<2x32xf32>
    %cst_7 = arith.constant 1.000000e+00 : f32
    %11 = vector.broadcast %cst_7 : f32 to vector<2x32xf32>
    %12 = arith.subf %10, %11 : vector<2x32xf32>
    %13 = arith.select %7, %5, %12 : vector<2x32xi1>, vector<2x32xf32>
    %14 = arith.truncf %13 : vector<2x32xf32> to vector<2x32xbf16>
    %c0_8 = arith.constant 0 : index
    %c0_9 = arith.constant 0 : index
    %15 = vector.load %arg4[%c0_8, %c0_9] : memref<32x8xbf16, #tpu.memory_space<vmem>>, vector<32x8xbf16>
    %c0_10 = arith.constant 0 : index
    %c0_11 = arith.constant 0 : index
    %16 = vector.load %arg5[%c0_10, %c0_11] : memref<1x8xf32, #tpu.memory_space<vmem>>, vector<1x8xf32>
    %cst_12 = arith.constant dense<0.000000e+00> : vector<2x8xf32>
    %17 = tpu.matmul %14, %15, %cst_12 {dimension_numbers = #tpu.dot_dimension_numbers<[1], [0], [0], [1], [0, 0, 1, 1], [], []>} : vector<2x32xbf16>, vector<32x8xbf16>, vector<2x8xf32> -> vector<2x8xf32>
    %18 = vector.broadcast %16 : vector<1x8xf32> to vector<2x8xf32>
    %19 = arith.addf %17, %18 : vector<2x8xf32>
    %c0_13 = arith.constant 0 : index
    %c0_14 = arith.constant 0 : index
    %20 = vector.load %arg6[%c0_13, %c0_14] : memref<2x8xf32, #tpu.memory_space<vmem>>, vector<2x8xf32>
    tpu.vector_store %arg6[%c0_13, %c0_14], %19 {strides = array<i32>} : memref<2x8xf32, #tpu.memory_space<vmem>>, vector<2x8xf32>,
    return
  }
  func.func @transform_0(%arg0: i32) -> (i32, i32) {
    %c0_i32 = arith.constant 0 : i32
    %c0_i32_0 = arith.constant 0 : i32
    %c0_i32_1 = arith.constant 0 : i32
    return %c0_i32, %c0_i32_0 : i32, i32
  }
  func.func @transform_1(%arg0: i32) -> (i32, i32) {
    %c0_i32 = arith.constant 0 : i32
    %c0_i32_0 = arith.constant 0 : i32
    %c0_i32_1 = arith.constant 0 : i32
    return %c0_i32, %c0_i32_0 : i32, i32
  }
  func.func @transform_2(%arg0: i32) -> (i32, i32) {
    %c0_i32 = arith.constant 0 : i32
    %c0_i32_0 = arith.constant 0 : i32
    %c0_i32_1 = arith.constant 0 : i32
    return %c0_i32, %c0_i32_0 : i32, i32
  }
  func.func @transform_3(%arg0: i32) -> (i32, i32) {
    %c0_i32 = arith.constant 0 : i32
    %c0_i32_0 = arith.constant 0 : i32
    %c0_i32_1 = arith.constant 0 : i32
    return %c0_i32, %c0_i32_0 : i32, i32
  }
  func.func @transform_4(%arg0: i32) -> (i32, i32) {
    %c0_i32 = arith.constant 0 : i32
    %c0_i32_0 = arith.constant 0 : i32
    %c0_i32_1 = arith.constant 0 : i32
    return %c0_i32, %c0_i32_0 : i32, i32
  }
  func.func @transform_5(%arg0: i32) -> (i32, i32) {
    %c0_i32 = arith.constant 0 : i32
    %c0_i32_0 = arith.constant 0 : i32
    %c0_i32_1 = arith.constant 0 : i32
    return %c0_i32, %c0_i32_0 : i32, i32
  }
}

</mosaic_0001>

<bundles_post_ra>
// kernel: _lambda_.5
= control target key start
LH: loop header
LB: loop body
LE: loop exit
PB: predicated region body
PF: predicated region fallthrough
CT: control target
= control target key end

     0   :  { %s360_s0 = inlined_call_operand.vmem [shape: bf16[2,144], index: 0, kind: input, shape index: {}]   ;;  %s361_s1 = inlined_call_operand.vmem [shape: bf16[144,32], index: 1, kind: input, shape index: {}]   ;;  %s362_s2 = inlined_call_operand.vmem [shape: f32[1,32], index: 2, kind: input, shape index: {}]   ;;  %s363_s3 = inlined_call_operand.vmem [shape: bf16[32,8], index: 3, kind: input, shape index: {}]   ;;  %s364_s4 = inlined_call_operand.vmem [shape: f32[1,8], index: 4, kind: input, shape index: {}]   ;;  %s365_s5 = inlined_call_operand.hbm [shape: f32[2,8], index: 5, kind: output, shape index: {}]  }
   0x1   :  { %v249_v0 = vld [vmem:[%s361_s1 + $0x38] sm:$0xff]  ;;  %v248_v1 = vld [vmem:[%s361_s1 + $0x30] sm:$0xff]  ;;  %v250_v2 = vld [vmem:[%s361_s1 + $0x40] sm:$0xff] }
   0x2   :  { %107 = vmatpush.bf16.msra.mxu0 %v249_v0  ;;  %v22_v3 = vld [vmem:[%s360_s0] sm:$0x3]  ;;  %127 = vmatpush.bf16.msra.mxu1 %v250_v2 }
   0x3   :  { %46 = vst [vmem:[#allocation1] ss:$9 sm:$0xff] %v22_v3 }
   0x4   :  { %10 = vsyncpa [#allocation3], 0  ;;  %v247_v4 = vld [vmem:[%s361_s1 + $0x28] sm:$0xff]  ;;  %vm104_vm0 = vcmask 130048   ;;  %v246_v5 = vld [vmem:[%s361_s1 + $0x20] sm:$0xff]  ;;  %vm160_vm2 = vcmask 261120  }
   0x5   :  { %v245_v7 = vld [vmem:[%s361_s1 + $0x18] sm:$0xff]  ;;  %v244_v8 = vld [vmem:[%s361_s1 + $0x10] sm:$0xff]  ;;  %v243_v9 = vld [vmem:[%s361_s1 + $0x8] sm:$0xff]  ;;  %s284_s18 = smov [#allocation2]   ;;  %s186_s21 = sshll.u32 %s365_s5, 4  ;;  %vm177_vm3 = vcmask 58368   ;;  %s187_s21 = int_to_ptr.hbm [resolvable:$true] %s186_s21 }
   0x6   :  { %108 = vmatpush.bf16.msra.mxu0 %v248_v1  ;;  %v242_v10 = vld [vmem:[%s361_s1] sm:$0xff]  ;;  %v252_v12 = vld [vmem:[%s363_s3 + $0x8] sm:$0xff] }
   0x7   :  { %170 = vmatpush.bf16.msra.mxu2 %v252_v12  ;;  %v251_v14 = vld [vmem:[%s363_s3] sm:$0xff] }
   0x8   :  { %v254_v16 = vld [vmem:[%s362_s2] ss:$0 sm:$0xff]  ;;  %s184_s2 = sshll.u32 %s284_s18, 4  ;;  %s185_s2 = int_to_ptr.vmem [resolvable:$true] %s184_s2 }
   0x9   :  { %v255_v27 = vld [vmem:[%s364_s4] ss:$0 sm:$0xff] }
   0xa   :  { %109 = vmatpush.bf16.msra.mxu0 %v247_v4  ;;  %v48_v6 = vld [vmem:[#allocation1 + $0x9] sm:$0xff]  ;;  %v47_v11 = vld [vmem:[#allocation1] sm:$0xff] }
   0xb   :  { %231 = vmatmul.msk.bf16.vlgmr.msra.gmra.mxu1 %vm104_vm0, %v48_v6  ;;  %171 = vmatpush.bf16.msra.mxu2 %v251_v14 }
   0xe   :  { %110 = vmatpush.bf16.msra.mxu0 %v246_v5 }
  0x12   :  { %111 = vmatpush.bf16.msra.mxu0 %v245_v7 }
  0x16   :  { %112 = vmatpush.bf16.msra.mxu0 %v244_v8 }
  0x1a   :  { %113 = vmatpush.bf16.msra.mxu0 %v243_v9 }
  0x1e   :  { %114 = vmatpush.bf16.msra.mxu0 %v242_v10 }
  0x21   :  { %115 = vmatmul.bf16.vlgmr.msra.gmra.mxu0 %v47_v11 }
  0x88   :  { %v129_v13 = vpop.f32.mrf.mxu1 }
  0x90   :  { %v131_v15 = vpop.f32.mrf.mxu1 }
  0x9e   :  { %v116_v17 = vpop.f32.mrf.mxu0 }
  0x9f   :  { %v117_v18 = vadd.f32 %v254_v16, %v116_v17 }
  0xa1   :  { %v130_v19 = vadd.f32 %v129_v13, %v117_v18 }
  0xa3   :  { %v134_v20 = vmin.f32 %v130_v19, 0.0  ;;  %vm133_vm1 = vcmp.gt.f32.partialorder %v130_v19, 0.0 }
  0xa5   :  { %v135_v21 = vmul.f32 1.442695, %v134_v20 }
  0xa6   :  { %v118_v22 = vpop.f32.mrf.mxu0 }
  0xa7   :  { %256 = vpow2.f32 %v135_v21 }
  0xad   :  { %v257_v23 = vpop.eup %256 }
  0xae   :  { %v232_v24 = vadd.f32 -1.0, %v257_v23 }
  0xb0   :  { %v138_v25 = vsel %vm133_vm1, %v130_v19, %v232_v24 }
  0xb1   :  { %v139_v26 = vpack.c.bf16 %v138_v25, %v138_v25 }
  0xb3   :  { %241 = vmatmul.msk.bf16.vlgmr.msra.gmra.mxu2 %vm160_vm2, %v139_v26 }
 0x136   :  { %v173_v28 = vpop.f32.mrf.mxu2 }
 0x137   :  { %v174_v29 = vadd.f32 %v255_v27, %v173_v28 }
 0x139   :  { %178 = vst.msk [vmem:[#allocation2] sm:$0x3] %vm177_vm3, %v174_v29 }
 0x13a   :  { %189 = dma.vmem_to_hbm [thread:$0]  %s185_s2, 32, %s187_s21, [#allocation3]  }
 0x13e   :  { %v175_v30 = vpop.f32.mrf.mxu2 }
 0x13f   :  { %282 = dma.done.wait [#allocation3], 32  }
 0x140   :  { %283 = vsyncadd [#allocation3], 4294967264 }
 0x141   :  { %194 = vsyncpa [#allocation3], 1 }

// kernel: _lambda_.4
= control target key start
LH: loop header
LB: loop body
LE: loop exit
PB: predicated region body
PF: predicated region fallthrough
CT: control target
= control target key end

     0   :  { %s985_s12 = smov 0   ;;  %s1160_s0 = inlined_call_operand.vmem [shape: bf16[2,4,4,4,8], index: 0, kind: input, shape index: {}]   ;;  %s1161_s1 = inlined_call_operand.vmem [shape: bf16[9,8,16], index: 1, kind: input, shape index: {}]   ;;  %s1162_s2 = inlined_call_operand.vmem [shape: f32[1,16], index: 2, kind: input, shape index: {}]   ;;  %s1163_s3 = inlined_call_operand.vmem [shape: bf16[2,3,3,16], index: 3, kind: output, shape index: {}]  }
   0x1 LB: > { %s871_s13 = sadd.s32 4294967295, %s963_s12   ;;  %p875_p0 = scmp.ge.s32.totalorder %s963_s12, 1  ;;  %s963_s12 = sphi %s985_s12, %s13_s12  }
   0x2   : > { %p137_p1 = scmp.lt.s32.totalorder %s963_s12, 3 }
   0x4   : > { %p138_p2 = pnand %p875_p0, %p137_p1 }
   0x5   : > { %p161_p3 = scmp.lt.s32.totalorder (!%p138_p2), %s871_s13, 1 }
   0x6   : > { %141 = sbr.rel (%p138_p2) target bundleno = 281 (0x119), region = 32 }
   0xb   : > { %v879_v0 = vld [vmem:[%s1161_s1 + $0x4] sm:$0xf]  ;;  %vm197_vm0 = vcmask 1043456   ;;  %v173_v1 = vld [vmem:[%s1161_s1] sm:$0xf]  ;;  %s1167_s13 = smov (!%p161_p3, %s871_s13), 1 }
   0xc   : > { %v1000_v2 = vsel %vm197_vm0, %v879_v0, 0  ;;  %v1003_v3 = vsel %vm197_vm0, %v173_v1, 0  ;;  %v880_v4 = vld [vmem:[%s1161_s1 + $0x8] sm:$0xf]  ;;  %v881_v6 = vld [vmem:[%s1161_s1 + $0xc] sm:$0xf] }
   0xd   : > { %208 = vmatpush.bf16.msra.mxu0 %v1000_v2  ;;  %227 = vmatpush.bf16.msra.mxu1 %v1003_v3  ;;  %v1013_v5 = vsel %vm197_vm0, %v880_v4, 0  ;;  %v884_v7 = vld [vmem:[%s1161_s1 + $0x18] sm:$0xf]  ;;  %v1023_v8 = vsel %vm197_vm0, %v881_v6, 0  ;;  %v882_v10 = vld [vmem:[%s1161_s1 + $0x10] sm:$0xf] }
   0xe   : > { %254 = vmatpush.bf16.msra.mxu2 %v1013_v5  ;;  %v1026_v9 = vsel %vm197_vm0, %v884_v7, 0  ;;  %v883_v11 = vld [vmem:[%s1161_s1 + $0x14] sm:$0xf]  ;;  %s940_s28 = sshll.u32 %s1167_s13, 5  ;;  %vm193_vm1 = vcmask 64512   ;;  %276 = vmatpush.bf16.msra.mxu3 %v1023_v8  ;;  %v1038_v12 = vsel %vm197_vm0, %v882_v10, 0 }
   0xf   : > { %v1041_v13 = vsel %vm197_vm0, %v883_v11, 0  ;;  %v885_v14 = vld [vmem:[%s1161_s1 + $0x1c] sm:$0xf]  ;;  %s1049_s6 = scalar_lea.vmem %s1160_s0, %s940_s28  ;;  %v886_v16 = vld [vmem:[%s1161_s1 + $0x20] sm:$0xf]  ;;  %s941_s11 = smul.u32 6, %s1167_s13 }
  0x10   : > { %v1054_v15 = vsel %vm197_vm0, %v885_v14, 0  ;;  %v887_v17 = vld [vmem:[%s1049_s6 + $0x8] sm:$0x3]  ;;  %v190_v18 = vld [vmem:[%s1049_s6] sm:$0x3]  ;;  %v1067_v20 = vsel %vm197_vm0, %v886_v16, 0 }
  0x11   : > { %298 = vmatpush.bf16.msrb.mxu0 %v1038_v12  ;;  %326 = vmatpush.bf16.msrb.mxu1 %v1041_v13  ;;  %233 = vst [vmem:[#allocation1] ss:$4 sm:$0xff] %v190_v18  ;;  %v891_v19 = vld [vmem:[%s1049_s6 + $0x10] sm:$0x3]  ;;  %v893_v26 = vld [vmem:[%s1049_s6 + $0x18] sm:$0x3]  ;;  %s1137_s16 = scalar_lea.vmem %s1163_s3, %s941_s11 }
  0x12   : > { %348 = vmatpush.bf16.msrb.mxu2 %v1026_v9  ;;  %370 = vmatpush.bf16.msrb.mxu3 %v1054_v15  ;;  %v896_v27 = vld [vmem:[%s1049_s6 + $0x2] sm:$0x3]  ;;  %v898_v28 = vld [vmem:[%s1049_s6 + $0xa] sm:$0x3]  ;;  %v907_v40 = vld [vmem:[%s1049_s6 + $0x12] sm:$0x3] }
  0x13   : > { %888 = vmatmul.msk.bf16.vlgmr.msra.gmra.mxu0 %vm193_vm1, %v887_v17  ;;  %889 = vmatmul.msk.bf16.vlgmr.msra.gmra.mxu1 %vm193_vm1, %v190_v18  ;;  %v902_v34 = vld [vmem:[%s1049_s6 + $0x2] sm:$0x3]  ;;  %v903_v45 = vld [vmem:[%s1049_s6 + $0xa] sm:$0x3]  ;;  %v912_v47 = vld [vmem:[%s1049_s6 + $0x4] sm:$0x3] }
  0x14   : > { %892 = vmatmul.msk.bf16.vlgmr.msra.gmra.mxu3 %vm193_vm1, %v891_v19  ;;  %v920_v49 = vld [vmem:[%s1049_s6 + $0x4] sm:$0x3]  ;;  %v909_v52 = vld [vmem:[%s1049_s6 + $0x1a] sm:$0x3]  ;;  %v925_v53 = vld [vmem:[%s1049_s6 + $0x14] sm:$0x3] }
  0x15   : > { %434 = vmatpush.bf16.msra.mxu1 %v1000_v2  ;;  %398 = vmatpush.bf16.msra.mxu0 %v1067_v20  ;;  %v914_v59 = vld [vmem:[%s1049_s6 + $0xc] sm:$0x3]  ;;  %v930_v62 = vld [vmem:[%s1049_s6 + $0x6] sm:$0x3]  ;;  %v927_v10 = vld [vmem:[%s1049_s6 + $0x1c] sm:$0x3] }
  0x16   : > { %474 = vmatpush.bf16.msra.mxu3 %v1013_v5  ;;  %vm416_vm2 = vcmask 123904   ;;  %vm417_vm3 = vsmask.f32 1280 }
  0x17   : > { %vm1139_vm5 = vmand %vm416_vm2, %vm417_vm3 }
  0x18   : > { %v234_v21 = vld.sshfl [vmem:[#allocation1] sm:$0xff pattern:$0x73625140] }
  0x19   : > { %v235_v22 = vshrl.u32 %v234_v21, 16  ;;  %v237_v23 = vshll.u32 %v234_v21, 16  ;;  %305 = vst [vmem:[#allocation1] ss:$4 sm:$0xff] %v891_v19 }
  0x1b   : > { %v239_v24 = vrot.slane %v237_v23, 1 }
  0x1d   : > { %v240_v25 = vor.u32 %v239_v24, %v235_v22 }
  0x1f   : > { %890 = vmatmul.msk.bf16.vlgmr.msra.gmra.mxu2 %vm193_vm1, %v240_v25 }
  0x20   : > { %v306_v29 = vld.sshfl [vmem:[#allocation1] sm:$0xff pattern:$0x73625140]  ;;  %450 = vmatpush.bf16.msra.mxu2 %v1003_v3 }
  0x21   : > { %v307_v30 = vshrl.u32 %v306_v29, 16  ;;  %v309_v31 = vshll.u32 %v306_v29, 16  ;;  %377 = vst [vmem:[#allocation1] ss:$4 sm:$0xff] %v896_v27 }
  0x23   : > { %894 = vmatmul.msk.bf16.vlgmr.msrb.gmra.mxu0 %vm193_vm1, %v893_v26  ;;  %v311_v32 = vrot.slane %v309_v31, 1 }
  0x24   : > { %899 = vmatmul.msk.bf16.vlgmr.msrb.gmra.mxu3 %vm193_vm1, %v898_v28  ;;  %493 = vmatpush.bf16.msrb.mxu0 %v1023_v8 }
  0x25   : > { %556 = vmatpush.bf16.msrb.mxu3 %v1026_v9  ;;  %v312_v33 = vor.u32 %v311_v32, %v307_v30 }
  0x27   : > { %895 = vmatmul.msk.bf16.vlgmr.msrb.gmra.mxu1 %vm193_vm1, %v312_v33 }
  0x28   : > { %v378_v35 = vld.sshfl [vmem:[#allocation1] sm:$0xff pattern:$0x73625140]  ;;  %512 = vmatpush.bf16.msrb.mxu1 %v1038_v12 }
  0x29   : > { %v379_v36 = vshrl.u32 %v378_v35, 16  ;;  %v381_v37 = vshll.u32 %v378_v35, 16  ;;  %456 = vst [vmem:[#allocation1] ss:$4 sm:$0xff] %v902_v34 }
  0x2b   : > { %v383_v38 = vrot.slane %v381_v37, 1 }
  0x2d   : > { %v384_v39 = vor.u32 %v383_v38, %v379_v36 }
  0x2f   : > { %897 = vmatmul.msk.bf16.vlgmr.msrb.gmra.mxu2 %vm193_vm1, %v896_v27 }
  0x30   : > { %v457_v41 = vld.sshfl [vmem:[#allocation1] sm:$0xff pattern:$0x73625140]  ;;  %537 = vmatpush.bf16.msrb.mxu2 %v1041_v13 }
  0x31   : > { %v458_v42 = vshrl.u32 %v457_v41, 16  ;;  %v460_v43 = vshll.u32 %v457_v41, 16  ;;  %519 = vst [vmem:[#allocation1] ss:$4 sm:$0xff] %v907_v40  ;;  %v1130_v41 = vld [vmem:[%s1162_s2] ss:$0 sm:$0xff] }
  0x33   : > { %900 = vmatmul.msk.bf16.vlgmr.msra.gmra.mxu0 %vm193_vm1, %v384_v39  ;;  %v462_v44 = vrot.slane %v460_v43, 1 }
  0x34   : > { %575 = vmatpush.bf16.msra.mxu0 %v1054_v15 }
  0x35   : > { %v463_v46 = vor.u32 %v462_v44, %v458_v42 }
  0x37   : > { %904 = vmatmul.msk.bf16.vlgmr.msra.gmra.mxu1 %vm193_vm1, %v903_v45  ;;  %906 = vmatmul.msk.bf16.vlgmr.msra.gmra.mxu3 %vm193_vm1, %v463_v46 }
  0x38   : > { %v520_v48 = vld.sshfl [vmem:[#allocation1] sm:$0xff pattern:$0x73625140]  ;;  %600 = vmatpush.bf16.msra.mxu1 %v1067_v20  ;;  %647 = vmatpush.bf16.msra.mxu3 %v1003_v3 }
  0x39   : > { %582 = vst [vmem:[#allocation1] ss:$4 sm:$0xff] %v912_v47  ;;  %v523_v51 = vshll.u32 %v520_v48, 16  ;;  %v521_v54 = vshrl.u32 %v520_v48, 16 }
  0x3b   : > { %v525_v55 = vrot.slane %v523_v51, 1 }
  0x3d   : > { %v526_v57 = vor.u32 %v525_v55, %v521_v54 }
  0x3f   : > { %905 = vmatmul.msk.bf16.vlgmr.msra.gmra.mxu2 %vm193_vm1, %v902_v34 }
  0x40   : > { %631 = vmatpush.bf16.msra.mxu2 %v1000_v2  ;;  %v583_v50 = vld.sshfl [vmem:[#allocation1] sm:$0xff pattern:$0x73625140] }
  0x41   : > { %653 = vst [vmem:[#allocation1] ss:$4 sm:$0xff] %v920_v49  ;;  %v586_v58 = vshll.u32 %v583_v50, 16  ;;  %v584_v60 = vshrl.u32 %v583_v50, 16 }
  0x43   : > { %908 = vmatmul.msk.bf16.vlgmr.msrb.gmra.mxu0 %vm193_vm1, %v907_v40  ;;  %v588_v61 = vrot.slane %v586_v58, 1 }
  0x44   : > { %671 = vmatpush.bf16.msrb.mxu0 %v1013_v5  ;;  %v921_v5 = vld [vmem:[%s1049_s6 + $0xc] sm:$0x3] }
  0x45   : > { %v589_v0 = vor.u32 %v588_v61, %v584_v60  ;;  %v419_v60 = vld [vmem:[%s1137_s16] sm:$0x3] }
  0x47   : > { %910 = vmatmul.msk.bf16.vlgmr.msrb.gmra.mxu1 %vm193_vm1, %v909_v52  ;;  %913 = vmatmul.msk.bf16.vlgmr.msrb.gmra.mxu3 %vm193_vm1, %v912_v47 }
  0x48   : > { %690 = vmatpush.bf16.msrb.mxu1 %v1023_v8  ;;  %v654_v56 = vld.sshfl [vmem:[#allocation1] sm:$0xff pattern:$0x73625140]  ;;  %734 = vmatpush.bf16.msrb.mxu3 %v1041_v13  ;;  %v932_v13 = vld [vmem:[%s1049_s6 + $0xe] sm:$0x3] }
  0x49   : > { %716 = vst [vmem:[#allocation1] ss:$4 sm:$0xff] %v925_v53  ;;  %v657_v1 = vshll.u32 %v654_v56, 16  ;;  %v655_v2 = vshrl.u32 %v654_v56, 16 }
  0x4b   : > { %v659_v3 = vrot.slane %v657_v1, 1 }
  0x4d   : > { %v660_v6 = vor.u32 %v659_v3, %v655_v2 }
  0x4f   : > { %911 = vmatmul.msk.bf16.vlgmr.msrb.gmra.mxu2 %vm193_vm1, %v526_v57 }
  0x50   : > { %709 = vmatpush.bf16.msrb.mxu2 %v1038_v12  ;;  %v717_v63 = vld.sshfl [vmem:[#allocation1] sm:$0xff pattern:$0x73625140] }
  0x51   : > { %779 = vst [vmem:[#allocation1] ss:$4 sm:$0xff] %v930_v62  ;;  %v720_v4 = vshll.u32 %v717_v63, 16  ;;  %v718_v7 = vshrl.u32 %v717_v63, 16 }
  0x53   : > { %915 = vmatmul.msk.bf16.vlgmr.msra.gmra.mxu0 %vm193_vm1, %v914_v59  ;;  %v722_v8 = vrot.slane %v720_v4, 1 }
  0x54   : > { %753 = vmatpush.bf16.msra.mxu0 %v1026_v9 }
  0x55   : > { %v723_v9 = vor.u32 %v722_v8, %v718_v7 }
  0x57   : > { %916 = vmatmul.msk.bf16.vlgmr.msra.gmra.mxu1 %vm193_vm1, %v589_v0  ;;  %923 = vmatmul.msk.bf16.vlgmr.msra.gmra.mxu3 %vm193_vm1, %v920_v49 }
  0x58   : > { %772 = vmatpush.bf16.msra.mxu1 %v1054_v15  ;;  %v780_v11 = vld.sshfl [vmem:[#allocation1] sm:$0xff pattern:$0x73625140] }
  0x59   : > { %v783_v12 = vshll.u32 %v780_v11, 16  ;;  %v781_v14 = vshrl.u32 %v780_v11, 16 }
  0x5b   : > { %v785_v15 = vrot.slane %v783_v12, 1 }
  0x5d   : > { %v786_v16 = vor.u32 %v785_v15, %v781_v14 }
  0x5f   : > { %922 = vmatmul.msk.bf16.vlgmr.msra.gmra.mxu2 %vm193_vm1, %v921_v5 }
  0x60   : > { %797 = vmatpush.bf16.msra.mxu2 %v1067_v20 }
  0x63   : > { %924 = vmatmul.msk.bf16.vlgmr.msrb.gmra.mxu0 %vm193_vm1, %v660_v6 }
  0x67   : > { %926 = vmatmul.msk.bf16.vlgmr.msrb.gmra.mxu1 %vm193_vm1, %v925_v53  ;;  %929 = vmatmul.msk.bf16.vlgmr.msrb.gmra.mxu3 %vm193_vm1, %v723_v9 }
  0x6f   : > { %928 = vmatmul.msk.bf16.vlgmr.msrb.gmra.mxu2 %vm193_vm1, %v927_v10 }
  0x73   : > { %931 = vmatmul.msk.bf16.vlgmr.msra.gmra.mxu0 %vm193_vm1, %v930_v62 }
  0x77   : > { %933 = vmatmul.msk.bf16.vlgmr.msra.gmra.mxu1 %vm193_vm1, %v932_v13 }
  0x7f   : > { %934 = vmatmul.msk.bf16.vlgmr.msra.gmra.mxu2 %vm193_vm1, %v786_v16 }
  0x90   : > { %v210_v17 = vpop.f32.mrf.mxu0  ;;  %v229_v18 = vpop.f32.mrf.mxu1 }
  0x91   : > { %v230_v25 = vadd.f32 %v229_v18, %v210_v17 }
  0x97   : > { %v278_v19 = vpop.f32.mrf.mxu3 }
  0x98   : > { %v212_v20 = vpop.f32.mrf.mxu0  ;;  %v231_v21 = vpop.f32.mrf.mxu1 }
  0x9f   : > { %v280_v22 = vpop.f32.mrf.mxu3 }
  0xa0   : > { %v300_v23 = vpop.f32.mrf.mxu0 }
  0xa2   : > { %v256_v24 = vpop.f32.mrf.mxu2 }
  0xa3   : > { %v260_v27 = vadd.f32 %v256_v24, %v230_v25 }
  0xa4   : > { %v328_v26 = vpop.f32.mrf.mxu1 }
  0xa5   : > { %v282_v30 = vadd.f32 %v278_v19, %v260_v27 }
  0xa7   : > { %v372_v28 = vpop.f32.mrf.mxu3  ;;  %v304_v33 = vadd.f32 %v300_v23, %v282_v30 }
  0xa8   : > { %v302_v29 = vpop.f32.mrf.mxu0 }
  0xa9   : > { %v332_v36 = vadd.f32 %v328_v26, %v304_v33 }
  0xaa   : > { %v258_v31 = vpop.f32.mrf.mxu2 }
  0xac   : > { %v330_v32 = vpop.f32.mrf.mxu1 }
  0xaf   : > { %v374_v34 = vpop.f32.mrf.mxu3 }
  0xb0   : > { %v400_v35 = vpop.f32.mrf.mxu0 }
  0xb2   : > { %v350_v37 = vpop.f32.mrf.mxu2 }
  0xb3   : > { %v354_v38 = vadd.f32 %v350_v37, %v332_v36 }
  0xb4   : > { %v436_v39 = vpop.f32.mrf.mxu1 }
  0xb5   : > { %v376_v40 = vadd.f32 %v372_v28, %v354_v38  ;;  %v918_v28 = vld [vmem:[%s1137_s16 + $0x2] sm:$0x3] }
  0xb7   : > { %v404_v43 = vadd.f32 %v400_v35, %v376_v40 }
  0xb8   : > { %v402_v42 = vpop.f32.mrf.mxu0 }
  0xb9   : > { %v408_v44 = vadd.f32 %v1130_v41, %v404_v43 }
  0xba   : > { %v352_v45 = vpop.f32.mrf.mxu2  ;;  %v476_v46 = vpop.f32.mrf.mxu3 }
  0xbb   : > { %v410_v47 = vmin.f32 %v408_v44, 0.0  ;;  %vm409_vm4 = vcmp.gt.f32.partialorder %v408_v44, 0.0 }
  0xbc   : > { %v438_v48 = vpop.f32.mrf.mxu1 }
  0xbd   : > { %v411_v49 = vmul.f32 1.442695, %v410_v47 }
  0xbf   : > { %951 = vpow2.f32 %v411_v49 }
  0xc0   : > { %v495_v50 = vpop.f32.mrf.mxu0 }
  0xc2   : > { %v452_v51 = vpop.f32.mrf.mxu2  ;;  %v478_v52 = vpop.f32.mrf.mxu3 }
  0xc3   : > { %v453_v55 = vadd.f32 %v452_v51, %v436_v39 }
  0xc4   : > { %v514_v53 = vpop.f32.mrf.mxu1 }
  0xc5   : > { %v952_v54 = vpop.eup %951  ;;  %v480_v62 = vadd.f32 %v476_v46, %v453_v55 }
  0xc6   : > { %v901_v56 = vadd.f32 -1.0, %v952_v54 }
  0xc7   : > { %v499_v3 = vadd.f32 %v495_v50, %v480_v62 }
  0xc8   : > { %v497_v57 = vpop.f32.mrf.mxu0  ;;  %v414_v58 = vsel %vm409_vm4, %v408_v44, %v901_v56 }
  0xc9   : > { %v415_v61 = vpack.c.bf16 %v414_v58, %v414_v58  ;;  %v518_v5 = vadd.f32 %v514_v53, %v499_v3  ;;  %v936_v58 = vld [vmem:[%s1137_s16 + $0x4] sm:$0x3] }
  0xca   : > { %v454_v63 = vpop.f32.mrf.mxu2  ;;  %v558_v0 = vpop.f32.mrf.mxu3 }
  0xcb   : > { %v420_v1 = vsel %vm1139_vm5, %v415_v61, %v419_v60 }
  0xcc   : > { %421 = vst [vmem:[%s1137_s16] sm:$0x3] %v420_v1  ;;  %v516_v2 = vpop.f32.mrf.mxu1 }
  0xd0   : > { %v577_v4 = vpop.f32.mrf.mxu0 }
  0xd2   : > { %v539_v6 = vpop.f32.mrf.mxu2  ;;  %v560_v7 = vpop.f32.mrf.mxu3 }
  0xd3   : > { %v543_v8 = vadd.f32 %v539_v6, %v518_v5 }
  0xd4   : > { %v602_v9 = vpop.f32.mrf.mxu1 }
  0xd5   : > { %v562_v10 = vadd.f32 %v558_v0, %v543_v8 }
  0xd7   : > { %v581_v12 = vadd.f32 %v577_v4, %v562_v10 }
  0xd8   : > { %v579_v11 = vpop.f32.mrf.mxu0 }
  0xd9   : > { %v606_v13 = vadd.f32 %v602_v9, %v581_v12 }
  0xda   : > { %v541_v14 = vpop.f32.mrf.mxu2  ;;  %v649_v15 = vpop.f32.mrf.mxu3 }
  0xdb   : > { %v607_v16 = vadd.f32 %v1130_v41, %v606_v13 }
  0xdc   : > { %v604_v17 = vpop.f32.mrf.mxu1 }
  0xdd   : > { %v609_v18 = vmin.f32 %v607_v16, 0.0  ;;  %vm608_vm6 = vcmp.gt.f32.partialorder %v607_v16, 0.0 }
  0xdf   : > { %v610_v20 = vmul.f32 1.442695, %v609_v18 }
  0xe0   : > { %v673_v19 = vpop.f32.mrf.mxu0 }
  0xe1   : > { %953 = vpow2.f32 %v610_v20 }
  0xe2   : > { %v633_v21 = vpop.f32.mrf.mxu2  ;;  %v651_v22 = vpop.f32.mrf.mxu3 }
  0xe3   : > { %v650_v32 = vadd.f32 %v649_v15, %v633_v21 }
  0xe4   : > { %v692_v23 = vpop.f32.mrf.mxu1 }
  0xe5   : > { %v677_v36 = vadd.f32 %v673_v19, %v650_v32 }
  0xe7   : > { %v954_v25 = vpop.eup %953  ;;  %v696_v39 = vadd.f32 %v692_v23, %v677_v36 }
  0xe8   : > { %v675_v24 = vpop.f32.mrf.mxu0  ;;  %v917_v26 = vadd.f32 -1.0, %v954_v25 }
  0xea   : > { %v613_v27 = vsel %vm608_vm6, %v607_v16, %v917_v26  ;;  %v635_v29 = vpop.f32.mrf.mxu2  ;;  %v736_v30 = vpop.f32.mrf.mxu3 }
  0xeb   : > { %v614_v31 = vpack.c.bf16 %v613_v27, %v613_v27 }
  0xec   : > { %v694_v33 = vpop.f32.mrf.mxu1 }
  0xed   : > { %v617_v34 = vsel %vm1139_vm5, %v614_v31, %v918_v28 }
  0xee   : > { %919 = vst [vmem:[%s1137_s16 + $0x2] sm:$0x3] %v617_v34 }
  0xf0   : > { %v755_v35 = vpop.f32.mrf.mxu0 }
  0xf2   : > { %v711_v37 = vpop.f32.mrf.mxu2  ;;  %v738_v38 = vpop.f32.mrf.mxu3 }
  0xf3   : > { %v715_v42 = vadd.f32 %v711_v37, %v696_v39 }
  0xf4   : > { %v774_v40 = vpop.f32.mrf.mxu1 }
  0xf5   : > { %v740_v44 = vadd.f32 %v736_v30, %v715_v42 }
  0xf7   : > { %v759_v47 = vadd.f32 %v755_v35, %v740_v44 }
  0xf8   : > { %v757_v43 = vpop.f32.mrf.mxu0 }
  0xf9   : > { %v778_v48 = vadd.f32 %v774_v40, %v759_v47 }
  0xfa   : > { %v713_v45 = vpop.f32.mrf.mxu2 }
  0xfc   : > { %v776_v46 = vpop.f32.mrf.mxu1 }
 0x102   : > { %v799_v49 = vpop.f32.mrf.mxu2 }
 0x103   : > { %v803_v50 = vadd.f32 %v799_v49, %v778_v48 }
 0x105   : > { %v804_v51 = vadd.f32 %v1130_v41, %v803_v50 }
 0x107   : > { %v806_v52 = vmin.f32 %v804_v51, 0.0  ;;  %vm805_vm7 = vcmp.gt.f32.partialorder %v804_v51, 0.0 }
 0x109   : > { %v807_v53 = vmul.f32 1.442695, %v806_v52 }
 0x10a   : > { %v801_v54 = vpop.f32.mrf.mxu2 }
 0x10b   : > { %955 = vpow2.f32 %v807_v53 }
 0x111   : > { %v956_v55 = vpop.eup %955 }
 0x112   : > { %v935_v56 = vadd.f32 -1.0, %v956_v55 }
 0x114   : > { %v810_v57 = vsel %vm805_vm7, %v804_v51, %v935_v56 }
 0x115   : > { %v811_v60 = vpack.c.bf16 %v810_v57, %v810_v57 }
 0x117   : > { %v814_v61 = vsel %vm1139_vm5, %v811_v60, %v936_v58 }
 0x118   : > { %937 = vst [vmem:[%s1137_s16 + $0x4] sm:$0x3] %v814_v61 }
 0x119 PF: > { %s13_s12 = sadd.s32 1, %s963_s12  }
 0x11a   : > { %p10_p4 = scmp.ge.s32.totalorder %s13_s12, 4  }
 0x11c   :  { %12 = sbr.rel (!%p10_p4) target bundleno = 1 (0x1), region = 85 }

// kernel: _lambda_.3
= control target key start
LH: loop header
LB: loop body
LE: loop exit
PB: predicated region body
PF: predicated region fallthrough
CT: control target
= control target key end

     0   :  { %s1895_s12 = smov 0   ;;  %s2190_s0 = inlined_call_operand.vmem [shape: bf16[2,4,8,8,4], index: 0, kind: input, shape index: {}]   ;;  %s2191_s1 = inlined_call_operand.vmem [shape: bf16[9,4,8], index: 1, kind: input, shape index: {}]   ;;  %s2192_s2 = inlined_call_operand.vmem [shape: f32[1,8], index: 2, kind: input, shape index: {}]   ;;  %s2193_s3 = inlined_call_operand.vmem [shape: bf16[2,7,7,8], index: 3, kind: output, shape index: {}]  }
   0x1 LB: > { %s1701_s13 = sadd.s32 4294967295, %s1873_s12   ;;  %p1705_p0 = scmp.ge.s32.totalorder %s1873_s12, 1  ;;  %s1873_s12 = sphi %s1895_s12, %s13_s12  }
   0x2   : > { %p137_p1 = scmp.lt.s32.totalorder %s1873_s12, 3 }
   0x4   : > { %p138_p2 = pnand %p1705_p0, %p137_p1 }
   0x5   : > { %p161_p3 = scmp.lt.s32.totalorder (!%p138_p2), %s1701_s13, 1 }
   0x6   : > { %141 = sbr.rel (%p138_p2) target bundleno = 422 (0x1a6), region = 32 }
   0xb   : > { %v1709_v0 = vld [vmem:[%s2191_s1 + $0x2] sm:$0x3]  ;;  %vm197_vm0 = vcmask 1041408   ;;  %v173_v1 = vld [vmem:[%s2191_s1] sm:$0x3]  ;;  %s2197_s13 = smov (!%p161_p3, %s1701_s13), 1 }
   0xc   : > { %v1910_v2 = vsel %vm197_vm0, %v1709_v0, 0  ;;  %v1913_v3 = vsel %vm197_vm0, %v173_v1, 0  ;;  %v1710_v4 = vld [vmem:[%s2191_s1 + $0x4] sm:$0x3]  ;;  %v1711_v6 = vld [vmem:[%s2191_s1 + $0x6] sm:$0x3] }
   0xd   : > { %208 = vmatpush.bf16.msra.mxu0 %v1910_v2  ;;  %227 = vmatpush.bf16.msra.mxu1 %v1913_v3  ;;  %v1923_v5 = vsel %vm197_vm0, %v1710_v4, 0  ;;  %v1714_v7 = vld [vmem:[%s2191_s1 + $0xc] sm:$0x3]  ;;  %v1933_v8 = vsel %vm197_vm0, %v1711_v6, 0  ;;  %v1712_v10 = vld [vmem:[%s2191_s1 + $0x8] sm:$0x3] }
   0xe   : > { %256 = vmatpush.bf16.msra.mxu2 %v1923_v5  ;;  %v1936_v9 = vsel %vm197_vm0, %v1714_v7, 0  ;;  %v1713_v11 = vld [vmem:[%s2191_s1 + $0xa] sm:$0x3]  ;;  %s1842_s28 = sshll.u32 %s2197_s13, 7  ;;  %vm193_vm1 = vcmask 31744   ;;  %278 = vmatpush.bf16.msra.mxu3 %v1933_v8  ;;  %v1948_v12 = vsel %vm197_vm0, %v1712_v10, 0 }
   0xf   : > { %v1951_v13 = vsel %vm197_vm0, %v1713_v11, 0  ;;  %v1715_v14 = vld [vmem:[%s2191_s1 + $0xe] sm:$0x3]  ;;  %s1959_s6 = scalar_lea.vmem %s2190_s0, %s1842_s28  ;;  %v1716_v16 = vld [vmem:[%s2191_s1 + $0x10] sm:$0x3]  ;;  %s1843_s11 = smul.u32 28, %s2197_s13 }
  0x10   : > { %v1964_v15 = vsel %vm197_vm0, %v1715_v14, 0  ;;  %v1717_v17 = vld [vmem:[%s1959_s6 + $0x20] sm:$0xf]  ;;  %v1977_v22 = vsel %vm197_vm0, %v1716_v16, 0  ;;  %v1726_v32 = vld [vmem:[%s1959_s6 + $0x4] sm:$0xf] }
  0x11   : > { %300 = vmatpush.bf16.msrb.mxu0 %v1948_v12  ;;  %330 = vmatpush.bf16.msrb.mxu1 %v1951_v13  ;;  %v190_v18 = vld [vmem:[%s1959_s6] sm:$0xf]  ;;  %v1732_v33 = vld [vmem:[%s1959_s6 + $0x4] sm:$0xf]  ;;  %v382_v35 = vunpack.c.l.b16 %v1726_v32  ;;  %v1742_v52 = vld [vmem:[%s1959_s6 + $0x8] sm:$0xf]  ;;  %s2106_s16 = scalar_lea.vmem %s2193_s3, %s1843_s11 }
  0x12   : > { %352 = vmatpush.bf16.msrb.mxu2 %v1936_v9  ;;  %v1721_v19 = vld [vmem:[%s1959_s6 + $0x40] sm:$0xf]  ;;  %374 = vmatpush.bf16.msrb.mxu3 %v1964_v15  ;;  %v234_v20 = vunpack.c.l.b16 %v190_v18  ;;  %v463_v37 = vunpack.c.l.b16 %v1732_v33  ;;  %v1728_v38 = vld [vmem:[%s1959_s6 + $0x24] sm:$0xf]  ;;  %v593_v54 = vunpack.c.l.b16 %v1742_v52  ;;  %v1750_v0 = vld [vmem:[%s1959_s6 + $0x8] sm:$0xf] }
  0x13   : > { %1718 = vmatmul.msk.bf16.vlgmr.msra.gmra.mxu0 %vm193_vm1, %v1717_v17  ;;  %1719 = vmatmul.msk.bf16.vlgmr.msra.gmra.mxu1 %vm193_vm1, %v190_v18  ;;  %v308_v21 = vunpack.c.l.b16 %v1721_v19  ;;  %v1723_v36 = vld [vmem:[%s1959_s6 + $0x60] sm:$0xf]  ;;  %v383_v39 = vpack.c.b16 %v382_v35, %v382_v35  ;;  %v1733_v48 = vld [vmem:[%s1959_s6 + $0x24] sm:$0xf]  ;;  %v1755_v1 = vld [vmem:[%s1959_s6 + $0x48] sm:$0xf]  ;;  %v666_v6 = vunpack.c.l.b16 %v1750_v0 }
  0x14   : > { %1722 = vmatmul.msk.bf16.vlgmr.msra.gmra.mxu3 %vm193_vm1, %v1721_v19  ;;  %v235_v23 = vpack.c.b16 %v234_v20, %v234_v20  ;;  %v464_v40 = vpack.c.b16 %v463_v37, %v463_v37  ;;  %v1737_v50 = vld [vmem:[%s1959_s6 + $0x44] sm:$0xf]  ;;  %v594_v57 = vpack.c.b16 %v593_v54, %v593_v54  ;;  %v1744_v7 = vld [vmem:[%s1959_s6 + $0x28] sm:$0xf]  ;;  %v731_v10 = vunpack.c.l.b16 %v1755_v1 }
  0x15   : > { %440 = vmatpush.bf16.msra.mxu1 %v1910_v2  ;;  %v309_v24 = vpack.c.b16 %v308_v21, %v308_v21  ;;  %404 = vmatpush.bf16.msra.mxu0 %v1977_v22  ;;  %v387_v41 = vshll.u32 %v383_v39, 16  ;;  %v385_v43 = vshrl.u32 %v383_v39, 16  ;;  %v528_v51 = vunpack.c.l.b16 %v1737_v50  ;;  %v1739_v55 = vld [vmem:[%s1959_s6 + $0x64] sm:$0xf]  ;;  %v1751_v18 = vld [vmem:[%s1959_s6 + $0x28] sm:$0xf] }
  0x16   : > { %482 = vmatpush.bf16.msra.mxu3 %v1923_v5  ;;  %v237_v25 = vshrl.u32 %v235_v23, 16  ;;  %v239_v26 = vshll.u32 %v235_v23, 16  ;;  %v468_v42 = vshll.u32 %v464_v40, 16  ;;  %v466_v45 = vshrl.u32 %v464_v40, 16 }
  0x17   : > { %v313_v27 = vshll.u32 %v309_v24, 16  ;;  %v311_v30 = vshrl.u32 %v309_v24, 16  ;;  %v389_v44 = vrot.slane %v387_v41, 1  ;;  %v529_v53 = vpack.c.b16 %v528_v51, %v528_v51 }
  0x18   : > { %v241_v28 = vrot.slane %v239_v26, 1  ;;  %v470_v46 = vrot.slane %v468_v42, 1  ;;  %v598_v60 = vshll.u32 %v594_v57, 16  ;;  %v596_v62 = vshrl.u32 %v594_v57, 16  ;;  %v1760_v26 = vld [vmem:[%s1959_s6 + $0xc] sm:$0xf] }
  0x19   : > { %v315_v31 = vrot.slane %v313_v27, 1  ;;  %v390_v47 = vor.u32 %v389_v44, %v385_v43  ;;  %v533_v56 = vshll.u32 %v529_v53, 16  ;;  %v531_v58 = vshrl.u32 %v529_v53, 16  ;;  %v1773_v42 = vld [vmem:[%s1959_s6 + $0x4c] sm:$0xf] }
  0x1a   : > { %v242_v29 = vor.u32 %v241_v28, %v237_v25  ;;  %v471_v49 = vor.u32 %v470_v46, %v466_v45  ;;  %v600_v63 = vrot.slane %v598_v60, 1  ;;  %v667_v11 = vpack.c.b16 %v666_v6, %v666_v6  ;;  %v1757_v28 = vld [vmem:[%s1959_s6 + $0x68] sm:$0xf]  ;;  %v1778_v43 = vld [vmem:[%s1959_s6 + $0x10] sm:$0xf] }
  0x1b   : > { %v316_v34 = vor.u32 %v315_v31, %v311_v30  ;;  %v535_v59 = vrot.slane %v533_v56, 1  ;;  %v732_v14 = vpack.c.b16 %v731_v10, %v731_v10  ;;  %v796_v27 = vunpack.c.l.b16 %v1760_v26  ;;  %v1786_v60 = vld [vmem:[%s1959_s6 + $0x10] sm:$0xf] }
  0x1c   : > { %1720 = vmatmul.msk.bf16.vlgmr.msra.gmra.mxu2 %vm193_vm1, %v242_v29  ;;  %v601_v4 = vor.u32 %v600_v63, %v596_v62  ;;  %v671_v16 = vshll.u32 %v667_v11, 16  ;;  %v669_v19 = vshrl.u32 %v667_v11, 16  ;;  %v1768_v29 = vld [vmem:[%s1959_s6 + $0xc] sm:$0xf]  ;;  %v934_v45 = vunpack.c.l.b16 %v1773_v42 }
  0x1d   : > { %456 = vmatpush.bf16.msra.mxu2 %v1913_v3  ;;  %v536_v61 = vor.u32 %v535_v59, %v531_v58  ;;  %v736_v17 = vshll.u32 %v732_v14, 16  ;;  %v734_v21 = vshrl.u32 %v732_v14, 16  ;;  %v797_v30 = vpack.c.b16 %v796_v27, %v796_v27 }
  0x1e   : > { %v673_v20 = vrot.slane %v671_v16, 1  ;;  %v869_v31 = vunpack.c.l.b16 %v1768_v29  ;;  %v999_v46 = vunpack.c.l.b16 %v1778_v43  ;;  %v1787_v16 = vld [vmem:[%s1959_s6 + $0x30] sm:$0xf]  ;;  %vm422_vm2 = vcmask 60416  }
  0x1f   : > { %v738_v23 = vrot.slane %v736_v17, 1  ;;  %vm423_vm3 = vsmask.f32 3328 }
  0x20   : > { %v674_v24 = vor.u32 %v673_v20, %v669_v19  ;;  %v870_v35 = vpack.c.b16 %v869_v31, %v869_v31  ;;  %vm2114_vm5 = vmand %vm422_vm2, %vm423_vm3 }
  0x21   : > { %v739_v25 = vor.u32 %v738_v23, %v734_v21 }
  0x22   : > { %v872_v40 = vshrl.u32 %v870_v35, 16 }
  0x23   : > { %1724 = vmatmul.msk.bf16.vlgmr.msrb.gmra.mxu0 %vm193_vm1, %v1723_v36  ;;  %1725 = vmatmul.msk.bf16.vlgmr.msrb.gmra.mxu1 %vm193_vm1, %v316_v34  ;;  %v1769_v34 = vld [vmem:[%s1959_s6 + $0x2c] sm:$0xf]  ;;  %v799_v36 = vshrl.u32 %v797_v30, 16 }
  0x24   : > { %1729 = vmatmul.msk.bf16.vlgmr.msrb.gmra.mxu3 %vm193_vm1, %v1728_v38  ;;  %501 = vmatpush.bf16.msrb.mxu0 %v1933_v8  ;;  %v874_v38 = vshll.u32 %v870_v35, 16  ;;  %v1796_v35 = vld [vmem:[%s1959_s6 + $0x14] sm:$0xf] }
  0x25   : > { %520 = vmatpush.bf16.msrb.mxu1 %v1948_v12  ;;  %566 = vmatpush.bf16.msrb.mxu3 %v1936_v9 }
  0x26   : > { %v876_v41 = vrot.slane %v874_v38, 1 }
  0x28   : > { %v877_v44 = vor.u32 %v876_v41, %v872_v40  ;;  %v1202_v40 = vunpack.c.l.b16 %v1796_v35 }
  0x2c   : > { %1727 = vmatmul.msk.bf16.vlgmr.msrb.gmra.mxu2 %vm193_vm1, %v1726_v32  ;;  %v1762_v32 = vld [vmem:[%s1959_s6 + $0x2c] sm:$0xf] }
  0x2d   : > { %547 = vmatpush.bf16.msrb.mxu2 %v1951_v13 }
  0x33   : > { %1730 = vmatmul.msk.bf16.vlgmr.msra.gmra.mxu0 %vm193_vm1, %v390_v47  ;;  %1734 = vmatmul.msk.bf16.vlgmr.msra.gmra.mxu1 %vm193_vm1, %v1733_v48  ;;  %v1775_v47 = vld [vmem:[%s1959_s6 + $0x6c] sm:$0xf]  ;;  %v935_v48 = vpack.c.b16 %v934_v45, %v934_v45 }
  0x34   : > { %1736 = vmatmul.msk.bf16.vlgmr.msra.gmra.mxu3 %vm193_vm1, %v471_v49  ;;  %585 = vmatpush.bf16.msra.mxu0 %v1964_v15  ;;  %v1000_v49 = vpack.c.b16 %v999_v46, %v999_v46 }
  0x35   : > { %612 = vmatpush.bf16.msra.mxu1 %v1977_v22  ;;  %659 = vmatpush.bf16.msra.mxu3 %v1913_v3 }
  0x36   : > { %v1004_v51 = vshll.u32 %v1000_v49, 16  ;;  %v1002_v54 = vshrl.u32 %v1000_v49, 16  ;;  %v2090_v49 = vld [vmem:[%s2192_s2] ss:$0 sm:$0xff] }
  0x3c   : > { %1735 = vmatmul.msk.bf16.vlgmr.msra.gmra.mxu2 %vm193_vm1, %v1732_v33  ;;  %v801_v33 = vshll.u32 %v797_v30, 16 }
  0x3d   : > { %643 = vmatpush.bf16.msra.mxu2 %v1910_v2 }
  0x3e   : > { %v803_v37 = vrot.slane %v801_v33, 1 }
  0x40   : > { %v804_v39 = vor.u32 %v803_v37, %v799_v36  ;;  %v2081_v36 = vld [vmem:[%s1959_s6 + $0x14] sm:$0xf] }
  0x43   : > { %1738 = vmatmul.msk.bf16.vlgmr.msrb.gmra.mxu0 %vm193_vm1, %v1737_v50  ;;  %1740 = vmatmul.msk.bf16.vlgmr.msrb.gmra.mxu1 %vm193_vm1, %v1739_v55  ;;  %v939_v50 = vshll.u32 %v935_v48, 16  ;;  %v1006_v55 = vrot.slane %v1004_v51, 1 }
  0x44   : > { %1743 = vmatmul.msk.bf16.vlgmr.msrb.gmra.mxu3 %vm193_vm1, %v1742_v52  ;;  %685 = vmatpush.bf16.msrb.mxu0 %v1923_v5  ;;  %v937_v52 = vshrl.u32 %v935_v48, 16 }
  0x45   : > { %704 = vmatpush.bf16.msrb.mxu1 %v1933_v8  ;;  %750 = vmatpush.bf16.msrb.mxu3 %v1951_v13  ;;  %v941_v53 = vrot.slane %v939_v50, 1  ;;  %v1007_v59 = vor.u32 %v1006_v55, %v1002_v54  ;;  %v1203_v50 = vpack.c.b16 %v1202_v40, %v1202_v40 }
  0x47   : > { %v942_v56 = vor.u32 %v941_v53, %v937_v52  ;;  %v1207_v54 = vshll.u32 %v1203_v50, 16 }
  0x4c   : > { %1741 = vmatmul.msk.bf16.vlgmr.msrb.gmra.mxu2 %vm193_vm1, %v536_v61 }
  0x4d   : > { %723 = vmatpush.bf16.msrb.mxu2 %v1948_v12 }
  0x53   : > { %1745 = vmatmul.msk.bf16.vlgmr.msra.gmra.mxu0 %vm193_vm1, %v1744_v7  ;;  %1746 = vmatmul.msk.bf16.vlgmr.msra.gmra.mxu1 %vm193_vm1, %v601_v4  ;;  %v1791_v4 = vld [vmem:[%s1959_s6 + $0x50] sm:$0xf] }
  0x54   : > { %1753 = vmatmul.msk.bf16.vlgmr.msra.gmra.mxu3 %vm193_vm1, %v1750_v0  ;;  %769 = vmatpush.bf16.msra.mxu0 %v1936_v9  ;;  %v1072_v0 = vunpack.c.l.b16 %v1786_v60  ;;  %v1137_v10 = vunpack.c.l.b16 %v1791_v4 }
  0x55   : > { %788 = vmatpush.bf16.msra.mxu1 %v1964_v15  ;;  %846 = vmatpush.bf16.msra.mxu3 %v1910_v2 }
  0x56   : > { %v1073_v6 = vpack.c.b16 %v1072_v0, %v1072_v0  ;;  %v1138_v21 = vpack.c.b16 %v1137_v10, %v1137_v10 }
  0x58   : > { %v1077_v19 = vshll.u32 %v1073_v6, 16  ;;  %v1075_v23 = vshrl.u32 %v1073_v6, 16  ;;  %v1140_v33 = vshrl.u32 %v1138_v21, 16 }
  0x5c   : > { %1752 = vmatmul.msk.bf16.vlgmr.msra.gmra.mxu2 %vm193_vm1, %v1751_v18 }
  0x5d   : > { %815 = vmatpush.bf16.msra.mxu2 %v1977_v22 }
  0x63   : > { %1754 = vmatmul.msk.bf16.vlgmr.msrb.gmra.mxu0 %vm193_vm1, %v674_v24  ;;  %1756 = vmatmul.msk.bf16.vlgmr.msrb.gmra.mxu1 %vm193_vm1, %v1755_v1  ;;  %v1780_v1 = vld [vmem:[%s1959_s6 + $0x30] sm:$0xf]  ;;  %v1079_v24 = vrot.slane %v1077_v19, 1 }
  0x64   : > { %1759 = vmatmul.msk.bf16.vlgmr.msrb.gmra.mxu3 %vm193_vm1, %v739_v25  ;;  %862 = vmatpush.bf16.msrb.mxu0 %v1913_v3 }
  0x65   : > { %888 = vmatpush.bf16.msrb.mxu1 %v1923_v5  ;;  %926 = vmatpush.bf16.msrb.mxu3 %v1948_v12  ;;  %v1080_v30 = vor.u32 %v1079_v24, %v1075_v23  ;;  %v425_v23 = vld [vmem:[%s2106_s16] sm:$0xf]  ;;  %v1809_v24 = vld [vmem:[%s1959_s6 + $0x54] sm:$0xf] }
  0x6c   : > { %1758 = vmatmul.msk.bf16.vlgmr.msrb.gmra.mxu2 %vm193_vm1, %v1757_v28 }
  0x6d   : > { %907 = vmatpush.bf16.msrb.mxu2 %v1933_v8 }
  0x73   : > { %1761 = vmatmul.msk.bf16.vlgmr.msra.gmra.mxu0 %vm193_vm1, %v1760_v26  ;;  %1763 = vmatmul.msk.bf16.vlgmr.msra.gmra.mxu1 %vm193_vm1, %v1762_v32  ;;  %v1142_v26 = vshll.u32 %v1138_v21, 16 }
  0x74   : > { %1770 = vmatmul.msk.bf16.vlgmr.msra.gmra.mxu3 %vm193_vm1, %v1769_v34  ;;  %953 = vmatpush.bf16.msra.mxu0 %v1951_v13 }
  0x75   : > { %972 = vmatpush.bf16.msra.mxu1 %v1936_v9  ;;  %1018 = vmatpush.bf16.msra.mxu3 %v1977_v22  ;;  %v1144_v34 = vrot.slane %v1142_v26, 1 }
  0x77   : > { %v1145_v38 = vor.u32 %v1144_v34, %v1140_v33  ;;  %v1814_v33 = vld [vmem:[%s1959_s6 + $0x18] sm:$0xf] }
  0x7c   : > { %1764 = vmatmul.msk.bf16.vlgmr.msra.gmra.mxu2 %vm193_vm1, %v804_v39 }
  0x7d   : > { %991 = vmatpush.bf16.msra.mxu2 %v1964_v15 }
  0x83   : > { %1771 = vmatmul.msk.bf16.vlgmr.msrb.gmra.mxu0 %vm193_vm1, %v1768_v29  ;;  %1772 = vmatmul.msk.bf16.vlgmr.msrb.gmra.mxu1 %vm193_vm1, %v877_v44  ;;  %v1275_v44 = vunpack.c.l.b16 %v2081_v36 }
  0x84   : > { %1776 = vmatmul.msk.bf16.vlgmr.msrb.gmra.mxu3 %vm193_vm1, %v1775_v47  ;;  %1049 = vmatpush.bf16.msrb.mxu0 %v1910_v2  ;;  %v1798_v47 = vld [vmem:[%s1959_s6 + $0x34] sm:$0xf] }
  0x85   : > { %1065 = vmatpush.bf16.msrb.mxu1 %v1913_v3  ;;  %1110 = vmatpush.bf16.msrb.mxu3 %v1933_v8  ;;  %v1276_v51 = vpack.c.b16 %v1275_v44, %v1275_v44 }
  0x87   : > { %v1278_v0 = vshrl.u32 %v1276_v51, 16 }
  0x8c   : > { %1774 = vmatmul.msk.bf16.vlgmr.msrb.gmra.mxu2 %vm193_vm1, %v1773_v42 }
  0x8d   : > { %1091 = vmatpush.bf16.msrb.mxu2 %v1923_v5 }
  0x90   : > { %v210_v57 = vpop.f32.mrf.mxu0  ;;  %v229_v58 = vpop.f32.mrf.mxu1 }
  0x91   : > { %v230_v17 = vadd.f32 %v229_v58, %v210_v57  ;;  %v1280_v58 = vshll.u32 %v1276_v51, 16 }
  0x93   : > { %1777 = vmatmul.msk.bf16.vlgmr.msra.gmra.mxu0 %vm193_vm1, %v942_v56  ;;  %1779 = vmatmul.msk.bf16.vlgmr.msra.gmra.mxu1 %vm193_vm1, %v1778_v43  ;;  %v1793_v43 = vld [vmem:[%s1959_s6 + $0x70] sm:$0xf] }
  0x94   : > { %1782 = vmatmul.msk.bf16.vlgmr.msra.gmra.mxu3 %vm193_vm1, %v1007_v59  ;;  %1129 = vmatpush.bf16.msra.mxu0 %v1948_v12 }
  0x95   : > { %1156 = vmatpush.bf16.msra.mxu1 %v1951_v13  ;;  %1194 = vmatpush.bf16.msra.mxu3 %v1964_v15 }
  0x97   : > { %v280_v61 = vpop.f32.mrf.mxu3 }
  0x98   : > { %v212_v62 = vpop.f32.mrf.mxu0  ;;  %v231_v63 = vpop.f32.mrf.mxu1 }
  0x99   : > { %v1205_v62 = vshrl.u32 %v1203_v50, 16  ;;  %v1209_v63 = vrot.slane %v1207_v54, 1 }
  0x9c   : > { %1781 = vmatmul.msk.bf16.vlgmr.msra.gmra.mxu2 %vm193_vm1, %v1780_v1  ;;  %v1282_v1 = vrot.slane %v1280_v58, 1 }
  0x9d   : > { %1175 = vmatpush.bf16.msra.mxu2 %v1936_v9 }
  0x9f   : > { %v282_v7 = vpop.f32.mrf.mxu3  ;;  %v258_v11 = vpop.f32.mrf.mxu2 }
  0xa0   : > { %v302_v14 = vpop.f32.mrf.mxu0  ;;  %v332_v18 = vpop.f32.mrf.mxu1  ;;  %v262_v20 = vadd.f32 %v258_v11, %v230_v17  ;;  %v1805_v11 = vld [vmem:[%s1959_s6 + $0x34] sm:$0xf] }
  0xa2   : > { %v284_v25 = vadd.f32 %v280_v61, %v262_v20 }
  0xa3   : > { %1788 = vmatmul.msk.bf16.vlgmr.msrb.gmra.mxu0 %vm193_vm1, %v1787_v16  ;;  %1789 = vmatmul.msk.bf16.vlgmr.msrb.gmra.mxu1 %vm193_vm1, %v1786_v60 }
  0xa4   : > { %1792 = vmatmul.msk.bf16.vlgmr.msrb.gmra.mxu3 %vm193_vm1, %v1791_v4  ;;  %1221 = vmatpush.bf16.msrb.mxu0 %v1977_v22  ;;  %v306_v32 = vadd.f32 %v302_v14, %v284_v25  ;;  %v1210_v4 = vor.u32 %v1209_v63, %v1205_v62  ;;  %v1283_v14 = vor.u32 %v1282_v1, %v1278_v0  ;;  %v1816_v1 = vld [vmem:[%s1959_s6 + $0x38] sm:$0xf] }
  0xa5   : > { %1252 = vmatpush.bf16.msrb.mxu1 %v1910_v2  ;;  %1294 = vmatpush.bf16.msrb.mxu3 %v1923_v5 }
  0xa6   : > { %v336_v37 = vadd.f32 %v332_v18, %v306_v32  ;;  %v1340_v32 = vunpack.c.l.b16 %v1809_v24 }
  0xa7   : > { %v376_v27 = vpop.f32.mrf.mxu3  ;;  %v260_v28 = vpop.f32.mrf.mxu2 }
  0xa8   : > { %v304_v29 = vpop.f32.mrf.mxu0  ;;  %v334_v31 = vpop.f32.mrf.mxu1  ;;  %v1341_v34 = vpack.c.b16 %v1340_v32, %v1340_v32 }
  0xaa   : > { %v1345_v44 = vshll.u32 %v1341_v34, 16 }
  0xac   : > { %1790 = vmatmul.msk.bf16.vlgmr.msrb.gmra.mxu2 %vm193_vm1, %v1080_v30 }
  0xad   : > { %1268 = vmatpush.bf16.msrb.mxu2 %v1913_v3 }
  0xaf   : > { %v378_v39 = vpop.f32.mrf.mxu3  ;;  %v354_v41 = vpop.f32.mrf.mxu2 }
  0xb0   : > { %v406_v42 = vpop.f32.mrf.mxu0  ;;  %v358_v45 = vadd.f32 %v354_v41, %v336_v37  ;;  %v442_v46 = vpop.f32.mrf.mxu1  ;;  %v1811_v41 = vld [vmem:[%s1959_s6 + $0x74] sm:$0xf] }
  0xb2   : > { %v380_v48 = vadd.f32 %v376_v27, %v358_v45 }
  0xb3   : > { %1794 = vmatmul.msk.bf16.vlgmr.msra.gmra.mxu0 %vm193_vm1, %v1793_v43  ;;  %1795 = vmatmul.msk.bf16.vlgmr.msra.gmra.mxu1 %vm193_vm1, %v1145_v38  ;;  %v1405_v38 = vunpack.c.l.b16 %v1814_v33 }
  0xb4   : > { %1799 = vmatmul.msk.bf16.vlgmr.msra.gmra.mxu3 %vm193_vm1, %v1798_v47  ;;  %1313 = vmatpush.bf16.msra.mxu0 %v1933_v8  ;;  %v410_v52 = vadd.f32 %v406_v42, %v380_v48  ;;  %v1347_v47 = vrot.slane %v1345_v44, 1 }
  0xb5   : > { %1332 = vmatpush.bf16.msra.mxu1 %v1948_v12  ;;  %1378 = vmatpush.bf16.msra.mxu3 %v1936_v9 }
  0xb6   : > { %v414_v53 = vadd.f32 %v2090_v49, %v410_v52 }
  0xb7   : > { %v484_v55 = vpop.f32.mrf.mxu3  ;;  %v356_v56 = vpop.f32.mrf.mxu2 }
  0xb8   : > { %v408_v57 = vpop.f32.mrf.mxu0  ;;  %v416_v59 = vmin.f32 %v414_v53, 0.0  ;;  %v444_v60 = vpop.f32.mrf.mxu1  ;;  %vm415_vm4 = vcmp.gt.f32.partialorder %v414_v53, 0.0 }
  0xba   : > { %v417_v61 = vmul.f32 1.442695, %v416_v59  ;;  %v1822_v59 = vld [vmem:[%s1959_s6 + $0x18] sm:$0xf] }
  0xbb   : > { %v1478_v62 = vunpack.c.l.b16 %v1822_v59 }
  0xbc   : > { %1853 = vpow2.f32 %v417_v61  ;;  %1797 = vmatmul.msk.bf16.vlgmr.msra.gmra.mxu2 %vm193_vm1, %v1796_v35 }
  0xbd   : > { %1359 = vmatpush.bf16.msra.mxu2 %v1951_v13 }
  0xbf   : > { %v486_v6 = vpop.f32.mrf.mxu3  ;;  %v458_v7 = vpop.f32.mrf.mxu2 }
  0xc0   : > { %v503_v10 = vpop.f32.mrf.mxu0  ;;  %v522_v16 = vpop.f32.mrf.mxu1  ;;  %v459_v18 = vadd.f32 %v458_v7, %v442_v46  ;;  %v1406_v46 = vpack.c.b16 %v1405_v38, %v1405_v38  ;;  %v1479_v7 = vpack.c.b16 %v1478_v62, %v1478_v62 }
  0xc2   : > { %v1854_v17 = vpop.eup %1853  ;;  %v488_v26 = vadd.f32 %v484_v55, %v459_v18  ;;  %v1410_v50 = vshll.u32 %v1406_v46, 16  ;;  %v1408_v57 = vshrl.u32 %v1406_v46, 16  ;;  %v1748_v18 = vld [vmem:[%s2106_s16 + $0x4] sm:$0xf]  ;;  %v1829_v46 = vld [vmem:[%s1959_s6 + $0x78] sm:$0xf] }
  0xc3   : > { %1800 = vmatmul.msk.bf16.vlgmr.msrb.gmra.mxu0 %vm193_vm1, %v1210_v4  ;;  %1806 = vmatmul.msk.bf16.vlgmr.msrb.gmra.mxu1 %vm193_vm1, %v1805_v11  ;;  %v1731_v19 = vadd.f32 -1.0, %v1854_v17 }
  0xc4   : > { %1808 = vmatmul.msk.bf16.vlgmr.msrb.gmra.mxu3 %vm193_vm1, %v1283_v14  ;;  %1397 = vmatpush.bf16.msrb.mxu0 %v1964_v15  ;;  %v1412_v58 = vrot.slane %v1410_v50, 1  ;;  %v1483_v14 = vshll.u32 %v1479_v7, 16 }
  0xc5   : > { %1424 = vmatpush.bf16.msrb.mxu1 %v1977_v22  ;;  %1471 = vmatpush.bf16.msrb.mxu3 %v1913_v3  ;;  %v420_v20 = vsel %vm415_vm4, %v414_v53, %v1731_v19  ;;  %v507_v3 = vadd.f32 %v503_v10, %v488_v26 }
  0xc6   : > { %v421_v25 = vpack.c.bf16 %v420_v20, %v420_v20 }
  0xc7   : > { %v568_v27 = vpop.f32.mrf.mxu3  ;;  %v460_v28 = vpop.f32.mrf.mxu2  ;;  %v526_v35 = vadd.f32 %v522_v16, %v507_v3 }
  0xc8   : > { %v505_v29 = vpop.f32.mrf.mxu0  ;;  %v426_v30 = vsel %vm2114_vm5, %v421_v25, %v425_v23  ;;  %v524_v31 = vpop.f32.mrf.mxu1  ;;  %v1481_v28 = vshrl.u32 %v1479_v7, 16 }
  0xc9   : > { %427 = vst [vmem:[%s2106_s16] sm:$0xf] %v426_v30  ;;  %v1485_v29 = vrot.slane %v1483_v14, 1  ;;  %v1766_v14 = vld [vmem:[%s2106_s16 + $0x8] sm:$0xf] }
  0xcb   : > { %v1486_v32 = vor.u32 %v1485_v29, %v1481_v28 }
  0xcc   : > { %1807 = vmatmul.msk.bf16.vlgmr.msrb.gmra.mxu2 %vm193_vm1, %v2081_v36  ;;  %v1343_v36 = vshrl.u32 %v1341_v34, 16 }
  0xcd   : > { %1455 = vmatpush.bf16.msrb.mxu2 %v1910_v2 }
  0xce   : > { %v1348_v55 = vor.u32 %v1347_v47, %v1343_v36 }
  0xcf   : > { %v570_v37 = vpop.f32.mrf.mxu3  ;;  %v549_v39 = vpop.f32.mrf.mxu2 }
  0xd0   : > { %v587_v40 = vpop.f32.mrf.mxu0  ;;  %v553_v42 = vadd.f32 %v549_v39, %v526_v35  ;;  %v614_v43 = vpop.f32.mrf.mxu1 }
  0xd2   : > { %v572_v45 = vadd.f32 %v568_v27, %v553_v42  ;;  %v1823_v27 = vld [vmem:[%s1959_s6 + $0x38] sm:$0xf] }
  0xd3   : > { %1810 = vmatmul.msk.bf16.vlgmr.msra.gmra.mxu0 %vm193_vm1, %v1809_v24  ;;  %1812 = vmatmul.msk.bf16.vlgmr.msra.gmra.mxu1 %vm193_vm1, %v1811_v41 }
  0xd4   : > { %1815 = vmatmul.msk.bf16.vlgmr.msra.gmra.mxu3 %vm193_vm1, %v1814_v33  ;;  %1497 = vmatpush.bf16.msra.mxu0 %v1923_v5  ;;  %v591_v2 = vadd.f32 %v587_v40, %v572_v45  ;;  %v1832_v40 = vld [vmem:[%s1959_s6 + $0x1c] sm:$0xf] }
  0xd5   : > { %1516 = vmatpush.bf16.msra.mxu1 %v1933_v8  ;;  %1562 = vmatpush.bf16.msra.mxu3 %v1951_v13  ;;  %v1827_v8 = vld [vmem:[%s1959_s6 + $0x58] sm:$0xf]  ;;  %v1413_v13 = vor.u32 %v1412_v58, %v1408_v57  ;;  %v1608_v45 = vunpack.c.l.b16 %v1832_v40 }
  0xd6   : > { %v618_v48 = vadd.f32 %v614_v43, %v591_v2  ;;  %v1543_v4 = vunpack.c.l.b16 %v1827_v8 }
  0xd7   : > { %v661_v51 = vpop.f32.mrf.mxu3  ;;  %v551_v52 = vpop.f32.mrf.mxu2  ;;  %v1609_v36 = vpack.c.b16 %v1608_v45, %v1608_v45 }
  0xd8   : > { %v589_v53 = vpop.f32.mrf.mxu0  ;;  %v619_v54 = vadd.f32 %v2090_v49, %v618_v48  ;;  %v616_v56 = vpop.f32.mrf.mxu1  ;;  %v1544_v10 = vpack.c.b16 %v1543_v4, %v1543_v4  ;;  %v1834_v52 = vld [vmem:[%s1959_s6 + $0x3c] sm:$0xf] }
  0xd9   : > { %v1611_v57 = vshrl.u32 %v1609_v36, 16 }
  0xda   : > { %v621_v5 = vmin.f32 %v619_v54, 0.0  ;;  %vm620_vm6 = vcmp.gt.f32.partialorder %v619_v54, 0.0  ;;  %v1548_v23 = vshll.u32 %v1544_v10, 16 }
  0xdc   : > { %v622_v60 = vmul.f32 1.442695, %v621_v5  ;;  %1813 = vmatmul.msk.bf16.vlgmr.msra.gmra.mxu2 %vm193_vm1, %v1348_v55  ;;  %v1550_v30 = vrot.slane %v1548_v23, 1  ;;  %v1613_v55 = vshll.u32 %v1609_v36, 16 }
  0xdd   : > { %1535 = vmatpush.bf16.msra.mxu2 %v1948_v12 }
  0xde   : > { %1855 = vpow2.f32 %v622_v60  ;;  %v1615_v58 = vrot.slane %v1613_v55, 1 }
  0xdf   : > { %v663_v61 = vpop.f32.mrf.mxu3  ;;  %v645_v63 = vpop.f32.mrf.mxu2 }
  0xe0   : > { %v687_v0 = vpop.f32.mrf.mxu0  ;;  %v706_v6 = vpop.f32.mrf.mxu1  ;;  %v662_v25 = vadd.f32 %v661_v51, %v645_v63  ;;  %v1616_v61 = vor.u32 %v1615_v58, %v1611_v57 }
  0xe2   : > { %v691_v31 = vadd.f32 %v687_v0, %v662_v25 }
  0xe3   : > { %1817 = vmatmul.msk.bf16.vlgmr.msrb.gmra.mxu0 %vm193_vm1, %v1816_v1  ;;  %1818 = vmatmul.msk.bf16.vlgmr.msrb.gmra.mxu1 %vm193_vm1, %v1413_v13 }
  0xe4   : > { %1825 = vmatmul.msk.bf16.vlgmr.msrb.gmra.mxu3 %vm193_vm1, %v1822_v59  ;;  %1581 = vmatpush.bf16.msrb.mxu0 %v1936_v9  ;;  %v1856_v12 = vpop.eup %1855  ;;  %v710_v37 = vadd.f32 %v706_v6, %v691_v31 }
  0xe5   : > { %1600 = vmatpush.bf16.msrb.mxu1 %v1964_v15  ;;  %v1747_v11 = vadd.f32 -1.0, %v1856_v12  ;;  %v1546_v15 = vshrl.u32 %v1544_v10, 16 }
  0xe7   : > { %v752_v16 = vpop.f32.mrf.mxu3  ;;  %v625_v17 = vsel %vm620_vm6, %v619_v54, %v1747_v11  ;;  %v647_v19 = vpop.f32.mrf.mxu2  ;;  %v1551_v35 = vor.u32 %v1550_v30, %v1546_v15 }
  0xe8   : > { %v689_v20 = vpop.f32.mrf.mxu0  ;;  %v626_v24 = vpack.c.bf16 %v625_v17, %v625_v17  ;;  %v708_v26 = vpop.f32.mrf.mxu1 }
  0xea   : > { %v629_v9 = vsel %vm2114_vm5, %v626_v24, %v1748_v18 }
  0xeb   : > { %1749 = vst [vmem:[%s2106_s16 + $0x4] sm:$0xf] %v629_v9 }
  0xec   : > { %1824 = vmatmul.msk.bf16.vlgmr.msrb.gmra.mxu2 %vm193_vm1, %v1823_v27 }
  0xed   : > { %1627 = vmatpush.bf16.msrb.mxu2 %v1977_v22 }
  0xef   : > { %v754_v3 = vpop.f32.mrf.mxu3  ;;  %v725_v33 = vpop.f32.mrf.mxu2 }
  0xf0   : > { %v771_v34 = vpop.f32.mrf.mxu0  ;;  %v790_v38 = vpop.f32.mrf.mxu1  ;;  %v729_v39 = vadd.f32 %v725_v33, %v710_v37 }
  0xf2   : > { %v756_v41 = vadd.f32 %v752_v16, %v729_v39 }
  0xf3   : > { %1826 = vmatmul.msk.bf16.vlgmr.msra.gmra.mxu0 %vm193_vm1, %v1486_v32  ;;  %1828 = vmatmul.msk.bf16.vlgmr.msra.gmra.mxu1 %vm193_vm1, %v1827_v8 }
  0xf4   : > { %1831 = vmatmul.msk.bf16.vlgmr.msra.gmra.mxu3 %vm193_vm1, %v1551_v35  ;;  %v775_v2 = vadd.f32 %v771_v34, %v756_v41 }
  0xf6   : > { %v794_v47 = vadd.f32 %v790_v38, %v775_v2  ;;  %v1784_v2 = vld [vmem:[%s2106_s16 + $0xc] sm:$0xf] }
  0xf7   : > { %v848_v42 = vpop.f32.mrf.mxu3  ;;  %v727_v22 = vpop.f32.mrf.mxu2 }
  0xf8   : > { %v773_v43 = vpop.f32.mrf.mxu0  ;;  %v792_v44 = vpop.f32.mrf.mxu1 }
  0xfc   : > { %1830 = vmatmul.msk.bf16.vlgmr.msra.gmra.mxu2 %vm193_vm1, %v1829_v46 }
  0xff   : > { %v850_v48 = vpop.f32.mrf.mxu3  ;;  %v817_v50 = vpop.f32.mrf.mxu2 }
 0x100   : > { %v864_v51 = vpop.f32.mrf.mxu0  ;;  %v821_v53 = vadd.f32 %v817_v50, %v794_v47  ;;  %v890_v54 = vpop.f32.mrf.mxu1 }
 0x101   : > { %v865_v63 = vadd.f32 %v864_v51, %v848_v42 }
 0x102   : > { %v822_v56 = vadd.f32 %v2090_v49, %v821_v53 }
 0x103   : > { %1833 = vmatmul.msk.bf16.vlgmr.msrb.gmra.mxu0 %vm193_vm1, %v1832_v40  ;;  %1835 = vmatmul.msk.bf16.vlgmr.msrb.gmra.mxu1 %vm193_vm1, %v1834_v52  ;;  %v894_v10 = vadd.f32 %v890_v54, %v865_v63 }
 0x104   : > { %v824_v5 = vmin.f32 %v822_v56, 0.0  ;;  %vm823_vm7 = vcmp.gt.f32.partialorder %v822_v56, 0.0 }
 0x106   : > { %v825_v59 = vmul.f32 1.442695, %v824_v5 }
 0x107   : > { %v928_v60 = vpop.f32.mrf.mxu3  ;;  %v819_v8 = vpop.f32.mrf.mxu2 }
 0x108   : > { %v866_v13 = vpop.f32.mrf.mxu0  ;;  %1857 = vpow2.f32 %v825_v59  ;;  %v892_v62 = vpop.f32.mrf.mxu1 }
 0x10c   : > { %1836 = vmatmul.msk.bf16.vlgmr.msrb.gmra.mxu2 %vm193_vm1, %v1616_v61 }
 0x10e   : > { %v1858_v0 = vpop.eup %1857 }
 0x10f   : > { %v930_v1 = vpop.f32.mrf.mxu3  ;;  %v1765_v4 = vadd.f32 -1.0, %v1858_v0  ;;  %v909_v6 = vpop.f32.mrf.mxu2 }
 0x110   : > { %v955_v7 = vpop.f32.mrf.mxu0  ;;  %v974_v12 = vpop.f32.mrf.mxu1  ;;  %v913_v17 = vadd.f32 %v909_v6, %v894_v10 }
 0x111   : > { %v828_v11 = vsel %vm823_vm7, %v822_v56, %v1765_v4 }
 0x112   : > { %v829_v16 = vpack.c.bf16 %v828_v11, %v828_v11  ;;  %v932_v19 = vadd.f32 %v928_v60, %v913_v17 }
 0x114   : > { %v832_v18 = vsel %vm2114_vm5, %v829_v16, %v1766_v14  ;;  %v959_v26 = vadd.f32 %v955_v7, %v932_v19 }
 0x115   : > { %1767 = vst [vmem:[%s2106_s16 + $0x8] sm:$0xf] %v832_v18  ;;  %v1802_v18 = vld [vmem:[%s2106_s16 + $0x10] sm:$0xf] }
 0x116   : > { %v978_v27 = vadd.f32 %v974_v12, %v959_v26 }
 0x117   : > { %v1020_v20 = vpop.f32.mrf.mxu3  ;;  %v911_v23 = vpop.f32.mrf.mxu2 }
 0x118   : > { %v957_v24 = vpop.f32.mrf.mxu0  ;;  %v976_v25 = vpop.f32.mrf.mxu1 }
 0x11f   : > { %v1022_v9 = vpop.f32.mrf.mxu3  ;;  %v993_v28 = vpop.f32.mrf.mxu2 }
 0x120   : > { %v1051_v29 = vpop.f32.mrf.mxu0  ;;  %v997_v15 = vadd.f32 %v993_v28, %v978_v27  ;;  %v1067_v30 = vpop.f32.mrf.mxu1 }
 0x121   : > { %v1068_v22 = vadd.f32 %v1067_v30, %v1051_v29 }
 0x122   : > { %v1024_v31 = vadd.f32 %v1020_v20, %v997_v15 }
 0x124   : > { %v1025_v32 = vadd.f32 %v2090_v49, %v1024_v31 }
 0x126   : > { %v1027_v3 = vmin.f32 %v1025_v32, 0.0  ;;  %vm1026_vm8 = vcmp.gt.f32.partialorder %v1025_v32, 0.0 }
 0x127   : > { %v1112_v33 = vpop.f32.mrf.mxu3  ;;  %v995_v34 = vpop.f32.mrf.mxu2 }
 0x128   : > { %v1053_v35 = vpop.f32.mrf.mxu0  ;;  %v1028_v37 = vmul.f32 1.442695, %v1027_v3  ;;  %v1069_v38 = vpop.f32.mrf.mxu1 }
 0x12a   : > { %1859 = vpow2.f32 %v1028_v37 }
 0x12f   : > { %v1114_v39 = vpop.f32.mrf.mxu3  ;;  %v1093_v40 = vpop.f32.mrf.mxu2 }
 0x130   : > { %v1131_v41 = vpop.f32.mrf.mxu0  ;;  %v1860_v42 = vpop.eup %1859  ;;  %v1097_v45 = vadd.f32 %v1093_v40, %v1068_v22 }
 0x131   : > { %v1158_v43 = vpop.f32.mrf.mxu1  ;;  %v1783_v44 = vadd.f32 -1.0, %v1860_v42 }
 0x132   : > { %v1116_v48 = vadd.f32 %v1112_v33, %v1097_v45 }
 0x133   : > { %v1031_v46 = vsel %vm1026_vm8, %v1025_v32, %v1783_v44 }
 0x134   : > { %v1032_v36 = vpack.c.bf16 %v1031_v46, %v1031_v46  ;;  %v1135_v54 = vadd.f32 %v1131_v41, %v1116_v48  ;;  %v1820_v48 = vld [vmem:[%s2106_s16 + $0x14] sm:$0xf] }
 0x136   : > { %v1035_v47 = vsel %vm2114_vm5, %v1032_v36, %v1784_v2  ;;  %v1162_v55 = vadd.f32 %v1158_v43, %v1135_v54 }
 0x137   : > { %v1196_v50 = vpop.f32.mrf.mxu3  ;;  %1785 = vst [vmem:[%s2106_s16 + $0xc] sm:$0xf] %v1035_v47  ;;  %v1095_v51 = vpop.f32.mrf.mxu2 }
 0x138   : > { %v1133_v52 = vpop.f32.mrf.mxu0 }
 0x139   : > { %v1160_v53 = vpop.f32.mrf.mxu1 }
 0x13f   : > { %v1198_v56 = vpop.f32.mrf.mxu3  ;;  %v1177_v5 = vpop.f32.mrf.mxu2 }
 0x140   : > { %v1223_v57 = vpop.f32.mrf.mxu0  ;;  %v1181_v58 = vadd.f32 %v1177_v5, %v1162_v55 }
 0x141   : > { %v1254_v59 = vpop.f32.mrf.mxu1 }
 0x142   : > { %v1200_v60 = vadd.f32 %v1196_v50, %v1181_v58 }
 0x144   : > { %v1227_v8 = vadd.f32 %v1223_v57, %v1200_v60 }
 0x146   : > { %v1228_v13 = vadd.f32 %v2090_v49, %v1227_v8 }
 0x147   : > { %v1296_v61 = vpop.f32.mrf.mxu3  ;;  %v1179_v62 = vpop.f32.mrf.mxu2 }
 0x148   : > { %v1225_v63 = vpop.f32.mrf.mxu0  ;;  %v1230_v0 = vmin.f32 %v1228_v13, 0.0  ;;  %vm1229_vm9 = vcmp.gt.f32.partialorder %v1228_v13, 0.0 }
 0x149   : > { %v1256_v1 = vpop.f32.mrf.mxu1 }
 0x14a   : > { %v1231_v4 = vmul.f32 1.442695, %v1230_v0 }
 0x14c   : > { %1861 = vpow2.f32 %v1231_v4 }
 0x14f   : > { %v1298_v6 = vpop.f32.mrf.mxu3  ;;  %v1270_v7 = vpop.f32.mrf.mxu2 }
 0x150   : > { %v1315_v10 = vpop.f32.mrf.mxu0  ;;  %v1271_v14 = vadd.f32 %v1270_v7, %v1254_v59 }
 0x151   : > { %v1334_v12 = vpop.f32.mrf.mxu1 }
 0x152   : > { %v1862_v11 = vpop.eup %1861  ;;  %v1300_v20 = vadd.f32 %v1296_v61, %v1271_v14 }
 0x153   : > { %v1801_v16 = vadd.f32 -1.0, %v1862_v11 }
 0x154   : > { %v1319_v9 = vadd.f32 %v1315_v10, %v1300_v20 }
 0x155   : > { %v1234_v17 = vsel %vm1229_vm9, %v1228_v13, %v1801_v16 }
 0x156   : > { %v1235_v19 = vpack.c.bf16 %v1234_v17, %v1234_v17  ;;  %v1338_v28 = vadd.f32 %v1334_v12, %v1319_v9 }
 0x157   : > { %v1380_v23 = vpop.f32.mrf.mxu3  ;;  %v1272_v24 = vpop.f32.mrf.mxu2 }
 0x158   : > { %v1317_v25 = vpop.f32.mrf.mxu0  ;;  %v1238_v26 = vsel %vm2114_vm5, %v1235_v19, %v1802_v18  ;;  %v1838_v18 = vld [vmem:[%s2106_s16 + $0x18] sm:$0xf] }
 0x159   : > { %v1336_v27 = vpop.f32.mrf.mxu1  ;;  %1803 = vst [vmem:[%s2106_s16 + $0x10] sm:$0xf] %v1238_v26 }
 0x15f   : > { %v1382_v29 = vpop.f32.mrf.mxu3  ;;  %v1361_v15 = vpop.f32.mrf.mxu2 }
 0x160   : > { %v1399_v30 = vpop.f32.mrf.mxu0  ;;  %v1365_v31 = vadd.f32 %v1361_v15, %v1338_v28 }
 0x161   : > { %v1426_v32 = vpop.f32.mrf.mxu1 }
 0x162   : > { %v1384_v3 = vadd.f32 %v1380_v23, %v1365_v31 }
 0x164   : > { %v1403_v33 = vadd.f32 %v1399_v30, %v1384_v3 }
 0x166   : > { %v1430_v34 = vadd.f32 %v1426_v32, %v1403_v33 }
 0x167   : > { %v1473_v35 = vpop.f32.mrf.mxu3  ;;  %v1363_v37 = vpop.f32.mrf.mxu2 }
 0x168   : > { %v1401_v38 = vpop.f32.mrf.mxu0  ;;  %v1431_v39 = vadd.f32 %v2090_v49, %v1430_v34 }
 0x169   : > { %v1428_v40 = vpop.f32.mrf.mxu1 }
 0x16a   : > { %v1433_v41 = vmin.f32 %v1431_v39, 0.0  ;;  %vm1432_vm10 = vcmp.gt.f32.partialorder %v1431_v39, 0.0 }
 0x16c   : > { %v1434_v42 = vmul.f32 1.442695, %v1433_v41 }
 0x16e   : > { %1863 = vpow2.f32 %v1434_v42 }
 0x16f   : > { %v1475_v22 = vpop.f32.mrf.mxu3  ;;  %v1457_v43 = vpop.f32.mrf.mxu2 }
 0x170   : > { %v1499_v44 = vpop.f32.mrf.mxu0  ;;  %v1474_v53 = vadd.f32 %v1473_v35, %v1457_v43 }
 0x171   : > { %v1518_v45 = vpop.f32.mrf.mxu1 }
 0x172   : > { %v1503_v56 = vadd.f32 %v1499_v44, %v1474_v53 }
 0x174   : > { %v1864_v46 = vpop.eup %1863  ;;  %v1522_v59 = vadd.f32 %v1518_v45, %v1503_v56 }
 0x175   : > { %v1819_v2 = vadd.f32 -1.0, %v1864_v46 }
 0x177   : > { %v1564_v36 = vpop.f32.mrf.mxu3  ;;  %v1437_v47 = vsel %vm1432_vm10, %v1431_v39, %v1819_v2  ;;  %v1459_v50 = vpop.f32.mrf.mxu2 }
 0x178   : > { %v1501_v51 = vpop.f32.mrf.mxu0  ;;  %v1438_v52 = vpack.c.bf16 %v1437_v47, %v1437_v47 }
 0x179   : > { %v1520_v54 = vpop.f32.mrf.mxu1 }
 0x17a   : > { %v1441_v55 = vsel %vm2114_vm5, %v1438_v52, %v1820_v48 }
 0x17b   : > { %1821 = vst [vmem:[%s2106_s16 + $0x14] sm:$0xf] %v1441_v55 }
 0x17f   : > { %v1566_v5 = vpop.f32.mrf.mxu3  ;;  %v1537_v57 = vpop.f32.mrf.mxu2 }
 0x180   : > { %v1583_v58 = vpop.f32.mrf.mxu0  ;;  %v1541_v8 = vadd.f32 %v1537_v57, %v1522_v59 }
 0x181   : > { %v1602_v60 = vpop.f32.mrf.mxu1 }
 0x182   : > { %v1568_v13 = vadd.f32 %v1564_v36, %v1541_v8 }
 0x184   : > { %v1587_v0 = vadd.f32 %v1583_v58, %v1568_v13 }
 0x186   : > { %v1606_v1 = vadd.f32 %v1602_v60, %v1587_v0 }
 0x187   : > { %v1539_v61 = vpop.f32.mrf.mxu2 }
 0x188   : > { %v1585_v62 = vpop.f32.mrf.mxu0 }
 0x189   : > { %v1604_v63 = vpop.f32.mrf.mxu1 }
 0x18f   : > { %v1629_v4 = vpop.f32.mrf.mxu2 }
 0x190   : > { %v1633_v6 = vadd.f32 %v1629_v4, %v1606_v1 }
 0x192   : > { %v1634_v7 = vadd.f32 %v2090_v49, %v1633_v6 }
 0x194   : > { %v1636_v10 = vmin.f32 %v1634_v7, 0.0  ;;  %vm1635_vm11 = vcmp.gt.f32.partialorder %v1634_v7, 0.0 }
 0x196   : > { %v1637_v12 = vmul.f32 1.442695, %v1636_v10 }
 0x197   : > { %v1631_v11 = vpop.f32.mrf.mxu2 }
 0x198   : > { %1865 = vpow2.f32 %v1637_v12 }
 0x19e   : > { %v1866_v14 = vpop.eup %1865 }
 0x19f   : > { %v1837_v16 = vadd.f32 -1.0, %v1866_v14 }
 0x1a1   : > { %v1640_v17 = vsel %vm1635_vm11, %v1634_v7, %v1837_v16 }
 0x1a2   : > { %v1641_v19 = vpack.c.bf16 %v1640_v17, %v1640_v17 }
 0x1a4   : > { %v1644_v20 = vsel %vm2114_vm5, %v1641_v19, %v1838_v18 }
 0x1a5   : > { %1839 = vst [vmem:[%s2106_s16 + $0x18] sm:$0xf] %v1644_v20 }
 0x1a6 PF: > { %s13_s12 = sadd.s32 1, %s1873_s12  }
 0x1a7   : > { %p10_p4 = scmp.ge.s32.totalorder %s13_s12, 4  }
 0x1a9   :  { %12 = sbr.rel (!%p10_p4) target bundleno = 1 (0x1), region = 105 }

</bundles_post_ra>
